<compile_context>
chip_gen: v7x
topology: tpu7x:2x2x1
jax: 0.10.0
libtpu: 0.0.40
codegen_flags: <defaults>
</compile_context>

<pallas_src>
from functools import partial

import jax
import jax.numpy as jnp
import numpy as np
from jax.experimental import pallas as pl
from jax.experimental.pallas import tpu as pltpu

D_MODEL = 32
NHEAD = 4
HEAD_DIM = D_MODEL // NHEAD
FFN_DIM = 64
NUM_LAYERS = 2
EPS = 1e-5

# packing order of the per-layer attention weights/biases (8 slots per layer:
# self-attn Wq,Wk,Wv,Wo then cross-attn Wq,Wk,Wv,Wo)
ATTN_W_KEYS = ("sa_wq", "sa_wk", "sa_wv", "sa_wo",
               "ca_wq", "ca_wk", "ca_wv", "ca_wo")
ATTN_B_KEYS = ("sa_bq", "sa_bk", "sa_bv", "sa_bo",
               "ca_bq", "ca_bk", "ca_bv", "ca_bo")
LN_G_KEYS = ("n1_g", "n2_g", "n3_g")
LN_B_KEYS = ("n1_b", "n2_b", "n3_b")


# ---------------------------------------------------------------------------
# shared math helper (f32)
# ---------------------------------------------------------------------------
def _layer_norm(x, g, b):
    mu = jnp.mean(x, axis=-1, keepdims=True)
    var = jnp.mean((x - mu) ** 2, axis=-1, keepdims=True)
    return (x - mu) * jax.lax.rsqrt(var + EPS) * g + b


# ---------------------------------------------------------------------------
# fused decoder Pallas kernel (whole batch, all layers, one invocation)
# ---------------------------------------------------------------------------
def decoder_kernel(tgt_ref, mem_ref, qpos_ref,
                   attn_w_ref, attn_b_ref,
                   ffn_w1_ref, ffn_b1_ref, ffn_w2_ref, ffn_b2_ref,
                   ln_g_ref, ln_b_ref, fn_g_ref, fn_b_ref,
                   out_ref, *, nb, tq, sk):
    f32 = jnp.float32
    bf16 = jnp.bfloat16

    x = tgt_ref[...].astype(f32)       # (nb*tq, D)  residual stream stays f32
    qp = qpos_ref[...].astype(f32)     # (nb*tq, D)
    mem = mem_ref[...].astype(bf16)    # (nb*sk, D)  only ever a matmul operand

    def mm(a, b):
        # bf16 operands, f32 MXU accumulation
        return jnp.dot(a.astype(bf16), b, preferred_element_type=f32)

    def attention(q_in, k_in, v_in, seq_k, widx, layer, boff):
        wq = attn_w_ref[widx + 0]              # (D, D) bf16 (scale folded into Wq/bq)
        wk = attn_w_ref[widx + 1]
        wv = attn_w_ref[widx + 2]
        wo = attn_w_ref[widx + 3]
        bias = attn_b_ref[layer]               # (8, D) f32, sublane-aligned slab
        bq = bias[boff + 0:boff + 1, :]
        bk = bias[boff + 1:boff + 2, :]
        bv = bias[boff + 2:boff + 3, :]
        bo = bias[boff + 3:boff + 4, :]

        # full-width projections on the whole batch slab (one MXU matmul each)
        q = mm(q_in, wq) + bq                  # (nb*tq, D)
        k = mm(k_in, wk) + bk                  # (nb*seq_k, D)
        v = mm(v_in, wv) + bv

        # split only the leading dim (cheap) and cast once for the MXU
        q3 = q.reshape(nb, tq, D_MODEL).astype(bf16)
        k3 = k.reshape(nb, seq_k, D_MODEL).astype(bf16)
        v3 = v.reshape(nb, seq_k, D_MODEL).astype(bf16)

        acc = jnp.zeros((nb * tq, D_MODEL), f32)
        for h in range(NHEAD):                 # static unroll; each op is batched over nb
            c0, c1 = h * HEAD_DIM, (h + 1) * HEAD_DIM
            # scores: K fed untransposed (contract last dims), batched over nb
            s = jnp.einsum("btd,bsd->bts", q3[:, :, c0:c1], k3[:, :, c0:c1],
                           preferred_element_type=f32)          # (nb, tq, seq_k) f32
            s = s - jnp.max(s, axis=-1, keepdims=True)
            p = jnp.exp(s)
            p = p * pl.reciprocal(jnp.sum(p, axis=-1, keepdims=True), approx=True)
            ctx = jnp.einsum("bts,bsd->btd", p.astype(bf16), v3[:, :, c0:c1],
                             preferred_element_type=f32)        # (nb, tq, HEAD_DIM)
            # accumulate the output projection per head -> no lane-axis concat
            acc = acc + jnp.dot(ctx.reshape(nb * tq, HEAD_DIM).astype(bf16),
                                wo[c0:c1, :], preferred_element_type=f32)
        return acc + bo

    # static unroll over layers (L=2); switch to lax.fori_loop for deep stacks
    for l in range(NUM_LAYERS):
        lng = ln_g_ref[l]                      # (3, D) f32
        lnb = ln_b_ref[l]

        # --- self attention: q = k = x + query_pos, v = x ---
        q_in = x + qp
        sa = attention(q_in, q_in, x, tq, l * 8 + 0, l, 0)
        x = _layer_norm(x + sa, lng[0:1, :], lnb[0:1, :])

        # --- cross attention: q = x + query_pos, k = v = memory ---
        ca = attention(x + qp, mem, mem, sk, l * 8 + 4, l, 4)
        x = _layer_norm(x + ca, lng[1:2, :], lnb[1:2, :])

        # --- feed-forward (ReLU) ---
        h = mm(x, ffn_w1_ref[l]) + ffn_b1_ref[l]
        h = jnp.maximum(h, 0.0)
        ffn = mm(h, ffn_w2_ref[l]) + ffn_b2_ref[l]
        x = _layer_norm(x + ffn, lng[2:3, :], lnb[2:3, :])

    # final LayerNorm
    x = _layer_norm(x, fn_g_ref[...], fn_b_ref[...])
    # NOTE: last dim is 32 (< 128) -> masked store; negligible at this size.
    out_ref[...] = x.astype(out_ref.dtype)


# ---------------------------------------------------------------------------
# wrapper
# ---------------------------------------------------------------------------
def transformer_decoder(tgt, memory, query_pos, packed, norm_g, norm_b):
    B, T, D = tgt.shape
    S = memory.shape[1]
    assert D == D_MODEL and memory.shape[2] == D_MODEL

    inputs = (
        tgt.reshape(B * T, D),
        memory.reshape(B * S, D),
        query_pos.reshape(B * T, D),
        packed["attn_w"], packed["attn_b"],
        packed["ffn_w1"], packed["ffn_b1"], packed["ffn_w2"], packed["ffn_b2"],
        packed["ln_g"], packed["ln_b"],
        norm_g, norm_b,
    )
    vmem = pl.BlockSpec(memory_space=pltpu.MemorySpace.VMEM)

    # Grid-less: total footprint is a few hundred KB, so everything stays resident
    # in VMEM on v5e/v6e/v7x.  (On v7x at real DETR sizes, add grid=(B,) with
    # dimension_semantics=("parallel",) and tiled BlockSpecs instead.)
    out = pl.pallas_call(
        partial(decoder_kernel, nb=B, tq=T, sk=S),
        out_shape=jax.ShapeDtypeStruct((B * T, D), jnp.float32),
        in_specs=[vmem] * len(inputs),
        out_specs=vmem,
    )(*inputs)

    # PyTorch: (T,B,D) -> unsqueeze(0) -> (1,T,B,D) -> transpose(1,2) -> (1,B,T,D)
    return out.reshape(B, T, D)[None]


# ---------------------------------------------------------------------------
# deterministic parameter construction (synthetic — no checkpoints).
# Weights are stored in x @ W layout (i.e. torch_weight.T).
# ---------------------------------------------------------------------------
def init_layer_params(key):
    ks = iter(jax.random.split(key, 26))

    def rnd(shape):
        return 0.1 * jax.random.normal(next(ks), shape, jnp.float32)

    p = {}
    for pre in ("sa", "ca"):
        for name, shape in (("wq", (D_MODEL, D_MODEL)), ("wk", (D_MODEL, D_MODEL)),
                            ("wv", (D_MODEL, D_MODEL)), ("wo", (D_MODEL, D_MODEL)),
                            ("bq", (1, D_MODEL)), ("bk", (1, D_MODEL)),
                            ("bv", (1, D_MODEL)), ("bo", (1, D_MODEL))):
            p[f"{pre}_{name}"] = rnd(shape)
    p["ff_w1"] = rnd((D_MODEL, FFN_DIM))
    p["ff_b1"] = rnd((1, FFN_DIM))
    p["ff_w2"] = rnd((FFN_DIM, D_MODEL))
    p["ff_b2"] = rnd((1, D_MODEL))
    for i in (1, 2, 3):
        p[f"n{i}_g"] = 1.0 + rnd((1, D_MODEL))
        p[f"n{i}_b"] = rnd((1, D_MODEL))
    return p


def pack_params(layer_params):
    """Pack per-layer dicts into a few stacked, sublane/lane-friendly arrays.

    - 1/sqrt(HEAD_DIM) is folded into Wq / bq here (one-time host transform).
    - Matmul weights are stored in bfloat16 (MXU operands); biases / LN params
      stay f32 (added/used in f32 on the VPU).
    """
    scale = 1.0 / float(HEAD_DIM) ** 0.5

    def w_of(p, k):
        w = p[k]
        return w * scale if k in ("sa_wq", "ca_wq") else w

    def b_of(p, k):
        b = p[k]
        return b * scale if k in ("sa_bq", "ca_bq") else b

    attn_w = jnp.stack([w_of(p, k) for p in layer_params for k in ATTN_W_KEYS])    # (L*8, D, D)
    attn_b = jnp.stack([jnp.concatenate([b_of(p, k) for k in ATTN_B_KEYS], axis=0)
                        for p in layer_params])                                    # (L, 8, D)
    ln_g = jnp.stack([jnp.concatenate([p[k] for k in LN_G_KEYS], axis=0)
                      for p in layer_params])                                      # (L, 3, D)
    ln_b = jnp.stack([jnp.concatenate([p[k] for k in LN_B_KEYS], axis=0)
                      for p in layer_params])                                      # (L, 3, D)
    return dict(
        attn_w=attn_w.astype(jnp.bfloat16),
        attn_b=attn_b,
        ffn_w1=jnp.stack([p["ff_w1"] for p in layer_params]).astype(jnp.bfloat16), # (L, D, F)
        ffn_b1=jnp.stack([p["ff_b1"] for p in layer_params]),                      # (L, 1, F)
        ffn_w2=jnp.stack([p["ff_w2"] for p in layer_params]).astype(jnp.bfloat16), # (L, F, D)
        ffn_b2=jnp.stack([p["ff_b2"] for p in layer_params]),                      # (L, 1, D)
        ln_g=ln_g, ln_b=ln_b,
    )


# ---------------------------------------------------------------------------
# pure-JAX f32 reference (same math, exact softmax division) for correctness check
# ---------------------------------------------------------------------------
def _ref_mha(q_in, k_in, v_in, wq, wk, wv, bq, bk, bv, wo, bo):
    T = q_in.shape[0]
    S = k_in.shape[0]
    scale = 1.0 / float(HEAD_DIM) ** 0.5
    q = (q_in @ wq + bq).reshape(T, NHEAD, HEAD_DIM)
    k = (k_in @ wk + bk).reshape(S, NHEAD, HEAD_DIM)
    v = (v_in @ wv + bv).reshape(S, NHEAD, HEAD_DIM)
    s = jnp.einsum("thd,shd->hts", q, k) * scale
    p = jax.nn.softmax(s, axis=-1)
    ctx = jnp.einsum("hts,shd->thd", p, v).reshape(T, D_MODEL)
    return ctx @ wo + bo


def _ref_layer(x, mem, qp, p):
    q_in = x + qp
    sa = _ref_mha(q_in, q_in, x, p["sa_wq"], p["sa_wk"], p["sa_wv"],
                  p["sa_bq"], p["sa_bk"], p["sa_bv"], p["sa_wo"], p["sa_bo"])
    x = _layer_norm(x + sa, p["n1_g"], p["n1_b"])
    q_in = x + qp
    ca = _ref_mha(q_in, mem, mem, p["ca_wq"], p["ca_wk"], p["ca_wv"],
                  p["ca_bq"], p["ca_bk"], p["ca_bv"], p["ca_wo"], p["ca_bo"])
    x = _layer_norm(x + ca, p["n2_g"], p["n2_b"])
    h = jnp.maximum(x @ p["ff_w1"] + p["ff_b1"], 0.0)
    x = _layer_norm(x + h @ p["ff_w2"] + p["ff_b2"], p["n3_g"], p["n3_b"])
    return x


def reference_decoder(tgt, memory, qpos, layer_params, norm_g, norm_b):
    x = tgt
    for p in layer_params:
        x = jax.vmap(lambda xb, mb, qb, _p=p: _ref_layer(xb, mb, qb, _p))(
            x, memory, qpos)
    x = _layer_norm(x, norm_g, norm_b)
    return x[None]


# ---------------------------------------------------------------------------
if __name__ == "__main__":
    B, T, S = 2, 8, 16  # batch, num target queries, memory length

    key = jax.random.PRNGKey(0)
    k_tgt, k_mem, k_qp, k_params, k_norm = jax.random.split(key, 5)
    tgt = jax.random.normal(k_tgt, (B, T, D_MODEL), jnp.float32)
    memory = jax.random.normal(k_mem, (B, S, D_MODEL), jnp.float32)
    query_pos = jax.random.normal(k_qp, (B, T, D_MODEL), jnp.float32)

    layer_keys = jax.random.split(k_params, NUM_LAYERS)
    layer_params = [init_layer_params(k) for k in layer_keys]
    kg, kb = jax.random.split(k_norm)
    norm_g = 1.0 + 0.1 * jax.random.normal(kg, (1, D_MODEL), jnp.float32)
    norm_b = 0.1 * jax.random.normal(kb, (1, D_MODEL), jnp.float32)

    packed = pack_params(layer_params)

    out = transformer_decoder(tgt, memory, query_pos, packed, norm_g, norm_b)
    out = jax.block_until_ready(out)
    assert out.shape == (1, B, T, D_MODEL), out.shape

    ref = reference_decoder(tgt, memory, query_pos, layer_params, norm_g, norm_b)
    # tolerance covers bf16 MXU operands + approx-reciprocal softmax denominator
    np.testing.assert_allclose(np.asarray(out), np.asarray(ref), rtol=3e-2, atol=3e-2)

    print("KERNEL_OK")
</pallas_src>

<mosaic_0001>
module attributes {stable_mosaic.version = 11 : i64} {
  func.func @decoder_kernel(%arg0: memref<16x32xf32, #tpu.memory_space<vmem>>, %arg1: memref<32x32xf32, #tpu.memory_space<vmem>>, %arg2: memref<16x32xf32, #tpu.memory_space<vmem>>, %arg3: memref<16x32x32xbf16, #tpu.memory_space<vmem>>, %arg4: memref<2x8x32xf32, #tpu.memory_space<vmem>>, %arg5: memref<2x32x64xbf16, #tpu.memory_space<vmem>>, %arg6: memref<2x1x64xf32, #tpu.memory_space<vmem>>, %arg7: memref<2x64x32xbf16, #tpu.memory_space<vmem>>, %arg8: memref<2x1x32xf32, #tpu.memory_space<vmem>>, %arg9: memref<2x3x32xf32, #tpu.memory_space<vmem>>, %arg10: memref<2x3x32xf32, #tpu.memory_space<vmem>>, %arg11: memref<1x32xf32, #tpu.memory_space<vmem>>, %arg12: memref<1x32xf32, #tpu.memory_space<vmem>>, %arg13: memref<16x32xf32, #tpu.memory_space<vmem>>) attributes {dimension_semantics = [], scalar_prefetch = 0 : i64, scratch_operands = 0 : i64, tpu.core_type = #tpu.core_type<tc>} {
    %c0 = arith.constant 0 : index
    %c0_0 = arith.constant 0 : index
    %0 = vector.load %arg0[%c0, %c0_0] : memref<16x32xf32, #tpu.memory_space<vmem>>, vector<16x32xf32>
    %c0_1 = arith.constant 0 : index
    %c0_2 = arith.constant 0 : index
    %1 = vector.load %arg2[%c0_1, %c0_2] : memref<16x32xf32, #tpu.memory_space<vmem>>, vector<16x32xf32>
    %c0_3 = arith.constant 0 : index
    %c0_4 = arith.constant 0 : index
    %2 = vector.load %arg1[%c0_3, %c0_4] : memref<32x32xf32, #tpu.memory_space<vmem>>, vector<32x32xf32>
    %3 = arith.truncf %2 : vector<32x32xf32> to vector<32x32xbf16>
    %c0_5 = arith.constant 0 : index
    %c0_6 = arith.constant 0 : index
    %c0_7 = arith.constant 0 : index
    %4 = vector.load %arg9[%c0_5, %c0_6, %c0_7] : memref<2x3x32xf32, #tpu.memory_space<vmem>>, vector<1x3x32xf32>
    %5 = vector.shape_cast %4 : vector<1x3x32xf32> to vector<3x32xf32>
    %c0_8 = arith.constant 0 : index
    %c0_9 = arith.constant 0 : index
    %c0_10 = arith.constant 0 : index
    %6 = vector.load %arg10[%c0_8, %c0_9, %c0_10] : memref<2x3x32xf32, #tpu.memory_space<vmem>>, vector<1x3x32xf32>
    %7 = vector.shape_cast %6 : vector<1x3x32xf32> to vector<3x32xf32>
    %8 = arith.addf %0, %1 : vector<16x32xf32>
    %c0_11 = arith.constant 0 : index
    %c0_12 = arith.constant 0 : index
    %c0_13 = arith.constant 0 : index
    %9 = vector.load %arg3[%c0_11, %c0_12, %c0_13] : memref<16x32x32xbf16, #tpu.memory_space<vmem>>, vector<1x32x32xbf16>
    %10 = vector.shape_cast %9 : vector<1x32x32xbf16> to vector<32x32xbf16>
    %c1 = arith.constant 1 : index
    %c0_14 = arith.constant 0 : index
    %c0_15 = arith.constant 0 : index
    %11 = vector.load %arg3[%c1, %c0_14, %c0_15] : memref<16x32x32xbf16, #tpu.memory_space<vmem>>, vector<1x32x32xbf16>
    %12 = vector.shape_cast %11 : vector<1x32x32xbf16> to vector<32x32xbf16>
    %c2 = arith.constant 2 : index
    %c0_16 = arith.constant 0 : index
    %c0_17 = arith.constant 0 : index
    %13 = vector.load %arg3[%c2, %c0_16, %c0_17] : memref<16x32x32xbf16, #tpu.memory_space<vmem>>, vector<1x32x32xbf16>
    %14 = vector.shape_cast %13 : vector<1x32x32xbf16> to vector<32x32xbf16>
    %c3 = arith.constant 3 : index
    %c0_18 = arith.constant 0 : index
    %c0_19 = arith.constant 0 : index
    %15 = vector.load %arg3[%c3, %c0_18, %c0_19] : memref<16x32x32xbf16, #tpu.memory_space<vmem>>, vector<1x32x32xbf16>
    %16 = vector.shape_cast %15 : vector<1x32x32xbf16> to vector<32x32xbf16>
    %c0_20 = arith.constant 0 : index
    %c0_21 = arith.constant 0 : index
    %c0_22 = arith.constant 0 : index
    %17 = vector.load %arg4[%c0_20, %c0_21, %c0_22] : memref<2x8x32xf32, #tpu.memory_space<vmem>>, vector<1x8x32xf32>
    %18 = vector.shape_cast %17 : vector<1x8x32xf32> to vector<8x32xf32>
    %19 = vector.extract_strided_slice %18 {offsets = [0, 0], sizes = [1, 32], strides = [1, 1]} : vector<8x32xf32> to vector<1x32xf32>
    %20 = vector.extract_strided_slice %18 {offsets = [1, 0], sizes = [1, 32], strides = [1, 1]} : vector<8x32xf32> to vector<1x32xf32>
    %21 = vector.extract_strided_slice %18 {offsets = [2, 0], sizes = [1, 32], strides = [1, 1]} : vector<8x32xf32> to vector<1x32xf32>
    %22 = vector.extract_strided_slice %18 {offsets = [3, 0], sizes = [1, 32], strides = [1, 1]} : vector<8x32xf32> to vector<1x32xf32>
    %23 = arith.truncf %8 : vector<16x32xf32> to vector<16x32xbf16>
    %cst = arith.constant dense<0.000000e+00> : vector<16x32xf32>
    %24 = tpu.matmul %23, %10, %cst {dimension_numbers = #tpu.dot_dimension_numbers<[1], [0], [0], [1], [0, 0, 1, 1], [], []>} : vector<16x32xbf16>, vector<32x32xbf16>, vector<16x32xf32> -> vector<16x32xf32>
    %25 = vector.broadcast %19 : vector<1x32xf32> to vector<16x32xf32>
    %26 = arith.addf %24, %25 : vector<16x32xf32>
    %27 = arith.truncf %8 : vector<16x32xf32> to vector<16x32xbf16>
    %cst_23 = arith.constant dense<0.000000e+00> : vector<16x32xf32>
    %28 = tpu.matmul %27, %12, %cst_23 {dimension_numbers = #tpu.dot_dimension_numbers<[1], [0], [0], [1], [0, 0, 1, 1], [], []>} : vector<16x32xbf16>, vector<32x32xbf16>, vector<16x32xf32> -> vector<16x32xf32>
    %29 = vector.broadcast %20 : vector<1x32xf32> to vector<16x32xf32>
    %30 = arith.addf %28, %29 : vector<16x32xf32>
    %31 = arith.truncf %0 : vector<16x32xf32> to vector<16x32xbf16>
    %cst_24 = arith.constant dense<0.000000e+00> : vector<16x32xf32>
    %32 = tpu.matmul %31, %14, %cst_24 {dimension_numbers = #tpu.dot_dimension_numbers<[1], [0], [0], [1], [0, 0, 1, 1], [], []>} : vector<16x32xbf16>, vector<32x32xbf16>, vector<16x32xf32> -> vector<16x32xf32>
    %33 = vector.broadcast %21 : vector<1x32xf32> to vector<16x32xf32>
    %34 = arith.addf %32, %33 : vector<16x32xf32>
    %35 = vector.shape_cast %26 : vector<16x32xf32> to vector<2x8x32xf32>
    %36 = arith.truncf %35 : vector<2x8x32xf32> to vector<2x8x32xbf16>
    %37 = vector.shape_cast %30 : vector<16x32xf32> to vector<2x8x32xf32>
    %38 = arith.truncf %37 : vector<2x8x32xf32> to vector<2x8x32xbf16>
    %39 = vector.shape_cast %34 : vector<16x32xf32> to vector<2x8x32xf32>
    %40 = arith.truncf %39 : vector<2x8x32xf32> to vector<2x8x32xbf16>
    %cst_25 = arith.constant 0.000000e+00 : f32
    %41 = vector.broadcast %cst_25 : f32 to vector<16x32xf32>
    %42 = vector.extract_strided_slice %36 {offsets = [0, 0, 0], sizes = [2, 8, 8], strides = [1, 1, 1]} : vector<2x8x32xbf16> to vector<2x8x8xbf16>
    %43 = vector.extract_strided_slice %38 {offsets = [0, 0, 0], sizes = [2, 8, 8], strides = [1, 1, 1]} : vector<2x8x32xbf16> to vector<2x8x8xbf16>
    "tpu.trace_start"() <{level = 10 : i32, message = "btd,bsd->bts"}> : () -> ()
    %cst_26 = arith.constant dense<0.000000e+00> : vector<2x8x8xf32>
    %44 = tpu.matmul %42, %43, %cst_26 {dimension_numbers = #tpu.dot_dimension_numbers<[2], [2], [1], [1], [0, 0, 0, 1, 1, 1], [0], [0]>} : vector<2x8x8xbf16>, vector<2x8x8xbf16>, vector<2x8x8xf32> -> vector<2x8x8xf32>
    "tpu.trace_stop"() : () -> ()
    %cst_27 = arith.constant dense<0xFF800000> : vector<2x8xf32>
    %45 = vector.multi_reduction <maximumf>, %44, %cst_27 [2] : vector<2x8x8xf32> to vector<2x8xf32>
    %46 = vector.shape_cast %45 : vector<2x8xf32> to vector<2x8x1xf32>
    %47 = vector.broadcast %46 : vector<2x8x1xf32> to vector<2x8x8xf32>
    %48 = arith.subf %44, %47 : vector<2x8x8xf32>
    %49 = math.exp %48 : vector<2x8x8xf32>
    %cst_28 = arith.constant dense<0.000000e+00> : vector<2x8xf32>
    %50 = vector.multi_reduction <add>, %49, %cst_28 [2] : vector<2x8x8xf32> to vector<2x8xf32>
    %51 = vector.shape_cast %50 : vector<2x8xf32> to vector<2x8x1xf32>
    %52 = tpu.reciprocal %51 {approx = true} : vector<2x8x1xf32> -> vector<2x8x1xf32>
    %53 = vector.broadcast %52 : vector<2x8x1xf32> to vector<2x8x8xf32>
    %54 = arith.mulf %49, %53 : vector<2x8x8xf32>
    %55 = arith.truncf %54 : vector<2x8x8xf32> to vector<2x8x8xbf16>
    %56 = vector.extract_strided_slice %40 {offsets = [0, 0, 0], sizes = [2, 8, 8], strides = [1, 1, 1]} : vector<2x8x32xbf16> to vector<2x8x8xbf16>
    "tpu.trace_start"() <{level = 10 : i32, message = "bts,bsd->btd"}> : () -> ()
    %cst_29 = arith.constant dense<0.000000e+00> : vector<2x8x8xf32>
    %57 = tpu.matmul %55, %56, %cst_29 {dimension_numbers = #tpu.dot_dimension_numbers<[2], [1], [1], [2], [0, 0, 0, 1, 1, 2], [0], [0]>} : vector<2x8x8xbf16>, vector<2x8x8xbf16>, vector<2x8x8xf32> -> vector<2x8x8xf32>
    "tpu.trace_stop"() : () -> ()
    %58 = vector.shape_cast %57 : vector<2x8x8xf32> to vector<16x8xf32>
    %59 = arith.truncf %58 : vector<16x8xf32> to vector<16x8xbf16>
    %60 = vector.extract_strided_slice %16 {offsets = [0, 0], sizes = [8, 32], strides = [1, 1]} : vector<32x32xbf16> to vector<8x32xbf16>
    %cst_30 = arith.constant dense<0.000000e+00> : vector<16x32xf32>
    %61 = tpu.matmul %59, %60, %cst_30 {dimension_numbers = #tpu.dot_dimension_numbers<[1], [0], [0], [1], [0, 0, 1, 1], [], []>} : vector<16x8xbf16>, vector<8x32xbf16>, vector<16x32xf32> -> vector<16x32xf32>
    %62 = arith.addf %41, %61 : vector<16x32xf32>
    %63 = vector.extract_strided_slice %36 {offsets = [0, 0, 8], sizes = [2, 8, 8], strides = [1, 1, 1]} : vector<2x8x32xbf16> to vector<2x8x8xbf16>
    %64 = vector.extract_strided_slice %38 {offsets = [0, 0, 8], sizes = [2, 8, 8], strides = [1, 1, 1]} : vector<2x8x32xbf16> to vector<2x8x8xbf16>
    "tpu.trace_start"() <{level = 10 : i32, message = "btd,bsd->bts"}> : () -> ()
    %cst_31 = arith.constant dense<0.000000e+00> : vector<2x8x8xf32>
    %65 = tpu.matmul %63, %64, %cst_31 {dimension_numbers = #tpu.dot_dimension_numbers<[2], [2], [1], [1], [0, 0, 0, 1, 1, 1], [0], [0]>} : vector<2x8x8xbf16>, vector<2x8x8xbf16>, vector<2x8x8xf32> -> vector<2x8x8xf32>
    "tpu.trace_stop"() : () -> ()
    %cst_32 = arith.constant dense<0xFF800000> : vector<2x8xf32>
    %66 = vector.multi_reduction <maximumf>, %65, %cst_32 [2] : vector<2x8x8xf32> to vector<2x8xf32>
    %67 = vector.shape_cast %66 : vector<2x8xf32> to vector<2x8x1xf32>
    %68 = vector.broadcast %67 : vector<2x8x1xf32> to vector<2x8x8xf32>
    %69 = arith.subf %65, %68 : vector<2x8x8xf32>
    %70 = math.exp %69 : vector<2x8x8xf32>
    %cst_33 = arith.constant dense<0.000000e+00> : vector<2x8xf32>
    %71 = vector.multi_reduction <add>, %70, %cst_33 [2] : vector<2x8x8xf32> to vector<2x8xf32>
    %72 = vector.shape_cast %71 : vector<2x8xf32> to vector<2x8x1xf32>
    %73 = tpu.reciprocal %72 {approx = true} : vector<2x8x1xf32> -> vector<2x8x1xf32>
    %74 = vector.broadcast %73 : vector<2x8x1xf32> to vector<2x8x8xf32>
    %75 = arith.mulf %70, %74 : vector<2x8x8xf32>
    %76 = arith.truncf %75 : vector<2x8x8xf32> to vector<2x8x8xbf16>
    %77 = vector.extract_strided_slice %40 {offsets = [0, 0, 8], sizes = [2, 8, 8], strides = [1, 1, 1]} : vector<2x8x32xbf16> to vector<2x8x8xbf16>
    "tpu.trace_start"() <{level = 10 : i32, message = "bts,bsd->btd"}> : () -> ()
    %cst_34 = arith.constant dense<0.000000e+00> : vector<2x8x8xf32>
    %78 = tpu.matmul %76, %77, %cst_34 {dimension_numbers = #tpu.dot_dimension_numbers<[2], [1], [1], [2], [0, 0, 0, 1, 1, 2], [0], [0]>} : vector<2x8x8xbf16>, vector<2x8x8xbf16>, vector<2x8x8xf32> -> vector<2x8x8xf32>
    "tpu.trace_stop"() : () -> ()
    %79 = vector.shape_cast %78 : vector<2x8x8xf32> to vector<16x8xf32>
    %80 = arith.truncf %79 : vector<16x8xf32> to vector<16x8xbf16>
    %81 = vector.extract_strided_slice %16 {offsets = [8, 0], sizes = [8, 32], strides = [1, 1]} : vector<32x32xbf16> to vector<8x32xbf16>
    %cst_35 = arith.constant dense<0.000000e+00> : vector<16x32xf32>
    %82 = tpu.matmul %80, %81, %cst_35 {dimension_numbers = #tpu.dot_dimension_numbers<[1], [0], [0], [1], [0, 0, 1, 1], [], []>} : vector<16x8xbf16>, vector<8x32xbf16>, vector<16x32xf32> -> vector<16x32xf32>
    %83 = arith.addf %62, %82 : vector<16x32xf32>
    %84 = vector.extract_strided_slice %36 {offsets = [0, 0, 16], sizes = [2, 8, 8], strides = [1, 1, 1]} : vector<2x8x32xbf16> to vector<2x8x8xbf16>
    %85 = vector.extract_strided_slice %38 {offsets = [0, 0, 16], sizes = [2, 8, 8], strides = [1, 1, 1]} : vector<2x8x32xbf16> to vector<2x8x8xbf16>
    "tpu.trace_start"() <{level = 10 : i32, message = "btd,bsd->bts"}> : () -> ()
    %cst_36 = arith.constant dense<0.000000e+00> : vector<2x8x8xf32>
    %86 = tpu.matmul %84, %85, %cst_36 {dimension_numbers = #tpu.dot_dimension_numbers<[2], [2], [1], [1], [0, 0, 0, 1, 1, 1], [0], [0]>} : vector<2x8x8xbf16>, vector<2x8x8xbf16>, vector<2x8x8xf32> -> vector<2x8x8xf32>
    "tpu.trace_stop"() : () -> ()
    %cst_37 = arith.constant dense<0xFF800000> : vector<2x8xf32>
    %87 = vector.multi_reduction <maximumf>, %86, %cst_37 [2] : vector<2x8x8xf32> to vector<2x8xf32>
    %88 = vector.shape_cast %87 : vector<2x8xf32> to vector<2x8x1xf32>
    %89 = vector.broadcast %88 : vector<2x8x1xf32> to vector<2x8x8xf32>
    %90 = arith.subf %86, %89 : vector<2x8x8xf32>
    %91 = math.exp %90 : vector<2x8x8xf32>
    %cst_38 = arith.constant dense<0.000000e+00> : vector<2x8xf32>
    %92 = vector.multi_reduction <add>, %91, %cst_38 [2] : vector<2x8x8xf32> to vector<2x8xf32>
    %93 = vector.shape_cast %92 : vector<2x8xf32> to vector<2x8x1xf32>
    %94 = tpu.reciprocal %93 {approx = true} : vector<2x8x1xf32> -> vector<2x8x1xf32>
    %95 = vector.broadcast %94 : vector<2x8x1xf32> to vector<2x8x8xf32>
    %96 = arith.mulf %91, %95 : vector<2x8x8xf32>
    %97 = arith.truncf %96 : vector<2x8x8xf32> to vector<2x8x8xbf16>
    %98 = vector.extract_strided_slice %40 {offsets = [0, 0, 16], sizes = [2, 8, 8], strides = [1, 1, 1]} : vector<2x8x32xbf16> to vector<2x8x8xbf16>
    "tpu.trace_start"() <{level = 10 : i32, message = "bts,bsd->btd"}> : () -> ()
    %cst_39 = arith.constant dense<0.000000e+00> : vector<2x8x8xf32>
    %99 = tpu.matmul %97, %98, %cst_39 {dimension_numbers = #tpu.dot_dimension_numbers<[2], [1], [1], [2], [0, 0, 0, 1, 1, 2], [0], [0]>} : vector<2x8x8xbf16>, vector<2x8x8xbf16>, vector<2x8x8xf32> -> vector<2x8x8xf32>
    "tpu.trace_stop"() : () -> ()
    %100 = vector.shape_cast %99 : vector<2x8x8xf32> to vector<16x8xf32>
    %101 = arith.truncf %100 : vector<16x8xf32> to vector<16x8xbf16>
    %102 = vector.extract_strided_slice %16 {offsets = [16, 0], sizes = [8, 32], strides = [1, 1]} : vector<32x32xbf16> to vector<8x32xbf16>
    %cst_40 = arith.constant dense<0.000000e+00> : vector<16x32xf32>
    %103 = tpu.matmul %101, %102, %cst_40 {dimension_numbers = #tpu.dot_dimension_numbers<[1], [0], [0], [1], [0, 0, 1, 1], [], []>} : vector<16x8xbf16>, vector<8x32xbf16>, vector<16x32xf32> -> vector<16x32xf32>
    %104 = arith.addf %83, %103 : vector<16x32xf32>
    %105 = vector.extract_strided_slice %36 {offsets = [0, 0, 24], sizes = [2, 8, 8], strides = [1, 1, 1]} : vector<2x8x32xbf16> to vector<2x8x8xbf16>
    %106 = vector.extract_strided_slice %38 {offsets = [0, 0, 24], sizes = [2, 8, 8], strides = [1, 1, 1]} : vector<2x8x32xbf16> to vector<2x8x8xbf16>
    "tpu.trace_start"() <{level = 10 : i32, message = "btd,bsd->bts"}> : () -> ()
    %cst_41 = arith.constant dense<0.000000e+00> : vector<2x8x8xf32>
    %107 = tpu.matmul %105, %106, %cst_41 {dimension_numbers = #tpu.dot_dimension_numbers<[2], [2], [1], [1], [0, 0, 0, 1, 1, 1], [0], [0]>} : vector<2x8x8xbf16>, vector<2x8x8xbf16>, vector<2x8x8xf32> -> vector<2x8x8xf32>
    "tpu.trace_stop"() : () -> ()
    %cst_42 = arith.constant dense<0xFF800000> : vector<2x8xf32>
    %108 = vector.multi_reduction <maximumf>, %107, %cst_42 [2] : vector<2x8x8xf32> to vector<2x8xf32>
    %109 = vector.shape_cast %108 : vector<2x8xf32> to vector<2x8x1xf32>
    %110 = vector.broadcast %109 : vector<2x8x1xf32> to vector<2x8x8xf32>
    %111 = arith.subf %107, %110 : vector<2x8x8xf32>
    %112 = math.exp %111 : vector<2x8x8xf32>
    %cst_43 = arith.constant dense<0.000000e+00> : vector<2x8xf32>
    %113 = vector.multi_reduction <add>, %112, %cst_43 [2] : vector<2x8x8xf32> to vector<2x8xf32>
    %114 = vector.shape_cast %113 : vector<2x8xf32> to vector<2x8x1xf32>
    %115 = tpu.reciprocal %114 {approx = true} : vector<2x8x1xf32> -> vector<2x8x1xf32>
    %116 = vector.broadcast %115 : vector<2x8x1xf32> to vector<2x8x8xf32>
    %117 = arith.mulf %112, %116 : vector<2x8x8xf32>
    %118 = arith.truncf %117 : vector<2x8x8xf32> to vector<2x8x8xbf16>
    %119 = vector.extract_strided_slice %40 {offsets = [0, 0, 24], sizes = [2, 8, 8], strides = [1, 1, 1]} : vector<2x8x32xbf16> to vector<2x8x8xbf16>
    "tpu.trace_start"() <{level = 10 : i32, message = "bts,bsd->btd"}> : () -> ()
    %cst_44 = arith.constant dense<0.000000e+00> : vector<2x8x8xf32>
    %120 = tpu.matmul %118, %119, %cst_44 {dimension_numbers = #tpu.dot_dimension_numbers<[2], [1], [1], [2], [0, 0, 0, 1, 1, 2], [0], [0]>} : vector<2x8x8xbf16>, vector<2x8x8xbf16>, vector<2x8x8xf32> -> vector<2x8x8xf32>
    "tpu.trace_stop"() : () -> ()
    %121 = vector.shape_cast %120 : vector<2x8x8xf32> to vector<16x8xf32>
    %122 = arith.truncf %121 : vector<16x8xf32> to vector<16x8xbf16>
    %123 = vector.extract_strided_slice %16 {offsets = [24, 0], sizes = [8, 32], strides = [1, 1]} : vector<32x32xbf16> to vector<8x32xbf16>
    %cst_45 = arith.constant dense<0.000000e+00> : vector<16x32xf32>
    %124 = tpu.matmul %122, %123, %cst_45 {dimension_numbers = #tpu.dot_dimension_numbers<[1], [0], [0], [1], [0, 0, 1, 1], [], []>} : vector<16x8xbf16>, vector<8x32xbf16>, vector<16x32xf32> -> vector<16x32xf32>
    %125 = arith.addf %104, %124 : vector<16x32xf32>
    %126 = vector.broadcast %22 : vector<1x32xf32> to vector<16x32xf32>
    %127 = arith.addf %125, %126 : vector<16x32xf32>
    %128 = arith.addf %0, %127 : vector<16x32xf32>
    %129 = vector.extract_strided_slice %5 {offsets = [0, 0], sizes = [1, 32], strides = [1, 1]} : vector<3x32xf32> to vector<1x32xf32>
    %130 = vector.extract_strided_slice %7 {offsets = [0, 0], sizes = [1, 32], strides = [1, 1]} : vector<3x32xf32> to vector<1x32xf32>
    %cst_46 = arith.constant dense<0.000000e+00> : vector<16xf32>
    %131 = vector.multi_reduction <add>, %128, %cst_46 [1] : vector<16x32xf32> to vector<16xf32>
    %132 = vector.shape_cast %131 : vector<16xf32> to vector<16x1xf32>
    %cst_47 = arith.constant 3.200000e+01 : f32
    %133 = vector.broadcast %cst_47 : f32 to vector<16x1xf32>
    %134 = arith.divf %132, %133 : vector<16x1xf32>
    %135 = vector.broadcast %134 : vector<16x1xf32> to vector<16x32xf32>
    %136 = arith.subf %128, %135 : vector<16x32xf32>
    %137 = arith.mulf %136, %136 : vector<16x32xf32>
    %cst_48 = arith.constant dense<0.000000e+00> : vector<16xf32>
    %138 = vector.multi_reduction <add>, %137, %cst_48 [1] : vector<16x32xf32> to vector<16xf32>
    %139 = vector.shape_cast %138 : vector<16xf32> to vector<16x1xf32>
    %cst_49 = arith.constant 3.200000e+01 : f32
    %140 = vector.broadcast %cst_49 : f32 to vector<16x1xf32>
    %141 = arith.divf %139, %140 : vector<16x1xf32>
    %142 = vector.broadcast %134 : vector<16x1xf32> to vector<16x32xf32>
    %143 = arith.subf %128, %142 : vector<16x32xf32>
    %cst_50 = arith.constant 9.99999974E-6 : f32
    %144 = vector.broadcast %cst_50 : f32 to vector<16x1xf32>
    %145 = arith.addf %141, %144 : vector<16x1xf32>
    %146 = math.rsqrt %145 : vector<16x1xf32>
    %147 = vector.broadcast %146 : vector<16x1xf32> to vector<16x32xf32>
    %148 = arith.mulf %143, %147 : vector<16x32xf32>
    %149 = vector.broadcast %129 : vector<1x32xf32> to vector<16x32xf32>
    %150 = arith.mulf %148, %149 : vector<16x32xf32>
    %151 = vector.broadcast %130 : vector<1x32xf32> to vector<16x32xf32>
    %152 = arith.addf %150, %151 : vector<16x32xf32>
    %153 = arith.addf %152, %1 : vector<16x32xf32>
    %c4 = arith.constant 4 : index
    %c0_51 = arith.constant 0 : index
    %c0_52 = arith.constant 0 : index
    %154 = vector.load %arg3[%c4, %c0_51, %c0_52] : memref<16x32x32xbf16, #tpu.memory_space<vmem>>, vector<1x32x32xbf16>
    %155 = vector.shape_cast %154 : vector<1x32x32xbf16> to vector<32x32xbf16>
    %c5 = arith.constant 5 : index
    %c0_53 = arith.constant 0 : index
    %c0_54 = arith.constant 0 : index
    %156 = vector.load %arg3[%c5, %c0_53, %c0_54] : memref<16x32x32xbf16, #tpu.memory_space<vmem>>, vector<1x32x32xbf16>
    %157 = vector.shape_cast %156 : vector<1x32x32xbf16> to vector<32x32xbf16>
    %c6 = arith.constant 6 : index
    %c0_55 = arith.constant 0 : index
    %c0_56 = arith.constant 0 : index
    %158 = vector.load %arg3[%c6, %c0_55, %c0_56] : memref<16x32x32xbf16, #tpu.memory_space<vmem>>, vector<1x32x32xbf16>
    %159 = vector.shape_cast %158 : vector<1x32x32xbf16> to vector<32x32xbf16>
    %c7 = arith.constant 7 : index
    %c0_57 = arith.constant 0 : index
    %c0_58 = arith.constant 0 : index
    %160 = vector.load %arg3[%c7, %c0_57, %c0_58] : memref<16x32x32xbf16, #tpu.memory_space<vmem>>, vector<1x32x32xbf16>
    %161 = vector.shape_cast %160 : vector<1x32x32xbf16> to vector<32x32xbf16>
    %c0_59 = arith.constant 0 : index
    %c0_60 = arith.constant 0 : index
    %c0_61 = arith.constant 0 : index
    %162 = vector.load %arg4[%c0_59, %c0_60, %c0_61] : memref<2x8x32xf32, #tpu.memory_space<vmem>>, vector<1x8x32xf32>
    %163 = vector.shape_cast %162 : vector<1x8x32xf32> to vector<8x32xf32>
    %164 = vector.extract_strided_slice %163 {offsets = [4, 0], sizes = [1, 32], strides = [1, 1]} : vector<8x32xf32> to vector<1x32xf32>
    %165 = vector.extract_strided_slice %163 {offsets = [5, 0], sizes = [1, 32], strides = [1, 1]} : vector<8x32xf32> to vector<1x32xf32>
    %166 = vector.extract_strided_slice %163 {offsets = [6, 0], sizes = [1, 32], strides = [1, 1]} : vector<8x32xf32> to vector<1x32xf32>
    %167 = vector.extract_strided_slice %163 {offsets = [7, 0], sizes = [1, 32], strides = [1, 1]} : vector<8x32xf32> to vector<1x32xf32>
    %168 = arith.truncf %153 : vector<16x32xf32> to vector<16x32xbf16>
    %cst_62 = arith.constant dense<0.000000e+00> : vector<16x32xf32>
    %169 = tpu.matmul %168, %155, %cst_62 {dimension_numbers = #tpu.dot_dimension_numbers<[1], [0], [0], [1], [0, 0, 1, 1], [], []>} : vector<16x32xbf16>, vector<32x32xbf16>, vector<16x32xf32> -> vector<16x32xf32>
    %170 = vector.broadcast %164 : vector<1x32xf32> to vector<16x32xf32>
    %171 = arith.addf %169, %170 : vector<16x32xf32>
    %cst_63 = arith.constant dense<0.000000e+00> : vector<32x32xf32>
    %172 = tpu.matmul %3, %157, %cst_63 {dimension_numbers = #tpu.dot_dimension_numbers<[1], [0], [0], [1], [0, 0, 1, 1], [], []>} : vector<32x32xbf16>, vector<32x32xbf16>, vector<32x32xf32> -> vector<32x32xf32>
    %173 = vector.broadcast %165 : vector<1x32xf32> to vector<32x32xf32>
    %174 = arith.addf %172, %173 : vector<32x32xf32>
    %cst_64 = arith.constant dense<0.000000e+00> : vector<32x32xf32>
    %175 = tpu.matmul %3, %159, %cst_64 {dimension_numbers = #tpu.dot_dimension_numbers<[1], [0], [0], [1], [0, 0, 1, 1], [], []>} : vector<32x32xbf16>, vector<32x32xbf16>, vector<32x32xf32> -> vector<32x32xf32>
    %176 = vector.broadcast %166 : vector<1x32xf32> to vector<32x32xf32>
    %177 = arith.addf %175, %176 : vector<32x32xf32>
    %178 = vector.shape_cast %171 : vector<16x32xf32> to vector<2x8x32xf32>
    %179 = arith.truncf %178 : vector<2x8x32xf32> to vector<2x8x32xbf16>
    %180 = vector.shape_cast %174 : vector<32x32xf32> to vector<2x16x32xf32>
    %181 = arith.truncf %180 : vector<2x16x32xf32> to vector<2x16x32xbf16>
    %182 = vector.shape_cast %177 : vector<32x32xf32> to vector<2x16x32xf32>
    %183 = arith.truncf %182 : vector<2x16x32xf32> to vector<2x16x32xbf16>
    %cst_65 = arith.constant 0.000000e+00 : f32
    %184 = vector.broadcast %cst_65 : f32 to vector<16x32xf32>
    %185 = vector.extract_strided_slice %179 {offsets = [0, 0, 0], sizes = [2, 8, 8], strides = [1, 1, 1]} : vector<2x8x32xbf16> to vector<2x8x8xbf16>
    %186 = vector.extract_strided_slice %181 {offsets = [0, 0, 0], sizes = [2, 16, 8], strides = [1, 1, 1]} : vector<2x16x32xbf16> to vector<2x16x8xbf16>
    "tpu.trace_start"() <{level = 10 : i32, message = "btd,bsd->bts"}> : () -> ()
    %cst_66 = arith.constant dense<0.000000e+00> : vector<2x8x16xf32>
    %187 = tpu.matmul %185, %186, %cst_66 {dimension_numbers = #tpu.dot_dimension_numbers<[2], [2], [1], [1], [0, 0, 0, 1, 1, 1], [0], [0]>} : vector<2x8x8xbf16>, vector<2x16x8xbf16>, vector<2x8x16xf32> -> vector<2x8x16xf32>
    "tpu.trace_stop"() : () -> ()
    %cst_67 = arith.constant dense<0xFF800000> : vector<2x8xf32>
    %188 = vector.multi_reduction <maximumf>, %187, %cst_67 [2] : vector<2x8x16xf32> to vector<2x8xf32>
    %189 = vector.shape_cast %188 : vector<2x8xf32> to vector<2x8x1xf32>
    %190 = vector.broadcast %189 : vector<2x8x1xf32> to vector<2x8x16xf32>
    %191 = arith.subf %187, %190 : vector<2x8x16xf32>
    %192 = math.exp %191 : vector<2x8x16xf32>
    %cst_68 = arith.constant dense<0.000000e+00> : vector<2x8xf32>
    %193 = vector.multi_reduction <add>, %192, %cst_68 [2] : vector<2x8x16xf32> to vector<2x8xf32>
    %194 = vector.shape_cast %193 : vector<2x8xf32> to vector<2x8x1xf32>
    %195 = tpu.reciprocal %194 {approx = true} : vector<2x8x1xf32> -> vector<2x8x1xf32>
    %196 = vector.broadcast %195 : vector<2x8x1xf32> to vector<2x8x16xf32>
    %197 = arith.mulf %192, %196 : vector<2x8x16xf32>
    %198 = arith.truncf %197 : vector<2x8x16xf32> to vector<2x8x16xbf16>
    %199 = vector.extract_strided_slice %183 {offsets = [0, 0, 0], sizes = [2, 16, 8], strides = [1, 1, 1]} : vector<2x16x32xbf16> to vector<2x16x8xbf16>
    "tpu.trace_start"() <{level = 10 : i32, message = "bts,bsd->btd"}> : () -> ()
    %cst_69 = arith.constant dense<0.000000e+00> : vector<2x8x8xf32>
    %200 = tpu.matmul %198, %199, %cst_69 {dimension_numbers = #tpu.dot_dimension_numbers<[2], [1], [1], [2], [0, 0, 0, 1, 1, 2], [0], [0]>} : vector<2x8x16xbf16>, vector<2x16x8xbf16>, vector<2x8x8xf32> -> vector<2x8x8xf32>
    "tpu.trace_stop"() : () -> ()
    %201 = vector.shape_cast %200 : vector<2x8x8xf32> to vector<16x8xf32>
    %202 = arith.truncf %201 : vector<16x8xf32> to vector<16x8xbf16>
    %203 = vector.extract_strided_slice %161 {offsets = [0, 0], sizes = [8, 32], strides = [1, 1]} : vector<32x32xbf16> to vector<8x32xbf16>
    %cst_70 = arith.constant dense<0.000000e+00> : vector<16x32xf32>
    %204 = tpu.matmul %202, %203, %cst_70 {dimension_numbers = #tpu.dot_dimension_numbers<[1], [0], [0], [1], [0, 0, 1, 1], [], []>} : vector<16x8xbf16>, vector<8x32xbf16>, vector<16x32xf32> -> vector<16x32xf32>
    %205 = arith.addf %184, %204 : vector<16x32xf32>
    %206 = vector.extract_strided_slice %179 {offsets = [0, 0, 8], sizes = [2, 8, 8], strides = [1, 1, 1]} : vector<2x8x32xbf16> to vector<2x8x8xbf16>
    %207 = vector.extract_strided_slice %181 {offsets = [0, 0, 8], sizes = [2, 16, 8], strides = [1, 1, 1]} : vector<2x16x32xbf16> to vector<2x16x8xbf16>
    "tpu.trace_start"() <{level = 10 : i32, message = "btd,bsd->bts"}> : () -> ()
    %cst_71 = arith.constant dense<0.000000e+00> : vector<2x8x16xf32>
    %208 = tpu.matmul %206, %207, %cst_71 {dimension_numbers = #tpu.dot_dimension_numbers<[2], [2], [1], [1], [0, 0, 0, 1, 1, 1], [0], [0]>} : vector<2x8x8xbf16>, vector<2x16x8xbf16>, vector<2x8x16xf32> -> vector<2x8x16xf32>
    "tpu.trace_stop"() : () -> ()
    %cst_72 = arith.constant dense<0xFF800000> : vector<2x8xf32>
    %209 = vector.multi_reduction <maximumf>, %208, %cst_72 [2] : vector<2x8x16xf32> to vector<2x8xf32>
    %210 = vector.shape_cast %209 : vector<2x8xf32> to vector<2x8x1xf32>
    %211 = vector.broadcast %210 : vector<2x8x1xf32> to vector<2x8x16xf32>
    %212 = arith.subf %208, %211 : vector<2x8x16xf32>
    %213 = math.exp %212 : vector<2x8x16xf32>
    %cst_73 = arith.constant dense<0.000000e+00> : vector<2x8xf32>
    %214 = vector.multi_reduction <add>, %213, %cst_73 [2] : vector<2x8x16xf32> to vector<2x8xf32>
    %215 = vector.shape_cast %214 : vector<2x8xf32> to vector<2x8x1xf32>
    %216 = tpu.reciprocal %215 {approx = true} : vector<2x8x1xf32> -> vector<2x8x1xf32>
    %217 = vector.broadcast %216 : vector<2x8x1xf32> to vector<2x8x16xf32>
    %218 = arith.mulf %213, %217 : vector<2x8x16xf32>
    %219 = arith.truncf %218 : vector<2x8x16xf32> to vector<2x8x16xbf16>
    %220 = vector.extract_strided_slice %183 {offsets = [0, 0, 8], sizes = [2, 16, 8], strides = [1, 1, 1]} : vector<2x16x32xbf16> to vector<2x16x8xbf16>
    "tpu.trace_start"() <{level = 10 : i32, message = "bts,bsd->btd"}> : () -> ()
    %cst_74 = arith.constant dense<0.000000e+00> : vector<2x8x8xf32>
    %221 = tpu.matmul %219, %220, %cst_74 {dimension_numbers = #tpu.dot_dimension_numbers<[2], [1], [1], [2], [0, 0, 0, 1, 1, 2], [0], [0]>} : vector<2x8x16xbf16>, vector<2x16x8xbf16>, vector<2x8x8xf32> -> vector<2x8x8xf32>
    "tpu.trace_stop"() : () -> ()
    %222 = vector.shape_cast %221 : vector<2x8x8xf32> to vector<16x8xf32>
    %223 = arith.truncf %222 : vector<16x8xf32> to vector<16x8xbf16>
    %224 = vector.extract_strided_slice %161 {offsets = [8, 0], sizes = [8, 32], strides = [1, 1]} : vector<32x32xbf16> to vector<8x32xbf16>
    %cst_75 = arith.constant dense<0.000000e+00> : vector<16x32xf32>
    %225 = tpu.matmul %223, %224, %cst_75 {dimension_numbers = #tpu.dot_dimension_numbers<[1], [0], [0], [1], [0, 0, 1, 1], [], []>} : vector<16x8xbf16>, vector<8x32xbf16>, vector<16x32xf32> -> vector<16x32xf32>
    %226 = arith.addf %205, %225 : vector<16x32xf32>
    %227 = vector.extract_strided_slice %179 {offsets = [0, 0, 16], sizes = [2, 8, 8], strides = [1, 1, 1]} : vector<2x8x32xbf16> to vector<2x8x8xbf16>
    %228 = vector.extract_strided_slice %181 {offsets = [0, 0, 16], sizes = [2, 16, 8], strides = [1, 1, 1]} : vector<2x16x32xbf16> to vector<2x16x8xbf16>
    "tpu.trace_start"() <{level = 10 : i32, message = "btd,bsd->bts"}> : () -> ()
    %cst_76 = arith.constant dense<0.000000e+00> : vector<2x8x16xf32>
    %229 = tpu.matmul %227, %228, %cst_76 {dimension_numbers = #tpu.dot_dimension_numbers<[2], [2], [1], [1], [0, 0, 0, 1, 1, 1], [0], [0]>} : vector<2x8x8xbf16>, vector<2x16x8xbf16>, vector<2x8x16xf32> -> vector<2x8x16xf32>
    "tpu.trace_stop"() : () -> ()
    %cst_77 = arith.constant dense<0xFF800000> : vector<2x8xf32>
    %230 = vector.multi_reduction <maximumf>, %229, %cst_77 [2] : vector<2x8x16xf32> to vector<2x8xf32>
    %231 = vector.shape_cast %230 : vector<2x8xf32> to vector<2x8x1xf32>
    %232 = vector.broadcast %231 : vector<2x8x1xf32> to vector<2x8x16xf32>
    %233 = arith.subf %229, %232 : vector<2x8x16xf32>
    %234 = math.exp %233 : vector<2x8x16xf32>
    %cst_78 = arith.constant dense<0.000000e+00> : vector<2x8xf32>
    %235 = vector.multi_reduction <add>, %234, %cst_78 [2] : vector<2x8x16xf32> to vector<2x8xf32>
    %236 = vector.shape_cast %235 : vector<2x8xf32> to vector<2x8x1xf32>
    %237 = tpu.reciprocal %236 {approx = true} : vector<2x8x1xf32> -> vector<2x8x1xf32>
    %238 = vector.broadcast %237 : vector<2x8x1xf32> to vector<2x8x16xf32>
    %239 = arith.mulf %234, %238 : vector<2x8x16xf32>
    %240 = arith.truncf %239 : vector<2x8x16xf32> to vector<2x8x16xbf16>
    %241 = vector.extract_strided_slice %183 {offsets = [0, 0, 16], sizes = [2, 16, 8], strides = [1, 1, 1]} : vector<2x16x32xbf16> to vector<2x16x8xbf16>
    "tpu.trace_start"() <{level = 10 : i32, message = "bts,bsd->btd"}> : () -> ()
    %cst_79 = arith.constant dense<0.000000e+00> : vector<2x8x8xf32>
    %242 = tpu.matmul %240, %241, %cst_79 {dimension_numbers = #tpu.dot_dimension_numbers<[2], [1], [1], [2], [0, 0, 0, 1, 1, 2], [0], [0]>} : vector<2x8x16xbf16>, vector<2x16x8xbf16>, vector<2x8x8xf32> -> vector<2x8x8xf32>
    "tpu.trace_stop"() : () -> ()
    %243 = vector.shape_cast %242 : vector<2x8x8xf32> to vector<16x8xf32>
    %244 = arith.truncf %243 : vector<16x8xf32> to vector<16x8xbf16>
    %245 = vector.extract_strided_slice %161 {offsets = [16, 0], sizes = [8, 32], strides = [1, 1]} : vector<32x32xbf16> to vector<8x32xbf16>
    %cst_80 = arith.constant dense<0.000000e+00> : vector<16x32xf32>
    %246 = tpu.matmul %244, %245, %cst_80 {dimension_numbers = #tpu.dot_dimension_numbers<[1], [0], [0], [1], [0, 0, 1, 1], [], []>} : vector<16x8xbf16>, vector<8x32xbf16>, vector<16x32xf32> -> vector<16x32xf32>
    %247 = arith.addf %226, %246 : vector<16x32xf32>
    %248 = vector.extract_strided_slice %179 {offsets = [0, 0, 24], sizes = [2, 8, 8], strides = [1, 1, 1]} : vector<2x8x32xbf16> to vector<2x8x8xbf16>
    %249 = vector.extract_strided_slice %181 {offsets = [0, 0, 24], sizes = [2, 16, 8], strides = [1, 1, 1]} : vector<2x16x32xbf16> to vector<2x16x8xbf16>
    "tpu.trace_start"() <{level = 10 : i32, message = "btd,bsd->bts"}> : () -> ()
    %cst_81 = arith.constant dense<0.000000e+00> : vector<2x8x16xf32>
    %250 = tpu.matmul %248, %249, %cst_81 {dimension_numbers = #tpu.dot_dimension_numbers<[2], [2], [1], [1], [0, 0, 0, 1, 1, 1], [0], [0]>} : vector<2x8x8xbf16>, vector<2x16x8xbf16>, vector<2x8x16xf32> -> vector<2x8x16xf32>
    "tpu.trace_stop"() : () -> ()
    %cst_82 = arith.constant dense<0xFF800000> : vector<2x8xf32>
    %251 = vector.multi_reduction <maximumf>, %250, %cst_82 [2] : vector<2x8x16xf32> to vector<2x8xf32>
    %252 = vector.shape_cast %251 : vector<2x8xf32> to vector<2x8x1xf32>
    %253 = vector.broadcast %252 : vector<2x8x1xf32> to vector<2x8x16xf32>
    %254 = arith.subf %250, %253 : vector<2x8x16xf32>
    %255 = math.exp %254 : vector<2x8x16xf32>
    %cst_83 = arith.constant dense<0.000000e+00> : vector<2x8xf32>
    %256 = vector.multi_reduction <add>, %255, %cst_83 [2] : vector<2x8x16xf32> to vector<2x8xf32>
    %257 = vector.shape_cast %256 : vector<2x8xf32> to vector<2x8x1xf32>
    %258 = tpu.reciprocal %257 {approx = true} : vector<2x8x1xf32> -> vector<2x8x1xf32>
    %259 = vector.broadcast %258 : vector<2x8x1xf32> to vector<2x8x16xf32>
    %260 = arith.mulf %255, %259 : vector<2x8x16xf32>
    %261 = arith.truncf %260 : vector<2x8x16xf32> to vector<2x8x16xbf16>
    %262 = vector.extract_strided_slice %183 {offsets = [0, 0, 24], sizes = [2, 16, 8], strides = [1, 1, 1]} : vector<2x16x32xbf16> to vector<2x16x8xbf16>
    "tpu.trace_start"() <{level = 10 : i32, message = "bts,bsd->btd"}> : () -> ()
    %cst_84 = arith.constant dense<0.000000e+00> : vector<2x8x8xf32>
    %263 = tpu.matmul %261, %262, %cst_84 {dimension_numbers = #tpu.dot_dimension_numbers<[2], [1], [1], [2], [0, 0, 0, 1, 1, 2], [0], [0]>} : vector<2x8x16xbf16>, vector<2x16x8xbf16>, vector<2x8x8xf32> -> vector<2x8x8xf32>
    "tpu.trace_stop"() : () -> ()
    %264 = vector.shape_cast %263 : vector<2x8x8xf32> to vector<16x8xf32>
    %265 = arith.truncf %264 : vector<16x8xf32> to vector<16x8xbf16>
    %266 = vector.extract_strided_slice %161 {offsets = [24, 0], sizes = [8, 32], strides = [1, 1]} : vector<32x32xbf16> to vector<8x32xbf16>
    %cst_85 = arith.constant dense<0.000000e+00> : vector<16x32xf32>
    %267 = tpu.matmul %265, %266, %cst_85 {dimension_numbers = #tpu.dot_dimension_numbers<[1], [0], [0], [1], [0, 0, 1, 1], [], []>} : vector<16x8xbf16>, vector<8x32xbf16>, vector<16x32xf32> -> vector<16x32xf32>
    %268 = arith.addf %247, %267 : vector<16x32xf32>
    %269 = vector.broadcast %167 : vector<1x32xf32> to vector<16x32xf32>
    %270 = arith.addf %268, %269 : vector<16x32xf32>
    %271 = arith.addf %152, %270 : vector<16x32xf32>
    %272 = vector.extract_strided_slice %5 {offsets = [1, 0], sizes = [1, 32], strides = [1, 1]} : vector<3x32xf32> to vector<1x32xf32>
    %273 = vector.extract_strided_slice %7 {offsets = [1, 0], sizes = [1, 32], strides = [1, 1]} : vector<3x32xf32> to vector<1x32xf32>
    %cst_86 = arith.constant dense<0.000000e+00> : vector<16xf32>
    %274 = vector.multi_reduction <add>, %271, %cst_86 [1] : vector<16x32xf32> to vector<16xf32>
    %275 = vector.shape_cast %274 : vector<16xf32> to vector<16x1xf32>
    %cst_87 = arith.constant 3.200000e+01 : f32
    %276 = vector.broadcast %cst_87 : f32 to vector<16x1xf32>
    %277 = arith.divf %275, %276 : vector<16x1xf32>
    %278 = vector.broadcast %277 : vector<16x1xf32> to vector<16x32xf32>
    %279 = arith.subf %271, %278 : vector<16x32xf32>
    %280 = arith.mulf %279, %279 : vector<16x32xf32>
    %cst_88 = arith.constant dense<0.000000e+00> : vector<16xf32>
    %281 = vector.multi_reduction <add>, %280, %cst_88 [1] : vector<16x32xf32> to vector<16xf32>
    %282 = vector.shape_cast %281 : vector<16xf32> to vector<16x1xf32>
    %cst_89 = arith.constant 3.200000e+01 : f32
    %283 = vector.broadcast %cst_89 : f32 to vector<16x1xf32>
    %284 = arith.divf %282, %283 : vector<16x1xf32>
    %285 = vector.broadcast %277 : vector<16x1xf32> to vector<16x32xf32>
    %286 = arith.subf %271, %285 : vector<16x32xf32>
    %cst_90 = arith.constant 9.99999974E-6 : f32
    %287 = vector.broadcast %cst_90 : f32 to vector<16x1xf32>
    %288 = arith.addf %284, %287 : vector<16x1xf32>
    %289 = math.rsqrt %288 : vector<16x1xf32>
    %290 = vector.broadcast %289 : vector<16x1xf32> to vector<16x32xf32>
    %291 = arith.mulf %286, %290 : vector<16x32xf32>
    %292 = vector.broadcast %272 : vector<1x32xf32> to vector<16x32xf32>
    %293 = arith.mulf %291, %292 : vector<16x32xf32>
    %294 = vector.broadcast %273 : vector<1x32xf32> to vector<16x32xf32>
    %295 = arith.addf %293, %294 : vector<16x32xf32>
    %c0_91 = arith.constant 0 : index
    %c0_92 = arith.constant 0 : index
    %c0_93 = arith.constant 0 : index
    %296 = vector.load %arg5[%c0_91, %c0_92, %c0_93] : memref<2x32x64xbf16, #tpu.memory_space<vmem>>, vector<1x32x64xbf16>
    %297 = vector.shape_cast %296 : vector<1x32x64xbf16> to vector<32x64xbf16>
    %298 = arith.truncf %295 : vector<16x32xf32> to vector<16x32xbf16>
    %cst_94 = arith.constant dense<0.000000e+00> : vector<16x64xf32>
    %299 = tpu.matmul %298, %297, %cst_94 {dimension_numbers = #tpu.dot_dimension_numbers<[1], [0], [0], [1], [0, 0, 1, 1], [], []>} : vector<16x32xbf16>, vector<32x64xbf16>, vector<16x64xf32> -> vector<16x64xf32>
    %c0_95 = arith.constant 0 : index
    %c0_96 = arith.constant 0 : index
    %c0_97 = arith.constant 0 : index
    %300 = vector.load %arg6[%c0_95, %c0_96, %c0_97] : memref<2x1x64xf32, #tpu.memory_space<vmem>>, vector<1x1x64xf32>
    %301 = vector.shape_cast %300 : vector<1x1x64xf32> to vector<1x64xf32>
    %302 = vector.broadcast %301 : vector<1x64xf32> to vector<16x64xf32>
    %303 = arith.addf %299, %302 : vector<16x64xf32>
    %cst_98 = arith.constant 0.000000e+00 : f32
    %304 = vector.broadcast %cst_98 : f32 to vector<16x64xf32>
    %305 = arith.maximumf %303, %304 : vector<16x64xf32>
    %c0_99 = arith.constant 0 : index
    %c0_100 = arith.constant 0 : index
    %c0_101 = arith.constant 0 : index
    %306 = vector.load %arg7[%c0_99, %c0_100, %c0_101] : memref<2x64x32xbf16, #tpu.memory_space<vmem>>, vector<1x64x32xbf16>
    %307 = vector.shape_cast %306 : vector<1x64x32xbf16> to vector<64x32xbf16>
    %308 = arith.truncf %305 : vector<16x64xf32> to vector<16x64xbf16>
    %cst_102 = arith.constant dense<0.000000e+00> : vector<16x32xf32>
    %309 = tpu.matmul %308, %307, %cst_102 {dimension_numbers = #tpu.dot_dimension_numbers<[1], [0], [0], [1], [0, 0, 1, 1], [], []>} : vector<16x64xbf16>, vector<64x32xbf16>, vector<16x32xf32> -> vector<16x32xf32>
    %c0_103 = arith.constant 0 : index
    %c0_104 = arith.constant 0 : index
    %c0_105 = arith.constant 0 : index
    %310 = vector.load %arg8[%c0_103, %c0_104, %c0_105] : memref<2x1x32xf32, #tpu.memory_space<vmem>>, vector<1x1x32xf32>
    %311 = vector.shape_cast %310 : vector<1x1x32xf32> to vector<1x32xf32>
    %312 = vector.broadcast %311 : vector<1x32xf32> to vector<16x32xf32>
    %313 = arith.addf %309, %312 : vector<16x32xf32>
    %314 = arith.addf %295, %313 : vector<16x32xf32>
    %315 = vector.extract_strided_slice %5 {offsets = [2, 0], sizes = [1, 32], strides = [1, 1]} : vector<3x32xf32> to vector<1x32xf32>
    %316 = vector.extract_strided_slice %7 {offsets = [2, 0], sizes = [1, 32], strides = [1, 1]} : vector<3x32xf32> to vector<1x32xf32>
    %cst_106 = arith.constant dense<0.000000e+00> : vector<16xf32>
    %317 = vector.multi_reduction <add>, %314, %cst_106 [1] : vector<16x32xf32> to vector<16xf32>
    %318 = vector.shape_cast %317 : vector<16xf32> to vector<16x1xf32>
    %cst_107 = arith.constant 3.200000e+01 : f32
    %319 = vector.broadcast %cst_107 : f32 to vector<16x1xf32>
    %320 = arith.divf %318, %319 : vector<16x1xf32>
    %321 = vector.broadcast %320 : vector<16x1xf32> to vector<16x32xf32>
    %322 = arith.subf %314, %321 : vector<16x32xf32>
    %323 = arith.mulf %322, %322 : vector<16x32xf32>
    %cst_108 = arith.constant dense<0.000000e+00> : vector<16xf32>
    %324 = vector.multi_reduction <add>, %323, %cst_108 [1] : vector<16x32xf32> to vector<16xf32>
    %325 = vector.shape_cast %324 : vector<16xf32> to vector<16x1xf32>
    %cst_109 = arith.constant 3.200000e+01 : f32
    %326 = vector.broadcast %cst_109 : f32 to vector<16x1xf32>
    %327 = arith.divf %325, %326 : vector<16x1xf32>
    %328 = vector.broadcast %320 : vector<16x1xf32> to vector<16x32xf32>
    %329 = arith.subf %314, %328 : vector<16x32xf32>
    %cst_110 = arith.constant 9.99999974E-6 : f32
    %330 = vector.broadcast %cst_110 : f32 to vector<16x1xf32>
    %331 = arith.addf %327, %330 : vector<16x1xf32>
    %332 = math.rsqrt %331 : vector<16x1xf32>
    %333 = vector.broadcast %332 : vector<16x1xf32> to vector<16x32xf32>
    %334 = arith.mulf %329, %333 : vector<16x32xf32>
    %335 = vector.broadcast %315 : vector<1x32xf32> to vector<16x32xf32>
    %336 = arith.mulf %334, %335 : vector<16x32xf32>
    %337 = vector.broadcast %316 : vector<1x32xf32> to vector<16x32xf32>
    %338 = arith.addf %336, %337 : vector<16x32xf32>
    %c1_111 = arith.constant 1 : index
    %c0_112 = arith.constant 0 : index
    %c0_113 = arith.constant 0 : index
    %339 = vector.load %arg9[%c1_111, %c0_112, %c0_113] : memref<2x3x32xf32, #tpu.memory_space<vmem>>, vector<1x3x32xf32>
    %340 = vector.shape_cast %339 : vector<1x3x32xf32> to vector<3x32xf32>
    %c1_114 = arith.constant 1 : index
    %c0_115 = arith.constant 0 : index
    %c0_116 = arith.constant 0 : index
    %341 = vector.load %arg10[%c1_114, %c0_115, %c0_116] : memref<2x3x32xf32, #tpu.memory_space<vmem>>, vector<1x3x32xf32>
    %342 = vector.shape_cast %341 : vector<1x3x32xf32> to vector<3x32xf32>
    %343 = arith.addf %338, %1 : vector<16x32xf32>
    %c8 = arith.constant 8 : index
    %c0_117 = arith.constant 0 : index
    %c0_118 = arith.constant 0 : index
    %344 = vector.load %arg3[%c8, %c0_117, %c0_118] : memref<16x32x32xbf16, #tpu.memory_space<vmem>>, vector<1x32x32xbf16>
    %345 = vector.shape_cast %344 : vector<1x32x32xbf16> to vector<32x32xbf16>
    %c9 = arith.constant 9 : index
    %c0_119 = arith.constant 0 : index
    %c0_120 = arith.constant 0 : index
    %346 = vector.load %arg3[%c9, %c0_119, %c0_120] : memref<16x32x32xbf16, #tpu.memory_space<vmem>>, vector<1x32x32xbf16>
    %347 = vector.shape_cast %346 : vector<1x32x32xbf16> to vector<32x32xbf16>
    %c10 = arith.constant 10 : index
    %c0_121 = arith.constant 0 : index
    %c0_122 = arith.constant 0 : index
    %348 = vector.load %arg3[%c10, %c0_121, %c0_122] : memref<16x32x32xbf16, #tpu.memory_space<vmem>>, vector<1x32x32xbf16>
    %349 = vector.shape_cast %348 : vector<1x32x32xbf16> to vector<32x32xbf16>
    %c11 = arith.constant 11 : index
    %c0_123 = arith.constant 0 : index
    %c0_124 = arith.constant 0 : index
    %350 = vector.load %arg3[%c11, %c0_123, %c0_124] : memref<16x32x32xbf16, #tpu.memory_space<vmem>>, vector<1x32x32xbf16>
    %351 = vector.shape_cast %350 : vector<1x32x32xbf16> to vector<32x32xbf16>
    %c1_125 = arith.constant 1 : index
    %c0_126 = arith.constant 0 : index
    %c0_127 = arith.constant 0 : index
    %352 = vector.load %arg4[%c1_125, %c0_126, %c0_127] : memref<2x8x32xf32, #tpu.memory_space<vmem>>, vector<1x8x32xf32>
    %353 = vector.shape_cast %352 : vector<1x8x32xf32> to vector<8x32xf32>
    %354 = vector.extract_strided_slice %353 {offsets = [0, 0], sizes = [1, 32], strides = [1, 1]} : vector<8x32xf32> to vector<1x32xf32>
    %355 = vector.extract_strided_slice %353 {offsets = [1, 0], sizes = [1, 32], strides = [1, 1]} : vector<8x32xf32> to vector<1x32xf32>
    %356 = vector.extract_strided_slice %353 {offsets = [2, 0], sizes = [1, 32], strides = [1, 1]} : vector<8x32xf32> to vector<1x32xf32>
    %357 = vector.extract_strided_slice %353 {offsets = [3, 0], sizes = [1, 32], strides = [1, 1]} : vector<8x32xf32> to vector<1x32xf32>
    %358 = arith.truncf %343 : vector<16x32xf32> to vector<16x32xbf16>
    %cst_128 = arith.constant dense<0.000000e+00> : vector<16x32xf32>
    %359 = tpu.matmul %358, %345, %cst_128 {dimension_numbers = #tpu.dot_dimension_numbers<[1], [0], [0], [1], [0, 0, 1, 1], [], []>} : vector<16x32xbf16>, vector<32x32xbf16>, vector<16x32xf32> -> vector<16x32xf32>
    %360 = vector.broadcast %354 : vector<1x32xf32> to vector<16x32xf32>
    %361 = arith.addf %359, %360 : vector<16x32xf32>
    %362 = arith.truncf %343 : vector<16x32xf32> to vector<16x32xbf16>
    %cst_129 = arith.constant dense<0.000000e+00> : vector<16x32xf32>
    %363 = tpu.matmul %362, %347, %cst_129 {dimension_numbers = #tpu.dot_dimension_numbers<[1], [0], [0], [1], [0, 0, 1, 1], [], []>} : vector<16x32xbf16>, vector<32x32xbf16>, vector<16x32xf32> -> vector<16x32xf32>
    %364 = vector.broadcast %355 : vector<1x32xf32> to vector<16x32xf32>
    %365 = arith.addf %363, %364 : vector<16x32xf32>
    %366 = arith.truncf %338 : vector<16x32xf32> to vector<16x32xbf16>
    %cst_130 = arith.constant dense<0.000000e+00> : vector<16x32xf32>
    %367 = tpu.matmul %366, %349, %cst_130 {dimension_numbers = #tpu.dot_dimension_numbers<[1], [0], [0], [1], [0, 0, 1, 1], [], []>} : vector<16x32xbf16>, vector<32x32xbf16>, vector<16x32xf32> -> vector<16x32xf32>
    %368 = vector.broadcast %356 : vector<1x32xf32> to vector<16x32xf32>
    %369 = arith.addf %367, %368 : vector<16x32xf32>
    %370 = vector.shape_cast %361 : vector<16x32xf32> to vector<2x8x32xf32>
    %371 = arith.truncf %370 : vector<2x8x32xf32> to vector<2x8x32xbf16>
    %372 = vector.shape_cast %365 : vector<16x32xf32> to vector<2x8x32xf32>
    %373 = arith.truncf %372 : vector<2x8x32xf32> to vector<2x8x32xbf16>
    %374 = vector.shape_cast %369 : vector<16x32xf32> to vector<2x8x32xf32>
    %375 = arith.truncf %374 : vector<2x8x32xf32> to vector<2x8x32xbf16>
    %cst_131 = arith.constant 0.000000e+00 : f32
    %376 = vector.broadcast %cst_131 : f32 to vector<16x32xf32>
    %377 = vector.extract_strided_slice %371 {offsets = [0, 0, 0], sizes = [2, 8, 8], strides = [1, 1, 1]} : vector<2x8x32xbf16> to vector<2x8x8xbf16>
    %378 = vector.extract_strided_slice %373 {offsets = [0, 0, 0], sizes = [2, 8, 8], strides = [1, 1, 1]} : vector<2x8x32xbf16> to vector<2x8x8xbf16>
    "tpu.trace_start"() <{level = 10 : i32, message = "btd,bsd->bts"}> : () -> ()
    %cst_132 = arith.constant dense<0.000000e+00> : vector<2x8x8xf32>
    %379 = tpu.matmul %377, %378, %cst_132 {dimension_numbers = #tpu.dot_dimension_numbers<[2], [2], [1], [1], [0, 0, 0, 1, 1, 1], [0], [0]>} : vector<2x8x8xbf16>, vector<2x8x8xbf16>, vector<2x8x8xf32> -> vector<2x8x8xf32>
    "tpu.trace_stop"() : () -> ()
    %cst_133 = arith.constant dense<0xFF800000> : vector<2x8xf32>
    %380 = vector.multi_reduction <maximumf>, %379, %cst_133 [2] : vector<2x8x8xf32> to vector<2x8xf32>
    %381 = vector.shape_cast %380 : vector<2x8xf32> to vector<2x8x1xf32>
    %382 = vector.broadcast %381 : vector<2x8x1xf32> to vector<2x8x8xf32>
    %383 = arith.subf %379, %382 : vector<2x8x8xf32>
    %384 = math.exp %383 : vector<2x8x8xf32>
    %cst_134 = arith.constant dense<0.000000e+00> : vector<2x8xf32>
    %385 = vector.multi_reduction <add>, %384, %cst_134 [2] : vector<2x8x8xf32> to vector<2x8xf32>
    %386 = vector.shape_cast %385 : vector<2x8xf32> to vector<2x8x1xf32>
    %387 = tpu.reciprocal %386 {approx = true} : vector<2x8x1xf32> -> vector<2x8x1xf32>
    %388 = vector.broadcast %387 : vector<2x8x1xf32> to vector<2x8x8xf32>
    %389 = arith.mulf %384, %388 : vector<2x8x8xf32>
    %390 = arith.truncf %389 : vector<2x8x8xf32> to vector<2x8x8xbf16>
    %391 = vector.extract_strided_slice %375 {offsets = [0, 0, 0], sizes = [2, 8, 8], strides = [1, 1, 1]} : vector<2x8x32xbf16> to vector<2x8x8xbf16>
    "tpu.trace_start"() <{level = 10 : i32, message = "bts,bsd->btd"}> : () -> ()
    %cst_135 = arith.constant dense<0.000000e+00> : vector<2x8x8xf32>
    %392 = tpu.matmul %390, %391, %cst_135 {dimension_numbers = #tpu.dot_dimension_numbers<[2], [1], [1], [2], [0, 0, 0, 1, 1, 2], [0], [0]>} : vector<2x8x8xbf16>, vector<2x8x8xbf16>, vector<2x8x8xf32> -> vector<2x8x8xf32>
    "tpu.trace_stop"() : () -> ()
    %393 = vector.shape_cast %392 : vector<2x8x8xf32> to vector<16x8xf32>
    %394 = arith.truncf %393 : vector<16x8xf32> to vector<16x8xbf16>
    %395 = vector.extract_strided_slice %351 {offsets = [0, 0], sizes = [8, 32], strides = [1, 1]} : vector<32x32xbf16> to vector<8x32xbf16>
    %cst_136 = arith.constant dense<0.000000e+00> : vector<16x32xf32>
    %396 = tpu.matmul %394, %395, %cst_136 {dimension_numbers = #tpu.dot_dimension_numbers<[1], [0], [0], [1], [0, 0, 1, 1], [], []>} : vector<16x8xbf16>, vector<8x32xbf16>, vector<16x32xf32> -> vector<16x32xf32>
    %397 = arith.addf %376, %396 : vector<16x32xf32>
    %398 = vector.extract_strided_slice %371 {offsets = [0, 0, 8], sizes = [2, 8, 8], strides = [1, 1, 1]} : vector<2x8x32xbf16> to vector<2x8x8xbf16>
    %399 = vector.extract_strided_slice %373 {offsets = [0, 0, 8], sizes = [2, 8, 8], strides = [1, 1, 1]} : vector<2x8x32xbf16> to vector<2x8x8xbf16>
    "tpu.trace_start"() <{level = 10 : i32, message = "btd,bsd->bts"}> : () -> ()
    %cst_137 = arith.constant dense<0.000000e+00> : vector<2x8x8xf32>
    %400 = tpu.matmul %398, %399, %cst_137 {dimension_numbers = #tpu.dot_dimension_numbers<[2], [2], [1], [1], [0, 0, 0, 1, 1, 1], [0], [0]>} : vector<2x8x8xbf16>, vector<2x8x8xbf16>, vector<2x8x8xf32> -> vector<2x8x8xf32>
    "tpu.trace_stop"() : () -> ()
    %cst_138 = arith.constant dense<0xFF800000> : vector<2x8xf32>
    %401 = vector.multi_reduction <maximumf>, %400, %cst_138 [2] : vector<2x8x8xf32> to vector<2x8xf32>
    %402 = vector.shape_cast %401 : vector<2x8xf32> to vector<2x8x1xf32>
    %403 = vector.broadcast %402 : vector<2x8x1xf32> to vector<2x8x8xf32>
    %404 = arith.subf %400, %403 : vector<2x8x8xf32>
    %405 = math.exp %404 : vector<2x8x8xf32>
    %cst_139 = arith.constant dense<0.000000e+00> : vector<2x8xf32>
    %406 = vector.multi_reduction <add>, %405, %cst_139 [2] : vector<2x8x8xf32> to vector<2x8xf32>
    %407 = vector.shape_cast %406 : vector<2x8xf32> to vector<2x8x1xf32>
    %408 = tpu.reciprocal %407 {approx = true} : vector<2x8x1xf32> -> vector<2x8x1xf32>
    %409 = vector.broadcast %408 : vector<2x8x1xf32> to vector<2x8x8xf32>
    %410 = arith.mulf %405, %409 : vector<2x8x8xf32>
    %411 = arith.truncf %410 : vector<2x8x8xf32> to vector<2x8x8xbf16>
    %412 = vector.extract_strided_slice %375 {offsets = [0, 0, 8], sizes = [2, 8, 8], strides = [1, 1, 1]} : vector<2x8x32xbf16> to vector<2x8x8xbf16>
    "tpu.trace_start"() <{level = 10 : i32, message = "bts,bsd->btd"}> : () -> ()
    %cst_140 = arith.constant dense<0.000000e+00> : vector<2x8x8xf32>
    %413 = tpu.matmul %411, %412, %cst_140 {dimension_numbers = #tpu.dot_dimension_numbers<[2], [1], [1], [2], [0, 0, 0, 1, 1, 2], [0], [0]>} : vector<2x8x8xbf16>, vector<2x8x8xbf16>, vector<2x8x8xf32> -> vector<2x8x8xf32>
    "tpu.trace_stop"() : () -> ()
    %414 = vector.shape_cast %413 : vector<2x8x8xf32> to vector<16x8xf32>
    %415 = arith.truncf %414 : vector<16x8xf32> to vector<16x8xbf16>
    %416 = vector.extract_strided_slice %351 {offsets = [8, 0], sizes = [8, 32], strides = [1, 1]} : vector<32x32xbf16> to vector<8x32xbf16>
    %cst_141 = arith.constant dense<0.000000e+00> : vector<16x32xf32>
    %417 = tpu.matmul %415, %416, %cst_141 {dimension_numbers = #tpu.dot_dimension_numbers<[1], [0], [0], [1], [0, 0, 1, 1], [], []>} : vector<16x8xbf16>, vector<8x32xbf16>, vector<16x32xf32> -> vector<16x32xf32>
    %418 = arith.addf %397, %417 : vector<16x32xf32>
    %419 = vector.extract_strided_slice %371 {offsets = [0, 0, 16], sizes = [2, 8, 8], strides = [1, 1, 1]} : vector<2x8x32xbf16> to vector<2x8x8xbf16>
    %420 = vector.extract_strided_slice %373 {offsets = [0, 0, 16], sizes = [2, 8, 8], strides = [1, 1, 1]} : vector<2x8x32xbf16> to vector<2x8x8xbf16>
    "tpu.trace_start"() <{level = 10 : i32, message = "btd,bsd->bts"}> : () -> ()
    %cst_142 = arith.constant dense<0.000000e+00> : vector<2x8x8xf32>
    %421 = tpu.matmul %419, %420, %cst_142 {dimension_numbers = #tpu.dot_dimension_numbers<[2], [2], [1], [1], [0, 0, 0, 1, 1, 1], [0], [0]>} : vector<2x8x8xbf16>, vector<2x8x8xbf16>, vector<2x8x8xf32> -> vector<2x8x8xf32>
    "tpu.trace_stop"() : () -> ()
    %cst_143 = arith.constant dense<0xFF800000> : vector<2x8xf32>
    %422 = vector.multi_reduction <maximumf>, %421, %cst_143 [2] : vector<2x8x8xf32> to vector<2x8xf32>
    %423 = vector.shape_cast %422 : vector<2x8xf32> to vector<2x8x1xf32>
    %424 = vector.broadcast %423 : vector<2x8x1xf32> to vector<2x8x8xf32>
    %425 = arith.subf %421, %424 : vector<2x8x8xf32>
    %426 = math.exp %425 : vector<2x8x8xf32>
    %cst_144 = arith.constant dense<0.000000e+00> : vector<2x8xf32>
    %427 = vector.multi_reduction <add>, %426, %cst_144 [2] : vector<2x8x8xf32> to vector<2x8xf32>
    %428 = vector.shape_cast %427 : vector<2x8xf32> to vector<2x8x1xf32>
    %429 = tpu.reciprocal %428 {approx = true} : vector<2x8x1xf32> -> vector<2x8x1xf32>
    %430 = vector.broadcast %429 : vector<2x8x1xf32> to vector<2x8x8xf32>
    %431 = arith.mulf %426, %430 : vector<2x8x8xf32>
    %432 = arith.truncf %431 : vector<2x8x8xf32> to vector<2x8x8xbf16>
    %433 = vector.extract_strided_slice %375 {offsets = [0, 0, 16], sizes = [2, 8, 8], strides = [1, 1, 1]} : vector<2x8x32xbf16> to vector<2x8x8xbf16>
    "tpu.trace_start"() <{level = 10 : i32, message = "bts,bsd->btd"}> : () -> ()
    %cst_145 = arith.constant dense<0.000000e+00> : vector<2x8x8xf32>
    %434 = tpu.matmul %432, %433, %cst_145 {dimension_numbers = #tpu.dot_dimension_numbers<[2], [1], [1], [2], [0, 0, 0, 1, 1, 2], [0], [0]>} : vector<2x8x8xbf16>, vector<2x8x8xbf16>, vector<2x8x8xf32> -> vector<2x8x8xf32>
    "tpu.trace_stop"() : () -> ()
    %435 = vector.shape_cast %434 : vector<2x8x8xf32> to vector<16x8xf32>
    %436 = arith.truncf %435 : vector<16x8xf32> to vector<16x8xbf16>
    %437 = vector.extract_strided_slice %351 {offsets = [16, 0], sizes = [8, 32], strides = [1, 1]} : vector<32x32xbf16> to vector<8x32xbf16>
    %cst_146 = arith.constant dense<0.000000e+00> : vector<16x32xf32>
    %438 = tpu.matmul %436, %437, %cst_146 {dimension_numbers = #tpu.dot_dimension_numbers<[1], [0], [0], [1], [0, 0, 1, 1], [], []>} : vector<16x8xbf16>, vector<8x32xbf16>, vector<16x32xf32> -> vector<16x32xf32>
    %439 = arith.addf %418, %438 : vector<16x32xf32>
    %440 = vector.extract_strided_slice %371 {offsets = [0, 0, 24], sizes = [2, 8, 8], strides = [1, 1, 1]} : vector<2x8x32xbf16> to vector<2x8x8xbf16>
    %441 = vector.extract_strided_slice %373 {offsets = [0, 0, 24], sizes = [2, 8, 8], strides = [1, 1, 1]} : vector<2x8x32xbf16> to vector<2x8x8xbf16>
    "tpu.trace_start"() <{level = 10 : i32, message = "btd,bsd->bts"}> : () -> ()
    %cst_147 = arith.constant dense<0.000000e+00> : vector<2x8x8xf32>
    %442 = tpu.matmul %440, %441, %cst_147 {dimension_numbers = #tpu.dot_dimension_numbers<[2], [2], [1], [1], [0, 0, 0, 1, 1, 1], [0], [0]>} : vector<2x8x8xbf16>, vector<2x8x8xbf16>, vector<2x8x8xf32> -> vector<2x8x8xf32>
    "tpu.trace_stop"() : () -> ()
    %cst_148 = arith.constant dense<0xFF800000> : vector<2x8xf32>
    %443 = vector.multi_reduction <maximumf>, %442, %cst_148 [2] : vector<2x8x8xf32> to vector<2x8xf32>
    %444 = vector.shape_cast %443 : vector<2x8xf32> to vector<2x8x1xf32>
    %445 = vector.broadcast %444 : vector<2x8x1xf32> to vector<2x8x8xf32>
    %446 = arith.subf %442, %445 : vector<2x8x8xf32>
    %447 = math.exp %446 : vector<2x8x8xf32>
    %cst_149 = arith.constant dense<0.000000e+00> : vector<2x8xf32>
    %448 = vector.multi_reduction <add>, %447, %cst_149 [2] : vector<2x8x8xf32> to vector<2x8xf32>
    %449 = vector.shape_cast %448 : vector<2x8xf32> to vector<2x8x1xf32>
    %450 = tpu.reciprocal %449 {approx = true} : vector<2x8x1xf32> -> vector<2x8x1xf32>
    %451 = vector.broadcast %450 : vector<2x8x1xf32> to vector<2x8x8xf32>
    %452 = arith.mulf %447, %451 : vector<2x8x8xf32>
    %453 = arith.truncf %452 : vector<2x8x8xf32> to vector<2x8x8xbf16>
    %454 = vector.extract_strided_slice %375 {offsets = [0, 0, 24], sizes = [2, 8, 8], strides = [1, 1, 1]} : vector<2x8x32xbf16> to vector<2x8x8xbf16>
    "tpu.trace_start"() <{level = 10 : i32, message = "bts,bsd->btd"}> : () -> ()
    %cst_150 = arith.constant dense<0.000000e+00> : vector<2x8x8xf32>
    %455 = tpu.matmul %453, %454, %cst_150 {dimension_numbers = #tpu.dot_dimension_numbers<[2], [1], [1], [2], [0, 0, 0, 1, 1, 2], [0], [0]>} : vector<2x8x8xbf16>, vector<2x8x8xbf16>, vector<2x8x8xf32> -> vector<2x8x8xf32>
    "tpu.trace_stop"() : () -> ()
    %456 = vector.shape_cast %455 : vector<2x8x8xf32> to vector<16x8xf32>
    %457 = arith.truncf %456 : vector<16x8xf32> to vector<16x8xbf16>
    %458 = vector.extract_strided_slice %351 {offsets = [24, 0], sizes = [8, 32], strides = [1, 1]} : vector<32x32xbf16> to vector<8x32xbf16>
    %cst_151 = arith.constant dense<0.000000e+00> : vector<16x32xf32>
    %459 = tpu.matmul %457, %458, %cst_151 {dimension_numbers = #tpu.dot_dimension_numbers<[1], [0], [0], [1], [0, 0, 1, 1], [], []>} : vector<16x8xbf16>, vector<8x32xbf16>, vector<16x32xf32> -> vector<16x32xf32>
    %460 = arith.addf %439, %459 : vector<16x32xf32>
    %461 = vector.broadcast %357 : vector<1x32xf32> to vector<16x32xf32>
    %462 = arith.addf %460, %461 : vector<16x32xf32>
    %463 = arith.addf %338, %462 : vector<16x32xf32>
    %464 = vector.extract_strided_slice %340 {offsets = [0, 0], sizes = [1, 32], strides = [1, 1]} : vector<3x32xf32> to vector<1x32xf32>
    %465 = vector.extract_strided_slice %342 {offsets = [0, 0], sizes = [1, 32], strides = [1, 1]} : vector<3x32xf32> to vector<1x32xf32>
    %cst_152 = arith.constant dense<0.000000e+00> : vector<16xf32>
    %466 = vector.multi_reduction <add>, %463, %cst_152 [1] : vector<16x32xf32> to vector<16xf32>
    %467 = vector.shape_cast %466 : vector<16xf32> to vector<16x1xf32>
    %cst_153 = arith.constant 3.200000e+01 : f32
    %468 = vector.broadcast %cst_153 : f32 to vector<16x1xf32>
    %469 = arith.divf %467, %468 : vector<16x1xf32>
    %470 = vector.broadcast %469 : vector<16x1xf32> to vector<16x32xf32>
    %471 = arith.subf %463, %470 : vector<16x32xf32>
    %472 = arith.mulf %471, %471 : vector<16x32xf32>
    %cst_154 = arith.constant dense<0.000000e+00> : vector<16xf32>
    %473 = vector.multi_reduction <add>, %472, %cst_154 [1] : vector<16x32xf32> to vector<16xf32>
    %474 = vector.shape_cast %473 : vector<16xf32> to vector<16x1xf32>
    %cst_155 = arith.constant 3.200000e+01 : f32
    %475 = vector.broadcast %cst_155 : f32 to vector<16x1xf32>
    %476 = arith.divf %474, %475 : vector<16x1xf32>
    %477 = vector.broadcast %469 : vector<16x1xf32> to vector<16x32xf32>
    %478 = arith.subf %463, %477 : vector<16x32xf32>
    %cst_156 = arith.constant 9.99999974E-6 : f32
    %479 = vector.broadcast %cst_156 : f32 to vector<16x1xf32>
    %480 = arith.addf %476, %479 : vector<16x1xf32>
    %481 = math.rsqrt %480 : vector<16x1xf32>
    %482 = vector.broadcast %481 : vector<16x1xf32> to vector<16x32xf32>
    %483 = arith.mulf %478, %482 : vector<16x32xf32>
    %484 = vector.broadcast %464 : vector<1x32xf32> to vector<16x32xf32>
    %485 = arith.mulf %483, %484 : vector<16x32xf32>
    %486 = vector.broadcast %465 : vector<1x32xf32> to vector<16x32xf32>
    %487 = arith.addf %485, %486 : vector<16x32xf32>
    %488 = arith.addf %487, %1 : vector<16x32xf32>
    %c12 = arith.constant 12 : index
    %c0_157 = arith.constant 0 : index
    %c0_158 = arith.constant 0 : index
    %489 = vector.load %arg3[%c12, %c0_157, %c0_158] : memref<16x32x32xbf16, #tpu.memory_space<vmem>>, vector<1x32x32xbf16>
    %490 = vector.shape_cast %489 : vector<1x32x32xbf16> to vector<32x32xbf16>
    %c13 = arith.constant 13 : index
    %c0_159 = arith.constant 0 : index
    %c0_160 = arith.constant 0 : index
    %491 = vector.load %arg3[%c13, %c0_159, %c0_160] : memref<16x32x32xbf16, #tpu.memory_space<vmem>>, vector<1x32x32xbf16>
    %492 = vector.shape_cast %491 : vector<1x32x32xbf16> to vector<32x32xbf16>
    %c14 = arith.constant 14 : index
    %c0_161 = arith.constant 0 : index
    %c0_162 = arith.constant 0 : index
    %493 = vector.load %arg3[%c14, %c0_161, %c0_162] : memref<16x32x32xbf16, #tpu.memory_space<vmem>>, vector<1x32x32xbf16>
    %494 = vector.shape_cast %493 : vector<1x32x32xbf16> to vector<32x32xbf16>
    %c15 = arith.constant 15 : index
    %c0_163 = arith.constant 0 : index
    %c0_164 = arith.constant 0 : index
    %495 = vector.load %arg3[%c15, %c0_163, %c0_164] : memref<16x32x32xbf16, #tpu.memory_space<vmem>>, vector<1x32x32xbf16>
    %496 = vector.shape_cast %495 : vector<1x32x32xbf16> to vector<32x32xbf16>
    %c1_165 = arith.constant 1 : index
    %c0_166 = arith.constant 0 : index
    %c0_167 = arith.constant 0 : index
    %497 = vector.load %arg4[%c1_165, %c0_166, %c0_167] : memref<2x8x32xf32, #tpu.memory_space<vmem>>, vector<1x8x32xf32>
    %498 = vector.shape_cast %497 : vector<1x8x32xf32> to vector<8x32xf32>
    %499 = vector.extract_strided_slice %498 {offsets = [4, 0], sizes = [1, 32], strides = [1, 1]} : vector<8x32xf32> to vector<1x32xf32>
    %500 = vector.extract_strided_slice %498 {offsets = [5, 0], sizes = [1, 32], strides = [1, 1]} : vector<8x32xf32> to vector<1x32xf32>
    %501 = vector.extract_strided_slice %498 {offsets = [6, 0], sizes = [1, 32], strides = [1, 1]} : vector<8x32xf32> to vector<1x32xf32>
    %502 = vector.extract_strided_slice %498 {offsets = [7, 0], sizes = [1, 32], strides = [1, 1]} : vector<8x32xf32> to vector<1x32xf32>
    %503 = arith.truncf %488 : vector<16x32xf32> to vector<16x32xbf16>
    %cst_168 = arith.constant dense<0.000000e+00> : vector<16x32xf32>
    %504 = tpu.matmul %503, %490, %cst_168 {dimension_numbers = #tpu.dot_dimension_numbers<[1], [0], [0], [1], [0, 0, 1, 1], [], []>} : vector<16x32xbf16>, vector<32x32xbf16>, vector<16x32xf32> -> vector<16x32xf32>
    %505 = vector.broadcast %499 : vector<1x32xf32> to vector<16x32xf32>
    %506 = arith.addf %504, %505 : vector<16x32xf32>
    %cst_169 = arith.constant dense<0.000000e+00> : vector<32x32xf32>
    %507 = tpu.matmul %3, %492, %cst_169 {dimension_numbers = #tpu.dot_dimension_numbers<[1], [0], [0], [1], [0, 0, 1, 1], [], []>} : vector<32x32xbf16>, vector<32x32xbf16>, vector<32x32xf32> -> vector<32x32xf32>
    %508 = vector.broadcast %500 : vector<1x32xf32> to vector<32x32xf32>
    %509 = arith.addf %507, %508 : vector<32x32xf32>
    %cst_170 = arith.constant dense<0.000000e+00> : vector<32x32xf32>
    %510 = tpu.matmul %3, %494, %cst_170 {dimension_numbers = #tpu.dot_dimension_numbers<[1], [0], [0], [1], [0, 0, 1, 1], [], []>} : vector<32x32xbf16>, vector<32x32xbf16>, vector<32x32xf32> -> vector<32x32xf32>
    %511 = vector.broadcast %501 : vector<1x32xf32> to vector<32x32xf32>
    %512 = arith.addf %510, %511 : vector<32x32xf32>
    %513 = vector.shape_cast %506 : vector<16x32xf32> to vector<2x8x32xf32>
    %514 = arith.truncf %513 : vector<2x8x32xf32> to vector<2x8x32xbf16>
    %515 = vector.shape_cast %509 : vector<32x32xf32> to vector<2x16x32xf32>
    %516 = arith.truncf %515 : vector<2x16x32xf32> to vector<2x16x32xbf16>
    %517 = vector.shape_cast %512 : vector<32x32xf32> to vector<2x16x32xf32>
    %518 = arith.truncf %517 : vector<2x16x32xf32> to vector<2x16x32xbf16>
    %cst_171 = arith.constant 0.000000e+00 : f32
    %519 = vector.broadcast %cst_171 : f32 to vector<16x32xf32>
    %520 = vector.extract_strided_slice %514 {offsets = [0, 0, 0], sizes = [2, 8, 8], strides = [1, 1, 1]} : vector<2x8x32xbf16> to vector<2x8x8xbf16>
    %521 = vector.extract_strided_slice %516 {offsets = [0, 0, 0], sizes = [2, 16, 8], strides = [1, 1, 1]} : vector<2x16x32xbf16> to vector<2x16x8xbf16>
    "tpu.trace_start"() <{level = 10 : i32, message = "btd,bsd->bts"}> : () -> ()
    %cst_172 = arith.constant dense<0.000000e+00> : vector<2x8x16xf32>
    %522 = tpu.matmul %520, %521, %cst_172 {dimension_numbers = #tpu.dot_dimension_numbers<[2], [2], [1], [1], [0, 0, 0, 1, 1, 1], [0], [0]>} : vector<2x8x8xbf16>, vector<2x16x8xbf16>, vector<2x8x16xf32> -> vector<2x8x16xf32>
    "tpu.trace_stop"() : () -> ()
    %cst_173 = arith.constant dense<0xFF800000> : vector<2x8xf32>
    %523 = vector.multi_reduction <maximumf>, %522, %cst_173 [2] : vector<2x8x16xf32> to vector<2x8xf32>
    %524 = vector.shape_cast %523 : vector<2x8xf32> to vector<2x8x1xf32>
    %525 = vector.broadcast %524 : vector<2x8x1xf32> to vector<2x8x16xf32>
    %526 = arith.subf %522, %525 : vector<2x8x16xf32>
    %527 = math.exp %526 : vector<2x8x16xf32>
    %cst_174 = arith.constant dense<0.000000e+00> : vector<2x8xf32>
    %528 = vector.multi_reduction <add>, %527, %cst_174 [2] : vector<2x8x16xf32> to vector<2x8xf32>
    %529 = vector.shape_cast %528 : vector<2x8xf32> to vector<2x8x1xf32>
    %530 = tpu.reciprocal %529 {approx = true} : vector<2x8x1xf32> -> vector<2x8x1xf32>
    %531 = vector.broadcast %530 : vector<2x8x1xf32> to vector<2x8x16xf32>
    %532 = arith.mulf %527, %531 : vector<2x8x16xf32>
    %533 = arith.truncf %532 : vector<2x8x16xf32> to vector<2x8x16xbf16>
    %534 = vector.extract_strided_slice %518 {offsets = [0, 0, 0], sizes = [2, 16, 8], strides = [1, 1, 1]} : vector<2x16x32xbf16> to vector<2x16x8xbf16>
    "tpu.trace_start"() <{level = 10 : i32, message = "bts,bsd->btd"}> : () -> ()
    %cst_175 = arith.constant dense<0.000000e+00> : vector<2x8x8xf32>
    %535 = tpu.matmul %533, %534, %cst_175 {dimension_numbers = #tpu.dot_dimension_numbers<[2], [1], [1], [2], [0, 0, 0, 1, 1, 2], [0], [0]>} : vector<2x8x16xbf16>, vector<2x16x8xbf16>, vector<2x8x8xf32> -> vector<2x8x8xf32>
    "tpu.trace_stop"() : () -> ()
    %536 = vector.shape_cast %535 : vector<2x8x8xf32> to vector<16x8xf32>
    %537 = arith.truncf %536 : vector<16x8xf32> to vector<16x8xbf16>
    %538 = vector.extract_strided_slice %496 {offsets = [0, 0], sizes = [8, 32], strides = [1, 1]} : vector<32x32xbf16> to vector<8x32xbf16>
    %cst_176 = arith.constant dense<0.000000e+00> : vector<16x32xf32>
    %539 = tpu.matmul %537, %538, %cst_176 {dimension_numbers = #tpu.dot_dimension_numbers<[1], [0], [0], [1], [0, 0, 1, 1], [], []>} : vector<16x8xbf16>, vector<8x32xbf16>, vector<16x32xf32> -> vector<16x32xf32>
    %540 = arith.addf %519, %539 : vector<16x32xf32>
    %541 = vector.extract_strided_slice %514 {offsets = [0, 0, 8], sizes = [2, 8, 8], strides = [1, 1, 1]} : vector<2x8x32xbf16> to vector<2x8x8xbf16>
    %542 = vector.extract_strided_slice %516 {offsets = [0, 0, 8], sizes = [2, 16, 8], strides = [1, 1, 1]} : vector<2x16x32xbf16> to vector<2x16x8xbf16>
    "tpu.trace_start"() <{level = 10 : i32, message = "btd,bsd->bts"}> : () -> ()
    %cst_177 = arith.constant dense<0.000000e+00> : vector<2x8x16xf32>
    %543 = tpu.matmul %541, %542, %cst_177 {dimension_numbers = #tpu.dot_dimension_numbers<[2], [2], [1], [1], [0, 0, 0, 1, 1, 1], [0], [0]>} : vector<2x8x8xbf16>, vector<2x16x8xbf16>, vector<2x8x16xf32> -> vector<2x8x16xf32>
    "tpu.trace_stop"() : () -> ()
    %cst_178 = arith.constant dense<0xFF800000> : vector<2x8xf32>
    %544 = vector.multi_reduction <maximumf>, %543, %cst_178 [2] : vector<2x8x16xf32> to vector<2x8xf32>
    %545 = vector.shape_cast %544 : vector<2x8xf32> to vector<2x8x1xf32>
    %546 = vector.broadcast %545 : vector<2x8x1xf32> to vector<2x8x16xf32>
    %547 = arith.subf %543, %546 : vector<2x8x16xf32>
    %548 = math.exp %547 : vector<2x8x16xf32>
    %cst_179 = arith.constant dense<0.000000e+00> : vector<2x8xf32>
    %549 = vector.multi_reduction <add>, %548, %cst_179 [2] : vector<2x8x16xf32> to vector<2x8xf32>
    %550 = vector.shape_cast %549 : vector<2x8xf32> to vector<2x8x1xf32>
    %551 = tpu.reciprocal %550 {approx = true} : vector<2x8x1xf32> -> vector<2x8x1xf32>
    %552 = vector.broadcast %551 : vector<2x8x1xf32> to vector<2x8x16xf32>
    %553 = arith.mulf %548, %552 : vector<2x8x16xf32>
    %554 = arith.truncf %553 : vector<2x8x16xf32> to vector<2x8x16xbf16>
    %555 = vector.extract_strided_slice %518 {offsets = [0, 0, 8], sizes = [2, 16, 8], strides = [1, 1, 1]} : vector<2x16x32xbf16> to vector<2x16x8xbf16>
    "tpu.trace_start"() <{level = 10 : i32, message = "bts,bsd->btd"}> : () -> ()
    %cst_180 = arith.constant dense<0.000000e+00> : vector<2x8x8xf32>
    %556 = tpu.matmul %554, %555, %cst_180 {dimension_numbers = #tpu.dot_dimension_numbers<[2], [1], [1], [2], [0, 0, 0, 1, 1, 2], [0], [0]>} : vector<2x8x16xbf16>, vector<2x16x8xbf16>, vector<2x8x8xf32> -> vector<2x8x8xf32>
    "tpu.trace_stop"() : () -> ()
    %557 = vector.shape_cast %556 : vector<2x8x8xf32> to vector<16x8xf32>
    %558 = arith.truncf %557 : vector<16x8xf32> to vector<16x8xbf16>
    %559 = vector.extract_strided_slice %496 {offsets = [8, 0], sizes = [8, 32], strides = [1, 1]} : vector<32x32xbf16> to vector<8x32xbf16>
    %cst_181 = arith.constant dense<0.000000e+00> : vector<16x32xf32>
    %560 = tpu.matmul %558, %559, %cst_181 {dimension_numbers = #tpu.dot_dimension_numbers<[1], [0], [0], [1], [0, 0, 1, 1], [], []>} : vector<16x8xbf16>, vector<8x32xbf16>, vector<16x32xf32> -> vector<16x32xf32>
    %561 = arith.addf %540, %560 : vector<16x32xf32>
    %562 = vector.extract_strided_slice %514 {offsets = [0, 0, 16], sizes = [2, 8, 8], strides = [1, 1, 1]} : vector<2x8x32xbf16> to vector<2x8x8xbf16>
    %563 = vector.extract_strided_slice %516 {offsets = [0, 0, 16], sizes = [2, 16, 8], strides = [1, 1, 1]} : vector<2x16x32xbf16> to vector<2x16x8xbf16>
    "tpu.trace_start"() <{level = 10 : i32, message = "btd,bsd->bts"}> : () -> ()
    %cst_182 = arith.constant dense<0.000000e+00> : vector<2x8x16xf32>
    %564 = tpu.matmul %562, %563, %cst_182 {dimension_numbers = #tpu.dot_dimension_numbers<[2], [2], [1], [1], [0, 0, 0, 1, 1, 1], [0], [0]>} : vector<2x8x8xbf16>, vector<2x16x8xbf16>, vector<2x8x16xf32> -> vector<2x8x16xf32>
    "tpu.trace_stop"() : () -> ()
    %cst_183 = arith.constant dense<0xFF800000> : vector<2x8xf32>
    %565 = vector.multi_reduction <maximumf>, %564, %cst_183 [2] : vector<2x8x16xf32> to vector<2x8xf32>
    %566 = vector.shape_cast %565 : vector<2x8xf32> to vector<2x8x1xf32>
    %567 = vector.broadcast %566 : vector<2x8x1xf32> to vector<2x8x16xf32>
    %568 = arith.subf %564, %567 : vector<2x8x16xf32>
    %569 = math.exp %568 : vector<2x8x16xf32>
    %cst_184 = arith.constant dense<0.000000e+00> : vector<2x8xf32>
    %570 = vector.multi_reduction <add>, %569, %cst_184 [2] : vector<2x8x16xf32> to vector<2x8xf32>
    %571 = vector.shape_cast %570 : vector<2x8xf32> to vector<2x8x1xf32>
    %572 = tpu.reciprocal %571 {approx = true} : vector<2x8x1xf32> -> vector<2x8x1xf32>
    %573 = vector.broadcast %572 : vector<2x8x1xf32> to vector<2x8x16xf32>
    %574 = arith.mulf %569, %573 : vector<2x8x16xf32>
    %575 = arith.truncf %574 : vector<2x8x16xf32> to vector<2x8x16xbf16>
    %576 = vector.extract_strided_slice %518 {offsets = [0, 0, 16], sizes = [2, 16, 8], strides = [1, 1, 1]} : vector<2x16x32xbf16> to vector<2x16x8xbf16>
    "tpu.trace_start"() <{level = 10 : i32, message = "bts,bsd->btd"}> : () -> ()
    %cst_185 = arith.constant dense<0.000000e+00> : vector<2x8x8xf32>
    %577 = tpu.matmul %575, %576, %cst_185 {dimension_numbers = #tpu.dot_dimension_numbers<[2], [1], [1], [2], [0, 0, 0, 1, 1, 2], [0], [0]>} : vector<2x8x16xbf16>, vector<2x16x8xbf16>, vector<2x8x8xf32> -> vector<2x8x8xf32>
    "tpu.trace_stop"() : () -> ()
    %578 = vector.shape_cast %577 : vector<2x8x8xf32> to vector<16x8xf32>
    %579 = arith.truncf %578 : vector<16x8xf32> to vector<16x8xbf16>
    %580 = vector.extract_strided_slice %496 {offsets = [16, 0], sizes = [8, 32], strides = [1, 1]} : vector<32x32xbf16> to vector<8x32xbf16>
    %cst_186 = arith.constant dense<0.000000e+00> : vector<16x32xf32>
    %581 = tpu.matmul %579, %580, %cst_186 {dimension_numbers = #tpu.dot_dimension_numbers<[1], [0], [0], [1], [0, 0, 1, 1], [], []>} : vector<16x8xbf16>, vector<8x32xbf16>, vector<16x32xf32> -> vector<16x32xf32>
    %582 = arith.addf %561, %581 : vector<16x32xf32>
    %583 = vector.extract_strided_slice %514 {offsets = [0, 0, 24], sizes = [2, 8, 8], strides = [1, 1, 1]} : vector<2x8x32xbf16> to vector<2x8x8xbf16>
    %584 = vector.extract_strided_slice %516 {offsets = [0, 0, 24], sizes = [2, 16, 8], strides = [1, 1, 1]} : vector<2x16x32xbf16> to vector<2x16x8xbf16>
    "tpu.trace_start"() <{level = 10 : i32, message = "btd,bsd->bts"}> : () -> ()
    %cst_187 = arith.constant dense<0.000000e+00> : vector<2x8x16xf32>
    %585 = tpu.matmul %583, %584, %cst_187 {dimension_numbers = #tpu.dot_dimension_numbers<[2], [2], [1], [1], [0, 0, 0, 1, 1, 1], [0], [0]>} : vector<2x8x8xbf16>, vector<2x16x8xbf16>, vector<2x8x16xf32> -> vector<2x8x16xf32>
    "tpu.trace_stop"() : () -> ()
    %cst_188 = arith.constant dense<0xFF800000> : vector<2x8xf32>
    %586 = vector.multi_reduction <maximumf>, %585, %cst_188 [2] : vector<2x8x16xf32> to vector<2x8xf32>
    %587 = vector.shape_cast %586 : vector<2x8xf32> to vector<2x8x1xf32>
    %588 = vector.broadcast %587 : vector<2x8x1xf32> to vector<2x8x16xf32>
    %589 = arith.subf %585, %588 : vector<2x8x16xf32>
    %590 = math.exp %589 : vector<2x8x16xf32>
    %cst_189 = arith.constant dense<0.000000e+00> : vector<2x8xf32>
    %591 = vector.multi_reduction <add>, %590, %cst_189 [2] : vector<2x8x16xf32> to vector<2x8xf32>
    %592 = vector.shape_cast %591 : vector<2x8xf32> to vector<2x8x1xf32>
    %593 = tpu.reciprocal %592 {approx = true} : vector<2x8x1xf32> -> vector<2x8x1xf32>
    %594 = vector.broadcast %593 : vector<2x8x1xf32> to vector<2x8x16xf32>
    %595 = arith.mulf %590, %594 : vector<2x8x16xf32>
    %596 = arith.truncf %595 : vector<2x8x16xf32> to vector<2x8x16xbf16>
    %597 = vector.extract_strided_slice %518 {offsets = [0, 0, 24], sizes = [2, 16, 8], strides = [1, 1, 1]} : vector<2x16x32xbf16> to vector<2x16x8xbf16>
    "tpu.trace_start"() <{level = 10 : i32, message = "bts,bsd->btd"}> : () -> ()
    %cst_190 = arith.constant dense<0.000000e+00> : vector<2x8x8xf32>
    %598 = tpu.matmul %596, %597, %cst_190 {dimension_numbers = #tpu.dot_dimension_numbers<[2], [1], [1], [2], [0, 0, 0, 1, 1, 2], [0], [0]>} : vector<2x8x16xbf16>, vector<2x16x8xbf16>, vector<2x8x8xf32> -> vector<2x8x8xf32>
    "tpu.trace_stop"() : () -> ()
    %599 = vector.shape_cast %598 : vector<2x8x8xf32> to vector<16x8xf32>
    %600 = arith.truncf %599 : vector<16x8xf32> to vector<16x8xbf16>
    %601 = vector.extract_strided_slice %496 {offsets = [24, 0], sizes = [8, 32], strides = [1, 1]} : vector<32x32xbf16> to vector<8x32xbf16>
    %cst_191 = arith.constant dense<0.000000e+00> : vector<16x32xf32>
    %602 = tpu.matmul %600, %601, %cst_191 {dimension_numbers = #tpu.dot_dimension_numbers<[1], [0], [0], [1], [0, 0, 1, 1], [], []>} : vector<16x8xbf16>, vector<8x32xbf16>, vector<16x32xf32> -> vector<16x32xf32>
    %603 = arith.addf %582, %602 : vector<16x32xf32>
    %604 = vector.broadcast %502 : vector<1x32xf32> to vector<16x32xf32>
    %605 = arith.addf %603, %604 : vector<16x32xf32>
    %606 = arith.addf %487, %605 : vector<16x32xf32>
    %607 = vector.extract_strided_slice %340 {offsets = [1, 0], sizes = [1, 32], strides = [1, 1]} : vector<3x32xf32> to vector<1x32xf32>
    %608 = vector.extract_strided_slice %342 {offsets = [1, 0], sizes = [1, 32], strides = [1, 1]} : vector<3x32xf32> to vector<1x32xf32>
    %cst_192 = arith.constant dense<0.000000e+00> : vector<16xf32>
    %609 = vector.multi_reduction <add>, %606, %cst_192 [1] : vector<16x32xf32> to vector<16xf32>
    %610 = vector.shape_cast %609 : vector<16xf32> to vector<16x1xf32>
    %cst_193 = arith.constant 3.200000e+01 : f32
    %611 = vector.broadcast %cst_193 : f32 to vector<16x1xf32>
    %612 = arith.divf %610, %611 : vector<16x1xf32>
    %613 = vector.broadcast %612 : vector<16x1xf32> to vector<16x32xf32>
    %614 = arith.subf %606, %613 : vector<16x32xf32>
    %615 = arith.mulf %614, %614 : vector<16x32xf32>
    %cst_194 = arith.constant dense<0.000000e+00> : vector<16xf32>
    %616 = vector.multi_reduction <add>, %615, %cst_194 [1] : vector<16x32xf32> to vector<16xf32>
    %617 = vector.shape_cast %616 : vector<16xf32> to vector<16x1xf32>
    %cst_195 = arith.constant 3.200000e+01 : f32
    %618 = vector.broadcast %cst_195 : f32 to vector<16x1xf32>
    %619 = arith.divf %617, %618 : vector<16x1xf32>
    %620 = vector.broadcast %612 : vector<16x1xf32> to vector<16x32xf32>
    %621 = arith.subf %606, %620 : vector<16x32xf32>
    %cst_196 = arith.constant 9.99999974E-6 : f32
    %622 = vector.broadcast %cst_196 : f32 to vector<16x1xf32>
    %623 = arith.addf %619, %622 : vector<16x1xf32>
    %624 = math.rsqrt %623 : vector<16x1xf32>
    %625 = vector.broadcast %624 : vector<16x1xf32> to vector<16x32xf32>
    %626 = arith.mulf %621, %625 : vector<16x32xf32>
    %627 = vector.broadcast %607 : vector<1x32xf32> to vector<16x32xf32>
    %628 = arith.mulf %626, %627 : vector<16x32xf32>
    %629 = vector.broadcast %608 : vector<1x32xf32> to vector<16x32xf32>
    %630 = arith.addf %628, %629 : vector<16x32xf32>
    %c1_197 = arith.constant 1 : index
    %c0_198 = arith.constant 0 : index
    %c0_199 = arith.constant 0 : index
    %631 = vector.load %arg5[%c1_197, %c0_198, %c0_199] : memref<2x32x64xbf16, #tpu.memory_space<vmem>>, vector<1x32x64xbf16>
    %632 = vector.shape_cast %631 : vector<1x32x64xbf16> to vector<32x64xbf16>
    %633 = arith.truncf %630 : vector<16x32xf32> to vector<16x32xbf16>
    %cst_200 = arith.constant dense<0.000000e+00> : vector<16x64xf32>
    %634 = tpu.matmul %633, %632, %cst_200 {dimension_numbers = #tpu.dot_dimension_numbers<[1], [0], [0], [1], [0, 0, 1, 1], [], []>} : vector<16x32xbf16>, vector<32x64xbf16>, vector<16x64xf32> -> vector<16x64xf32>
    %c1_201 = arith.constant 1 : index
    %c0_202 = arith.constant 0 : index
    %c0_203 = arith.constant 0 : index
    %635 = vector.load %arg6[%c1_201, %c0_202, %c0_203] : memref<2x1x64xf32, #tpu.memory_space<vmem>>, vector<1x1x64xf32>
    %636 = vector.shape_cast %635 : vector<1x1x64xf32> to vector<1x64xf32>
    %637 = vector.broadcast %636 : vector<1x64xf32> to vector<16x64xf32>
    %638 = arith.addf %634, %637 : vector<16x64xf32>
    %cst_204 = arith.constant 0.000000e+00 : f32
    %639 = vector.broadcast %cst_204 : f32 to vector<16x64xf32>
    %640 = arith.maximumf %638, %639 : vector<16x64xf32>
    %c1_205 = arith.constant 1 : index
    %c0_206 = arith.constant 0 : index
    %c0_207 = arith.constant 0 : index
    %641 = vector.load %arg7[%c1_205, %c0_206, %c0_207] : memref<2x64x32xbf16, #tpu.memory_space<vmem>>, vector<1x64x32xbf16>
    %642 = vector.shape_cast %641 : vector<1x64x32xbf16> to vector<64x32xbf16>
    %643 = arith.truncf %640 : vector<16x64xf32> to vector<16x64xbf16>
    %cst_208 = arith.constant dense<0.000000e+00> : vector<16x32xf32>
    %644 = tpu.matmul %643, %642, %cst_208 {dimension_numbers = #tpu.dot_dimension_numbers<[1], [0], [0], [1], [0, 0, 1, 1], [], []>} : vector<16x64xbf16>, vector<64x32xbf16>, vector<16x32xf32> -> vector<16x32xf32>
    %c1_209 = arith.constant 1 : index
    %c0_210 = arith.constant 0 : index
    %c0_211 = arith.constant 0 : index
    %645 = vector.load %arg8[%c1_209, %c0_210, %c0_211] : memref<2x1x32xf32, #tpu.memory_space<vmem>>, vector<1x1x32xf32>
    %646 = vector.shape_cast %645 : vector<1x1x32xf32> to vector<1x32xf32>
    %647 = vector.broadcast %646 : vector<1x32xf32> to vector<16x32xf32>
    %648 = arith.addf %644, %647 : vector<16x32xf32>
    %649 = arith.addf %630, %648 : vector<16x32xf32>
    %650 = vector.extract_strided_slice %340 {offsets = [2, 0], sizes = [1, 32], strides = [1, 1]} : vector<3x32xf32> to vector<1x32xf32>
    %651 = vector.extract_strided_slice %342 {offsets = [2, 0], sizes = [1, 32], strides = [1, 1]} : vector<3x32xf32> to vector<1x32xf32>
    %cst_212 = arith.constant dense<0.000000e+00> : vector<16xf32>
    %652 = vector.multi_reduction <add>, %649, %cst_212 [1] : vector<16x32xf32> to vector<16xf32>
    %653 = vector.shape_cast %652 : vector<16xf32> to vector<16x1xf32>
    %cst_213 = arith.constant 3.200000e+01 : f32
    %654 = vector.broadcast %cst_213 : f32 to vector<16x1xf32>
    %655 = arith.divf %653, %654 : vector<16x1xf32>
    %656 = vector.broadcast %655 : vector<16x1xf32> to vector<16x32xf32>
    %657 = arith.subf %649, %656 : vector<16x32xf32>
    %658 = arith.mulf %657, %657 : vector<16x32xf32>
    %cst_214 = arith.constant dense<0.000000e+00> : vector<16xf32>
    %659 = vector.multi_reduction <add>, %658, %cst_214 [1] : vector<16x32xf32> to vector<16xf32>
    %660 = vector.shape_cast %659 : vector<16xf32> to vector<16x1xf32>
    %cst_215 = arith.constant 3.200000e+01 : f32
    %661 = vector.broadcast %cst_215 : f32 to vector<16x1xf32>
    %662 = arith.divf %660, %661 : vector<16x1xf32>
    %663 = vector.broadcast %655 : vector<16x1xf32> to vector<16x32xf32>
    %664 = arith.subf %649, %663 : vector<16x32xf32>
    %cst_216 = arith.constant 9.99999974E-6 : f32
    %665 = vector.broadcast %cst_216 : f32 to vector<16x1xf32>
    %666 = arith.addf %662, %665 : vector<16x1xf32>
    %667 = math.rsqrt %666 : vector<16x1xf32>
    %668 = vector.broadcast %667 : vector<16x1xf32> to vector<16x32xf32>
    %669 = arith.mulf %664, %668 : vector<16x32xf32>
    %670 = vector.broadcast %650 : vector<1x32xf32> to vector<16x32xf32>
    %671 = arith.mulf %669, %670 : vector<16x32xf32>
    %672 = vector.broadcast %651 : vector<1x32xf32> to vector<16x32xf32>
    %673 = arith.addf %671, %672 : vector<16x32xf32>
    %c0_217 = arith.constant 0 : index
    %c0_218 = arith.constant 0 : index
    %674 = vector.load %arg11[%c0_217, %c0_218] : memref<1x32xf32, #tpu.memory_space<vmem>>, vector<1x32xf32>
    %c0_219 = arith.constant 0 : index
    %c0_220 = arith.constant 0 : index
    %675 = vector.load %arg12[%c0_219, %c0_220] : memref<1x32xf32, #tpu.memory_space<vmem>>, vector<1x32xf32>
    %cst_221 = arith.constant dense<0.000000e+00> : vector<16xf32>
    %676 = vector.multi_reduction <add>, %673, %cst_221 [1] : vector<16x32xf32> to vector<16xf32>
    %677 = vector.shape_cast %676 : vector<16xf32> to vector<16x1xf32>
    %cst_222 = arith.constant 3.200000e+01 : f32
    %678 = vector.broadcast %cst_222 : f32 to vector<16x1xf32>
    %679 = arith.divf %677, %678 : vector<16x1xf32>
    %680 = vector.broadcast %679 : vector<16x1xf32> to vector<16x32xf32>
    %681 = arith.subf %673, %680 : vector<16x32xf32>
    %682 = arith.mulf %681, %681 : vector<16x32xf32>
    %cst_223 = arith.constant dense<0.000000e+00> : vector<16xf32>
    %683 = vector.multi_reduction <add>, %682, %cst_223 [1] : vector<16x32xf32> to vector<16xf32>
    %684 = vector.shape_cast %683 : vector<16xf32> to vector<16x1xf32>
    %cst_224 = arith.constant 3.200000e+01 : f32
    %685 = vector.broadcast %cst_224 : f32 to vector<16x1xf32>
    %686 = arith.divf %684, %685 : vector<16x1xf32>
    %687 = vector.broadcast %679 : vector<16x1xf32> to vector<16x32xf32>
    %688 = arith.subf %673, %687 : vector<16x32xf32>
    %cst_225 = arith.constant 9.99999974E-6 : f32
    %689 = vector.broadcast %cst_225 : f32 to vector<16x1xf32>
    %690 = arith.addf %686, %689 : vector<16x1xf32>
    %691 = math.rsqrt %690 : vector<16x1xf32>
    %692 = vector.broadcast %691 : vector<16x1xf32> to vector<16x32xf32>
    %693 = arith.mulf %688, %692 : vector<16x32xf32>
    %694 = vector.broadcast %674 : vector<1x32xf32> to vector<16x32xf32>
    %695 = arith.mulf %693, %694 : vector<16x32xf32>
    %696 = vector.broadcast %675 : vector<1x32xf32> to vector<16x32xf32>
    %697 = arith.addf %695, %696 : vector<16x32xf32>
    %c0_226 = arith.constant 0 : index
    %c0_227 = arith.constant 0 : index
    %698 = vector.load %arg13[%c0_226, %c0_227] : memref<16x32xf32, #tpu.memory_space<vmem>>, vector<16x32xf32>
    tpu.vector_store %arg13[%c0_226, %c0_227], %697 {strides = array<i32>} : memref<16x32xf32, #tpu.memory_space<vmem>>, vector<16x32xf32>,
    return
  }
}

</mosaic_0001>

<bundles_post_ra>
// kernel: tpu_custom_call.1
= control target key start
LH: loop header
LB: loop body
LE: loop exit
PB: predicated region body
PF: predicated region fallthrough
CT: control target
= control target key end

     0   :  { %18 = vsyncpa [#allocation3], 0  ;;  %s8325_s0 = inlined_call_operand.vmem [shape: f32[16,32], index: 0, kind: input, shape index: {}]   ;;  %s8326_s1 = inlined_call_operand.vmem [shape: f32[32,32], index: 1, kind: input, shape index: {}]   ;;  %s8327_s2 = inlined_call_operand.vmem [shape: f32[16,32], index: 2, kind: input, shape index: {}]   ;;  %s8328_s3 = inlined_call_operand.hbm [shape: bf16[16,32,32], index: 3, kind: input, shape index: {}]   ;;  %s8329_s4 = inlined_call_operand.vmem [shape: f32[2,8,32], index: 4, kind: input, shape index: {}]   ;;  %s8330_s5 = inlined_call_operand.vmem [shape: bf16[2,32,64], index: 5, kind: input, shape index: {}]   ;;  %s8331_s6 = inlined_call_operand.vmem [shape: f32[2,1,64], index: 6, kind: input, shape index: {}]   ;;  %s8332_s7 = inlined_call_operand.vmem [shape: bf16[2,64,32], index: 7, kind: input, shape index: {}]   ;;  %s8333_s8 = inlined_call_operand.hbm [shape: f32[2,1,32], index: 8, kind: input, shape index: {}]   ;;  %s8334_s9 = inlined_call_operand.vmem [shape: f32[2,3,32], index: 9, kind: input, shape index: {}]   ;;  %s8335_s10 = inlined_call_operand.vmem [shape: f32[2,3,32], index: 10, kind: input, shape index: {}]   ;;  %s8336_s11 = inlined_call_operand.vmem [shape: f32[1,32], index: 11, kind: input, shape index: {}]   ;;  %s8337_s12 = inlined_call_operand.vmem [shape: f32[1,32], index: 12, kind: input, shape index: {}]   ;;  %s8338_s13 = inlined_call_operand.hbm [shape: f32[16,32], index: 13, kind: output, shape index: {}]  }
   0x1   :  { %19 = vsyncpa [#allocation6], 0 }
   0x2   :  { %20 = vsyncpa [#allocation4], 0  ;;  %s7119_s25 = smov [#allocation2]   ;;  %s7047_s29 = scalar_lea.hbm %s8328_s3, 4096 }
   0x3   :  { %s32_s26 = sshll.u32 %s7119_s25, 4  ;;  %p7048_p0 = scmp.ne.s32.totalorder %s8328_s3, %s7047_s29  ;;  %s33_s26 = int_to_ptr.vmem [resolvable:$true] %s32_s26 }
   0x4   :  { %p7051_p1 = scmp.lt.u32.totalorder %s7047_s29, %s8328_s3 }
   0x6   :  { %p7053_p2 = pnand %p7051_p1, %p7048_p0 }
   0x8   :  { %7056 = shalt.err (!%p7053_p2)
}
   0x9   :  { %s7057_s17 = scalar_lea.vmem %s33_s26, 4096  ;;  %p7062_p4 = scmp.lt.s32.totalorder %s33_s26, %s33_s26 }
   0xa   :  { %p7058_p3 = scmp.ne.s32.totalorder %s33_s26, %s7057_s17  ;;  %p7063_p5 = scmp.lt.s32.totalorder %s7057_s17, %s7057_s17 }
   0xc   :  { %p7064_p6 = por %p7063_p5, %p7062_p4 }
   0xe   :  { %p7065_p7 = pnand %p7064_p6, %p7058_p3 }
  0x10   :  { %7068 = shalt.err (!%p7065_p7)
}
  0x11   :  { %s7120_s18 = smov 64   ;;  %s7121_s19 = smov 4  }
  0x12   :  { %38 = dma.hbm_to_vmem [thread:$0]  %s8328_s3, 4096, %s33_s26, [#allocation3], %s7120_s18, %s7120_s18, %s7121_s19  }
  0x13   :  { %s7122_s22 = smov [#allocation5]   ;;  %s7069_s27 = scalar_lea.hbm %s8333_s8, 32 }
  0x14   :  { %s52_s23 = sshll.u32 %s7122_s22, 4  ;;  %p7070_p8 = scmp.ne.s32.totalorder %s8333_s8, %s7069_s27  ;;  %s53_s23 = int_to_ptr.vmem [resolvable:$true] %s52_s23 }
  0x15   :  { %p7073_p9 = scmp.lt.u32.totalorder %s7069_s27, %s8333_s8 }
  0x17   :  { %p7075_p10 = pnand %p7073_p9, %p7070_p8 }
  0x19   :  { %7078 = shalt.err (!%p7075_p10)
}
  0x1a   :  { %s7079_s15 = scalar_lea.vmem %s53_s23, 32  ;;  %p7084_p12 = scmp.lt.s32.totalorder %s53_s23, %s53_s23 }
  0x1b   :  { %p7080_p11 = scmp.ne.s32.totalorder %s53_s23, %s7079_s15  ;;  %p7085_p13 = scmp.lt.s32.totalorder %s7079_s15, %s7079_s15 }
  0x1d   :  { %p7086_p0 = por %p7085_p13, %p7084_p12 }
  0x1f   :  { %p7087_p1 = pnand %p7086_p0, %p7080_p11 }
  0x21   :  { %7090 = shalt.err (!%p7087_p1)
}
  0x22   :  { %s7123_s3 = smov 16   ;;  %s7124_s26 = smov 1  }
  0x23   :  { %58 = dma.hbm_to_vmem [thread:$0]  %s8333_s8, 32, %s53_s23, [#allocation6], %s7123_s3, %s7123_s3, %s7124_s26  }
  0x24   :  { %7113 = dma.done.wait [#allocation3], 4096  }
  0x25   :  { %7114 = vsyncadd [#allocation3], 4294963200 }
  0x26   :  { %7115 = dma.done.wait [#allocation6], 32  }
  0x27   :  { %7116 = vsyncadd [#allocation6], 4294967264  ;;  %v7125_v0 = vmov 0.0   ;;  %vm7126_vm0 = vmmov 0   ;;  %v6847_v1 = vld [vmem:[#allocation2] sm:$0xff]   ;;  %v6848_v2 = vld [vmem:[#allocation2 + $0x8] sm:$0xff]   ;;  %v109_v15 = vlaneseq }
  0x28   :  { %6217 = vmatprep.subr.bf16.mxu1 %v7125_v0  ;;  %6221 = vmatprep.mubr.msk.bf16.mxu1 %vm7126_vm0, %v7125_v0  ;;  %v7236_v3 = vld [vmem:[%s8325_s0] sm:$0xff]  ;;  %v7241_v4 = vld [vmem:[%s8325_s0 + $0x8] sm:$0xff]  ;;  %vm125_vm1 = vcmask 261120   ;;  %v6849_v9 = vld [vmem:[#allocation2 + $0x10] sm:$0xff]   ;;  %vm294_vm2 = vcmask 64512   ;;  %s7127_s27 = smov 120  }
  0x29   :  { %6233 = vmatprep.subr.bf16.mxu0 %v7125_v0  ;;  %6237 = vmatprep.mubr.msk.bf16.mxu0 %vm7126_vm0, %v7125_v0  ;;  %v76_v5 = vld [vmem:[%s8327_s2] sm:$0xff]  ;;  %v77_v6 = vld [vmem:[%s8327_s2 + $0x8] sm:$0xff]  ;;  %v6850_v11 = vld [vmem:[#allocation2 + $0x18] sm:$0xff]   ;;  %v227_v14 = vpack.c.bf16 %v7241_v4, %v7236_v3  ;;  %v7268_v16 = vshrl.u32 %v109_v15, 7  ;;  %vm414_vm3 = vcmask 1043456   ;;  %s7128_s28 = smov 112  }
  0x2a   :  { %6218 = vmatpush3.bf16.msra.mxu1 %v6847_v1  ;;  %v86_v7 = vadd.f32 %v76_v5, %v7236_v3  ;;  %v87_v8 = vadd.f32 %v77_v6, %v7241_v4  ;;  %v6851_v12 = vld [vmem:[#allocation2 + $0x20] sm:$0xff]   ;;  %v6852_v13 = vld [vmem:[#allocation2 + $0x28] sm:$0xff]   ;;  %s7129_s29 = smov 104   ;;  %vm1731_vm4 = vcmask 130048   ;;  %vm2848_vm5 = vcmask 523264   ;;  %s7130_s15 = smov [#allocation7]  }
  0x2b   :  { %6219 = vmatprep.subr.bf16.mxu1 %v7125_v0  ;;  %6234 = vmatpush3.bf16.msra.mxu0 %v6851_v12  ;;  %v7271_v19 = vsub.s32 1, %v7268_v16  ;;  %v7276_v22 = vld [vmem:[%s8329_s4] sm:$0xff]  ;;  %v7281_v24 = vsub.s32 0, %v7268_v16  ;;  %v7310_v40 = vsub.s32 2, %v7268_v16  ;;  %s5829_s3 = sshll.u32 %s7130_s15, 4  ;;  %s5830_s3 = int_to_ptr.vmem [resolvable:$true] %s5829_s3 }
  0x2c   :  { %v108_v10 = vpack.c.bf16 %v87_v8, %v86_v7  ;;  %6235 = vmatprep.subr.bf16.mxu0 %v7125_v0  ;;  %s7091_s26 = scalar_lea.vmem %s5830_s3, 256  ;;  %p7096_p3 = scmp.lt.s32.totalorder %s5830_s3, %s5830_s3 }
  0x2d   :  { %v173_v23 = vrot.slane %v7276_v22, %v7271_v19  ;;  %v112_v29 = vrot.slane %v7276_v22, %v7281_v24  ;;  %v231_v41 = vrot.slane %v7276_v22, %v7310_v40  ;;  %p7092_p2 = scmp.ne.s32.totalorder %s5830_s3, %s7091_s26  ;;  %p7097_p4 = scmp.lt.s32.totalorder %s7091_s26, %s7091_s26 }
  0x2e   :  { %6220 = vmatpush3.bf16.msra.mxu1 %v6848_v2 }
  0x2f   :  { %6225 = vmatprep.subr.bf16.mxu1 %v7125_v0  ;;  %6236 = vmatpush3.bf16.msra.mxu0 %v6852_v13  ;;  %p7098_p5 = por %p7097_p4, %p7096_p3 }
  0x30   :  { %6247 = vmatprep.subr.bf16.mxu0 %v7125_v0 }
  0x31   :  { %6222 = vmatmul.mubr.msk.bf16.vlgmr.msra.gmra.mrb[0].mxu1 %vm125_vm1, %v108_v10  ;;  %p7099_p6 = pnand %p7098_p5, %p7092_p2 }
  0x32   :  { %6226 = vmatpush3.bf16.msra.mxu1 %v6849_v9  ;;  %6229 = vmatprep.mubr.msk.bf16.mxu1 %vm7126_vm0, %v7125_v0 }
  0x33   :  { %6227 = vmatprep.subr.bf16.mxu1 %v7125_v0  ;;  %6238 = vmatmul.mubr.msk.bf16.vlgmr.msra.gmra.mrb[0].mxu0 %vm125_vm1, %v227_v14 }
  0x34   :  { %6249 = vmatprep.mubr.msk.bf16.mxu0 %vm7126_vm0, %v7125_v0 }
  0x36   :  { %6228 = vmatpush3.bf16.msra.mxu1 %v6850_v11 }
  0x37   :  { %6241 = vmatprep.subr.bf16.mxu1 %v7125_v0 }
  0x39   :  { %6230 = vmatmul.mubr.msk.bf16.vlgmr.msra.gmra.mrb[4].mxu1 %vm125_vm1, %v108_v10 }
  0x3a   :  { %6243 = vmatprep.mubr.msk.bf16.mxu1 %vm7126_vm0, %v7125_v0 }
 0x104   :  { %v163_v17 = vpop.f32.mrb[0].mxu1 }
 0x105   :  { %v6223_v18 = vpop.f32.mrb[1].mxu1  ;;  %v164_v35 = vadd.f32 %v163_v17, %v112_v29 }
 0x106   :  { %v166_v20 = vpop.f32.mrb[2].mxu1  ;;  %v281_v42 = vpop.f32.mrb[0].mxu0 }
 0x107   :  { %v6224_v21 = vpop.f32.mrb[3].mxu1  ;;  %v167_v37 = vadd.f32 %v166_v20, %v112_v29  ;;  %v7297_v38 = vpack.c.bf16 %v164_v35, %v164_v35  ;;  %v282_v43 = vadd.f32 %v281_v42, %v231_v41  ;;  %v6239_v44 = vpop.f32.mrb[1].mxu0 }
 0x108   :  { %v284_v45 = vpop.f32.mrb[2].mxu0 }
 0x109   :  { %v7299_v39 = vpack.c.bf16 %v167_v37, %v167_v37  ;;  %v285_v46 = vadd.f32 %v284_v45, %v231_v41  ;;  %v6240_v47 = vpop.f32.mrb[3].mxu0  ;;  %v7314_v48 = vpack.c.bf16 %v282_v43, %v282_v43 }
 0x10b   :  { %v7316_v49 = vpack.c.bf16 %v285_v46, %v285_v46  ;;  %v416_v50 = vsel %vm414_vm3, %v7314_v48, 0 }
 0x10c   :  { %v220_v25 = vpop.f32.mrb[4].mxu1 }
 0x10d   :  { %v221_v26 = vadd.f32 %v220_v25, %v173_v23  ;;  %v6231_v27 = vpop.f32.mrb[5].mxu1  ;;  %v462_v51 = vsel %vm414_vm3, %v7316_v49, 0 }
 0x10e   :  { %v223_v28 = vpop.f32.mrb[6].mxu1 }
 0x10f   :  { %v7285_v30 = vpack.c.bf16 %v221_v26, %v221_v26  ;;  %v224_v31 = vadd.f32 %v223_v28, %v173_v23  ;;  %v6232_v32 = vpop.f32.mrb[7].mxu1 }
 0x111   :  { %v7287_v33 = vpack.c.bf16 %v224_v31, %v224_v31  ;;  %v299_v34 = vsel %vm294_vm2, %v7285_v30, 0 }
 0x112   :  { %6242 = vmatpush3.bf16.xpose.msra.mxu1 %v299_v34 }
 0x113   :  { %561 = vrot.lane.b32.xlu1 %v7287_v33, %s7127_s27  ;;  %v345_v36 = vsel %vm294_vm2, %v7287_v33, 0  ;;  %6253 = vmatprep.subr.bf16.mxu1 %v7125_v0 }
 0x114   :  { %6248 = vmatpush3.bf16.xpose.msra.mxu0 %v345_v36 }
 0x115   :  { %6259 = vmatprep.subr.bf16.mxu0 %v7125_v0 }
 0x119   :  { %6244 = vmatmul.mubr.msk.bf16.vlgmr.msra.gmra.mrb[8].mxu1 %vm294_vm2, %v7297_v38 }
 0x11a   :  { %6255 = vmatprep.mubr.msk.bf16.mxu1 %vm7126_vm0, %v7125_v0  ;;  %6254 = vmatpush3.bf16.msra.mxu1 %v416_v50 }
 0x11b   :  { %6250 = vmatmul.mubr.msk.bf16.vlgmr.msra.gmra.mrb[4].mxu0 %vm294_vm2, %v7299_v39  ;;  %6265 = vmatprep.subr.bf16.mxu1 %v7125_v0 }
 0x11c   :  { %6261 = vmatprep.mubr.msk.bf16.mxu0 %vm7126_vm0, %v7125_v0  ;;  %6260 = vmatpush3.bf16.msra.mxu0 %v462_v51 }
 0x11d   :  { %6271 = vmatprep.subr.bf16.mxu0 %v7125_v0 }
 0x185   :  { %v562_v11 = vpop.permute.xlu1 %561 }
 0x186   :  { %v567_v26 = vsel %vm294_vm2, %v562_v11, 0  ;;  %v104_v11 = vld [vmem:[#allocation2 + $0x34] sm:$0xf] }
 0x1ec   :  { %v335_v52 = vpop.f32.mrb[8].mxu1 }
 0x1ed   :  { %v6245_v53 = vpop.f32.mrb[9].mxu1  ;;  %v387_v54 = vsel %vm294_vm2, %v335_v52, -inf }
 0x1ee   :  { %v381_v55 = vpop.f32.mrb[4].mxu0  ;;  %388 = vmax.xlane.f32.xlu0 %v387_v54  ;;  %v338_v56 = vpop.f32.mrb[10].mxu1 }
 0x1ef   :  { %v6246_v57 = vpop.f32.mrb[11].mxu1  ;;  %v6251_v58 = vpop.f32.mrb[5].mxu0  ;;  %v390_v61 = vsel %vm294_vm2, %v381_v55, -inf }
 0x1f0   :  { %v384_v59 = vpop.f32.mrb[6].mxu0 }
 0x1f1   :  { %v6252_v60 = vpop.f32.mrb[7].mxu0 }
 0x1f2   :  { %391 = vmax.xlane.f32.xlu0 %v390_v61 }
 0x208   :  { %509 = vrot.lane.b32.xlu0 %v7285_v30, %s7127_s27 }
 0x27b   :  { %v389_v62 = vpop.xlane.xlu0 %388 }
 0x27c   :  { %v393_v63 = vsub.f32 %v335_v52, %v389_v62 }
 0x27e   :  { %v395_v1 = vmul.f32 1.442695, %v393_v63 }
 0x27f   :  { %v392_v2 = vpop.xlane.xlu0 %391 }
 0x280   :  { %6883 = vpow2.f32 %v395_v1  ;;  %v394_v5 = vsub.f32 %v381_v55, %v392_v2 }
 0x282   :  { %v397_v6 = vmul.f32 1.442695, %v394_v5 }
 0x283   :  { %v510_v17 = vpop.permute.xlu0 %509 }
 0x284   :  { %6885 = vpow2.f32 %v397_v6  ;;  %v515_v21 = vsel %vm294_vm2, %v510_v17, 0  ;;  %v103_v17 = vld [vmem:[#allocation2 + $0x30] sm:$0xf] }
 0x28a   :  { %v6884_v7 = vpop.eup %6883 }
 0x28b   :  { %v399_v8 = vsel %vm294_vm2, %v6884_v7, 0.0 }
 0x28c   :  { %400 = vadd.xlane.f32.xlu1 %v399_v8 }
 0x28e   :  { %v6886_v9 = vpop.eup %6885 }
 0x28f   :  { %v402_v10 = vsel %vm294_vm2, %v6886_v9, 0.0 }
 0x290   :  { %403 = vadd.xlane.f32.xlu1 %v402_v10 }
 0x2a1   :  { %506 = vrot.lane.b32.xlu1 %v7297_v38, %s7127_s27 }
 0x2a5   :  { %558 = vrot.lane.b32.xlu1 %v7299_v39, %s7127_s27 }
 0x319   :  { %v401_v12 = vpop.xlane.xlu1 %400 }
 0x31a   :  { %6887 = vrcp.f32 %v401_v12 }
 0x31d   :  { %v404_v13 = vpop.xlane.xlu1 %403 }
 0x31e   :  { %6889 = vrcp.f32 %v404_v13 }
 0x321   :  { %v507_v27 = vpop.permute.xlu1 %506 }
 0x324   :  { %v6888_v14 = vpop.eup %6887 }
 0x325   :  { %v407_v15 = vmul.f32 %v6888_v14, %v6884_v7  ;;  %v559_v28 = vpop.permute.xlu1 %558  ;;  %v736_v14 = vsel %vm414_vm3, %v104_v11, 0 }
 0x327   :  { %v409_v18 = vpack.c.bf16 %v407_v15, %v407_v15 }
 0x328   :  { %v6890_v20 = vpop.eup %6889 }
 0x329   :  { %6256 = vmatmul.mubr.msk.bf16.vlgmr.msra.gmra.mrb[12].mxu1 %vm294_vm2, %v409_v18  ;;  %v408_v23 = vmul.f32 %v6890_v20, %v6886_v9 }
 0x32a   :  { %6266 = vmatpush3.bf16.xpose.msra.mxu1 %v515_v21  ;;  %6267 = vmatprep.mubr.msk.bf16.mxu1 %vm7126_vm0, %v7125_v0  ;;  %v783_v21 = vsel %vm414_vm3, %v103_v17, 0 }
 0x32b   :  { %v410_v25 = vpack.c.bf16 %v408_v23, %v408_v23  ;;  %6277 = vmatprep.subr.bf16.mxu1 %v7125_v0 }
 0x32d   :  { %6262 = vmatmul.mubr.msk.bf16.vlgmr.msra.gmra.mrb[8].mxu0 %vm294_vm2, %v410_v25 }
 0x32e   :  { %6272 = vmatpush3.bf16.xpose.msra.mxu0 %v567_v26  ;;  %6273 = vmatprep.mubr.msk.bf16.mxu0 %vm7126_vm0, %v7125_v0 }
 0x32f   :  { %6283 = vmatprep.subr.bf16.mxu0 %v7125_v0 }
 0x331   :  { %6268 = vmatmul.mubr.msk.bf16.vlgmr.msra.gmra.mrb[16].mxu1 %vm294_vm2, %v507_v27 }
 0x332   :  { %6279 = vmatprep.mubr.msk.bf16.mxu1 %vm7126_vm0, %v7125_v0 }
 0x335   :  { %6274 = vmatmul.mubr.msk.bf16.vlgmr.msra.gmra.mrb[12].mxu0 %vm294_vm2, %v559_v28 }
 0x336   :  { %6285 = vmatprep.mubr.msk.bf16.mxu0 %vm7126_vm0, %v7125_v0 }
 0x3fc   :  { %v7350_v29 = vpop.f32.mrb[12].mxu1 }
 0x3fd   :  { %v6257_v31 = vpop.f32.mrb[13].mxu1 }
 0x3fe   :  { %v455_v32 = vpop.f32.mrb[14].mxu1 }
 0x3ff   :  { %v6258_v34 = vpop.f32.mrb[15].mxu1 }
 0x400   :  { %v7352_v35 = vpop.f32.mrb[8].mxu0 }
 0x401   :  { %v504_v36 = vpack.c.bf16 %v7352_v35, %v7350_v29  ;;  %v6263_v37 = vpop.f32.mrb[9].mxu0 }
 0x402   :  { %v501_v41 = vpop.f32.mrb[10].mxu0 }
 0x403   :  { %v6264_v42 = vpop.f32.mrb[11].mxu0 }
 0x404   :  { %v551_v43 = vpop.f32.mrb[16].mxu1 }
 0x405   :  { %v6269_v44 = vpop.f32.mrb[17].mxu1  ;;  %v609_v45 = vsel %vm294_vm2, %v551_v43, -inf }
 0x406   :  { %610 = vmax.xlane.f32.xlu0 %v609_v45  ;;  %v554_v46 = vpop.f32.mrb[18].mxu1 }
 0x407   :  { %v6270_v47 = vpop.f32.mrb[19].mxu1 }
 0x408   :  { %v603_v50 = vpop.f32.mrb[12].mxu0 }
 0x409   :  { %v6275_v51 = vpop.f32.mrb[13].mxu0  ;;  %v612_v52 = vsel %vm294_vm2, %v603_v50, -inf }
 0x40a   :  { %613 = vmax.xlane.f32.xlu1 %v612_v52  ;;  %v606_v53 = vpop.f32.mrb[14].mxu0 }
 0x40b   :  { %v6276_v54 = vpop.f32.mrb[15].mxu0 }
 0x41b   :  { %683 = vrot.lane.b32.xlu1 %v7316_v49, %s7127_s27 }
 0x41f   :  { %828 = vrot.lane.b32.xlu1 %v7285_v30, %s7128_s28 }
 0x423   :  { %878 = vrot.lane.b32.xlu1 %v7287_v33, %s7128_s28 }
 0x427   :  { %876 = vrot.lane.b32.xlu1 %v7299_v39, %s7128_s28 }
 0x493   :  { %v611_v55 = vpop.xlane.xlu0 %610 }
 0x494   :  { %v615_v56 = vsub.f32 %v551_v43, %v611_v55 }
 0x496   :  { %v617_v57 = vmul.f32 1.442695, %v615_v56 }
 0x497   :  { %v614_v58 = vpop.xlane.xlu1 %613 }
 0x498   :  { %6891 = vpow2.f32 %v617_v57  ;;  %v616_v59 = vsub.f32 %v603_v50, %v614_v58 }
 0x49a   :  { %v619_v60 = vmul.f32 1.442695, %v616_v59 }
 0x49b   :  { %v684_v61 = vpop.permute.xlu1 %683 }
 0x49c   :  { %6893 = vpow2.f32 %v619_v60  ;;  %v689_v62 = vsel %vm414_vm3, %v684_v61, 0 }
 0x49d   :  { %6284 = vmatpush3.bf16.msra.mxu0 %v689_v62 }
 0x49e   :  { %6295 = vmatprep.subr.bf16.mxu0 %v7125_v0 }
 0x49f   :  { %v829_v23 = vpop.permute.xlu1 %828 }
 0x4a0   :  { %v834_v41 = vsel %vm294_vm2, %v829_v23, 0 }
 0x4a2   :  { %v6892_v63 = vpop.eup %6891 }
 0x4a3   :  { %v621_v1 = vsel %vm294_vm2, %v6892_v63, 0.0  ;;  %v879_v25 = vpop.permute.xlu1 %878 }
 0x4a4   :  { %622 = vadd.xlane.f32.xlu0 %v621_v1  ;;  %v884_v26 = vsel %vm294_vm2, %v879_v25, 0 }
 0x4a6   :  { %v6894_v2 = vpop.eup %6893 }
 0x4a7   :  { %v624_v5 = vsel %vm294_vm2, %v6894_v2, 0.0  ;;  %v877_v27 = vpop.permute.xlu1 %876 }
 0x4a8   :  { %625 = vadd.xlane.f32.xlu0 %v624_v5 }
 0x4be   :  { %634 = vrot.lane.b32.xlu0 %v7314_v48, %s7127_s27 }
 0x4c2   :  { %826 = vrot.lane.b32.xlu0 %v7297_v38, %s7128_s28 }
 0x531   :  { %v623_v6 = vpop.xlane.xlu0 %622 }
 0x532   :  { %6895 = vrcp.f32 %v623_v6 }
 0x535   :  { %v626_v7 = vpop.xlane.xlu0 %625 }
 0x536   :  { %6897 = vrcp.f32 %v626_v7 }
 0x539   :  { %v635_v8 = vpop.permute.xlu0 %634 }
 0x53a   :  { %v640_v9 = vsel %vm414_vm3, %v635_v8, 0 }
 0x53b   :  { %6278 = vmatpush3.bf16.msra.mxu1 %v640_v9 }
 0x53c   :  { %v6896_v10 = vpop.eup %6895  ;;  %6289 = vmatprep.subr.bf16.mxu1 %v7125_v0 }
 0x53d   :  { %v629_v12 = vmul.f32 %v6896_v10, %v6892_v63  ;;  %v827_v45 = vpop.permute.xlu0 %826 }
 0x53f   :  { %v631_v13 = vpack.c.bf16 %v629_v12, %v629_v12 }
 0x540   :  { %v6898_v15 = vpop.eup %6897 }
 0x541   :  { %6280 = vmatmul.mubr.msk.bf16.vlgmr.msra.gmra.mrb[20].mxu1 %vm294_vm2, %v631_v13  ;;  %v630_v18 = vmul.f32 %v6898_v15, %v6894_v2 }
 0x542   :  { %6290 = vmatpush3.bf16.msra.mxu1 %v736_v14  ;;  %6291 = vmatprep.mubr.msk.bf16.mxu1 %vm7126_vm0, %v7125_v0 }
 0x543   :  { %v632_v20 = vpack.c.bf16 %v630_v18, %v630_v18  ;;  %6301 = vmatprep.subr.bf16.mxu1 %v7125_v0 }
 0x545   :  { %6286 = vmatmul.mubr.msk.bf16.vlgmr.msra.gmra.mrb[16].mxu0 %vm294_vm2, %v632_v20 }
 0x546   :  { %6296 = vmatpush3.bf16.msra.mxu0 %v783_v21  ;;  %6297 = vmatprep.mubr.msk.bf16.mxu0 %vm7126_vm0, %v7125_v0 }
 0x547   :  { %6307 = vmatprep.subr.bf16.mxu0 %v7125_v0 }
 0x54d   :  { %6298 = vmatmul.mubr.msk.bf16.vlgmr.msra.gmra.mrb[20].mxu0 %vm294_vm2, %v504_v36 }
 0x54e   :  { %6309 = vmatprep.mubr.msk.bf16.mxu0 %vm7126_vm0, %v7125_v0 }
 0x54f   :  { %6308 = vmatpush3.bf16.xpose.msra.mxu0 %v884_v26 }
 0x550   :  { %6319 = vmatprep.subr.bf16.mxu0 %v7125_v0 }
 0x556   :  { %6310 = vmatmul.mubr.msk.bf16.vlgmr.msra.gmra.mrb[24].mxu0 %vm294_vm2, %v877_v27 }
 0x557   :  { %6321 = vmatprep.mubr.msk.bf16.mxu0 %vm7126_vm0, %v7125_v0 }
 0x614   :  { %v676_v28 = vpop.f32.mrb[20].mxu1 }
 0x615   :  { %v6281_v31 = vpop.f32.mrb[21].mxu1 }
 0x616   :  { %v679_v32 = vpop.f32.mrb[22].mxu1 }
 0x617   :  { %v6282_v29 = vpop.f32.mrb[23].mxu1 }
 0x618   :  { %v725_v34 = vpop.f32.mrb[16].mxu0 }
 0x619   :  { %v731_v35 = vpack.c.bf16 %v725_v34, %v676_v28  ;;  %v6287_v36 = vpop.f32.mrb[17].mxu0 }
 0x61a   :  { %v728_v37 = vpop.f32.mrb[18].mxu0  ;;  %v105_v36 = vld [vmem:[#allocation2 + $0x38] sm:$0xf] }
 0x61b   :  { %v6288_v42 = vpop.f32.mrb[19].mxu0  ;;  %6292 = vmatmul.mubr.msk.bf16.vlgmr.msra.gmra.mrb[24].mxu1 %vm294_vm2, %v731_v35  ;;  %v1051_v37 = vsel %vm414_vm3, %v105_v36, 0 }
 0x61c   :  { %6302 = vmatpush3.bf16.xpose.msra.mxu1 %v834_v41  ;;  %6303 = vmatprep.mubr.msk.bf16.mxu1 %vm7126_vm0, %v7125_v0 }
 0x61d   :  { %6313 = vmatprep.subr.bf16.mxu1 %v7125_v0 }
 0x620   :  { %v819_v43 = vpop.f32.mrb[20].mxu0 }
 0x621   :  { %v6299_v44 = vpop.f32.mrb[21].mxu0 }
 0x622   :  { %v822_v46 = vpop.f32.mrb[22].mxu0 }
 0x623   :  { %v6300_v47 = vpop.f32.mrb[23].mxu0  ;;  %6304 = vmatmul.mubr.msk.bf16.vlgmr.msra.gmra.mrb[28].mxu1 %vm294_vm2, %v827_v45 }
 0x624   :  { %6315 = vmatprep.mubr.msk.bf16.mxu1 %vm7126_vm0, %v7125_v0 }
 0x629   :  { %v920_v50 = vpop.f32.mrb[24].mxu0 }
 0x62a   :  { %v6311_v51 = vpop.f32.mrb[25].mxu0  ;;  %v929_v52 = vsel %vm294_vm2, %v920_v50, -inf }
 0x62b   :  { %930 = vmax.xlane.f32.xlu1 %v929_v52  ;;  %v923_v53 = vpop.f32.mrb[26].mxu0 }
 0x62c   :  { %v6312_v54 = vpop.f32.mrb[27].mxu0 }
 0x63c   :  { %998 = vrot.lane.b32.xlu1 %v7316_v49, %s7128_s28 }
 0x640   :  { %1098 = vrot.lane.b32.xlu1 %v7285_v30, %s7129_s29 }
 0x644   :  { %1148 = vrot.lane.b32.xlu1 %v7287_v33, %s7129_s29 }
 0x648   :  { %1146 = vrot.lane.b32.xlu1 %v7299_v39, %s7129_s29 }
 0x6b8   :  { %v931_v55 = vpop.xlane.xlu1 %930 }
 0x6b9   :  { %v933_v58 = vsub.f32 %v920_v50, %v931_v55 }
 0x6bb   :  { %v936_v59 = vmul.f32 1.442695, %v933_v58 }
 0x6bc   :  { %v999_v56 = vpop.permute.xlu1 %998 }
 0x6bd   :  { %v1004_v57 = vsel %vm414_vm3, %v999_v56, 0  ;;  %6899 = vpow2.f32 %v936_v59 }
 0x6be   :  { %6320 = vmatpush3.bf16.msra.mxu0 %v1004_v57 }
 0x6bf   :  { %6331 = vmatprep.subr.bf16.mxu0 %v7125_v0 }
 0x6c0   :  { %v1099_v18 = vpop.permute.xlu1 %1098 }
 0x6c1   :  { %v1104_v21 = vsel %vm294_vm2, %v1099_v18, 0 }
 0x6c7   :  { %v6900_v5 = vpop.eup %6899 }
 0x6c8   :  { %v941_v8 = vsel %vm294_vm2, %v6900_v5, 0.0 }
 0x6ee   :  { %v772_v60 = vpop.f32.mrb[24].mxu1 }
 0x6ef   :  { %v7416_v61 = vadd.f32 %v819_v43, %v772_v60  ;;  %v6293_v30 = vpop.f32.mrb[25].mxu1 }
 0x6f0   :  { %v775_v62 = vpop.f32.mrb[26].mxu1 }
 0x6f1   :  { %v7418_v63 = vadd.f32 %v822_v46, %v775_v62  ;;  %v6294_v33 = vpop.f32.mrb[27].mxu1  ;;  %v1149_v46 = vpop.permute.xlu1 %1148 }
 0x6f2   :  { %v1154_v53 = vsel %vm294_vm2, %v1149_v46, 0 }
 0x6f5   :  { %v1147_v55 = vpop.permute.xlu1 %1146 }
 0x6f6   :  { %v870_v1 = vpop.f32.mrb[28].mxu1 }
 0x6f7   :  { %v6305_v39 = vpop.f32.mrb[29].mxu1  ;;  %v926_v2 = vsel %vm294_vm2, %v870_v1, -inf }
 0x6f8   :  { %927 = vmax.xlane.f32.xlu0 %v926_v2  ;;  %v873_v6 = vpop.f32.mrb[30].mxu1 }
 0x6f9   :  { %v6306_v7 = vpop.f32.mrb[31].mxu1 }
 0x6fc   :  { %942 = vadd.xlane.f32.xlu0 %v941_v8 }
 0x785   :  { %v928_v9 = vpop.xlane.xlu0 %927 }
 0x786   :  { %v932_v10 = vsub.f32 %v870_v1, %v928_v9 }
 0x788   :  { %v934_v11 = vmul.f32 1.442695, %v932_v10 }
 0x789   :  { %v943_v12 = vpop.xlane.xlu0 %942 }
 0x78a   :  { %6901 = vpow2.f32 %v934_v11 }
 0x78b   :  { %6903 = vrcp.f32 %v943_v12 }
 0x794   :  { %v6902_v13 = vpop.eup %6901 }
 0x795   :  { %v6904_v14 = vpop.eup %6903  ;;  %v938_v15 = vsel %vm294_vm2, %v6902_v13, 0.0 }
 0x796   :  { %939 = vadd.xlane.f32.xlu0 %v938_v15  ;;  %v947_v17 = vmul.f32 %v6904_v14, %v6900_v5 }
 0x798   :  { %v949_v20 = vpack.c.bf16 %v947_v17, %v947_v17 }
 0x79a   :  { %6322 = vmatmul.mubr.msk.bf16.vlgmr.msra.gmra.mrb[28].mxu0 %vm294_vm2, %v949_v20 }
 0x79b   :  { %6332 = vmatpush3.bf16.xpose.msra.mxu0 %v1104_v21  ;;  %6333 = vmatprep.mubr.msk.bf16.mxu0 %vm7126_vm0, %v7125_v0 }
 0x79c   :  { %6343 = vmatprep.subr.bf16.mxu0 %v7125_v0 }
 0x7ac   :  { %950 = vrot.lane.b32.xlu0 %v7314_v48, %s7128_s28 }
 0x7b0   :  { %1096 = vrot.lane.b32.xlu0 %v7297_v38, %s7129_s29 }
 0x823   :  { %v940_v23 = vpop.xlane.xlu0 %939 }
 0x824   :  { %6905 = vrcp.f32 %v940_v23 }
 0x827   :  { %v951_v25 = vpop.permute.xlu0 %950 }
 0x828   :  { %v956_v26 = vsel %vm414_vm3, %v951_v25, 0 }
 0x829   :  { %6314 = vmatpush3.bf16.msra.mxu1 %v956_v26 }
 0x82a   :  { %6325 = vmatprep.subr.bf16.mxu1 %v7125_v0 }
 0x82b   :  { %v1097_v27 = vpop.permute.xlu0 %1096 }
 0x82c   :  { %6334 = vmatmul.mubr.msk.bf16.vlgmr.msra.gmra.mrb[32].mxu0 %vm294_vm2, %v1097_v27  ;;  %v106_v27 = vld [vmem:[#allocation2 + $0x3c] sm:$0xf] }
 0x82d   :  { %6345 = vmatprep.mubr.msk.bf16.mxu0 %vm7126_vm0, %v7125_v0 }
 0x82e   :  { %v6906_v28 = vpop.eup %6905 }
 0x82f   :  { %v946_v31 = vmul.f32 %v6906_v28, %v6902_v13  ;;  %v1321_v28 = vsel %vm414_vm3, %v106_v27, 0 }
 0x831   :  { %v948_v32 = vpack.c.bf16 %v946_v31, %v946_v31 }
 0x833   :  { %6316 = vmatmul.mubr.msk.bf16.vlgmr.msra.gmra.mrb[32].mxu1 %vm294_vm2, %v948_v32 }
 0x834   :  { %6327 = vmatprep.mubr.msk.bf16.mxu1 %vm7126_vm0, %v7125_v0  ;;  %6326 = vmatpush3.bf16.msra.mxu1 %v1051_v37 }
 0x835   :  { %6337 = vmatprep.subr.bf16.mxu1 %v7125_v0 }
 0x86d   :  { %v1040_v38 = vpop.f32.mrb[28].mxu0 }
 0x86e   :  { %v6323_v29 = vpop.f32.mrb[29].mxu0 }
 0x86f   :  { %v1043_v34 = vpop.f32.mrb[30].mxu0 }
 0x870   :  { %v6324_v35 = vpop.f32.mrb[31].mxu0 }
 0x8ff   :  { %v1140_v41 = vpop.f32.mrb[32].mxu0 }
 0x900   :  { %v6335_v42 = vpop.f32.mrb[33].mxu0  ;;  %v1196_v43 = vsel %vm294_vm2, %v1140_v41, -inf }
 0x901   :  { %1197 = vmax.xlane.f32.xlu0 %v1196_v43  ;;  %v1143_v44 = vpop.f32.mrb[34].mxu0  ;;  %v1368_v42 = vsub.s32 3, %v7268_v16 }
 0x902   :  { %v6336_v45 = vpop.f32.mrb[35].mxu0 }
 0x903   :  { %v1369_v43 = vrot.slane %v7276_v22, %v1368_v42 }
 0x906   :  { %v992_v47 = vpop.f32.mrb[32].mxu1 }
 0x907   :  { %v1046_v50 = vpack.c.bf16 %v1040_v38, %v992_v47  ;;  %v6317_v51 = vpop.f32.mrb[33].mxu1 }
 0x908   :  { %v995_v52 = vpop.f32.mrb[34].mxu1 }
 0x909   :  { %v6318_v54 = vpop.f32.mrb[35].mxu1  ;;  %6328 = vmatmul.mubr.msk.bf16.vlgmr.msra.gmra.mrb[36].mxu1 %vm294_vm2, %v1046_v50 }
 0x90a   :  { %6338 = vmatpush3.bf16.xpose.msra.mxu1 %v1154_v53  ;;  %6339 = vmatprep.mubr.msk.bf16.mxu1 %vm7126_vm0, %v7125_v0 }
 0x90b   :  { %6349 = vmatprep.subr.bf16.mxu1 %v7125_v0 }
 0x911   :  { %6340 = vmatmul.mubr.msk.bf16.vlgmr.msra.gmra.mrb[40].mxu1 %vm294_vm2, %v1147_v55 }
 0x912   :  { %6351 = vmatprep.mubr.msk.bf16.mxu1 %vm7126_vm0, %v7125_v0 }
 0x98e   :  { %v1198_v56 = vpop.xlane.xlu0 %1197 }
 0x98f   :  { %v1202_v57 = vsub.f32 %v1140_v41, %v1198_v56 }
 0x991   :  { %v1204_v58 = vmul.f32 1.442695, %v1202_v57 }
 0x993   :  { %6907 = vpow2.f32 %v1204_v58 }
 0x99d   :  { %v6908_v59 = vpop.eup %6907 }
 0x99e   :  { %v1208_v60 = vsel %vm294_vm2, %v6908_v59, 0.0 }
 0x99f   :  { %1209 = vadd.xlane.f32.xlu0 %v1208_v60 }
 0x9dc   :  { %v1087_v30 = vpop.f32.mrb[36].mxu1 }
 0x9dd   :  { %v1094_v62 = vadd.f32 %v1087_v30, %v7416_v61  ;;  %v6329_v33 = vpop.f32.mrb[37].mxu1 }
 0x9de   :  { %v1090_v1 = vpop.f32.mrb[38].mxu1 }
 0x9df   :  { %v1095_v39 = vadd.f32 %v1090_v1, %v7418_v63  ;;  %v6330_v2 = vpop.f32.mrb[39].mxu1 }
 0x9e4   :  { %v1190_v5 = vpop.f32.mrb[40].mxu1 }
 0x9e5   :  { %v6341_v6 = vpop.f32.mrb[41].mxu1  ;;  %v1199_v7 = vsel %vm294_vm2, %v1190_v5, -inf }
 0x9e6   :  { %1200 = vmax.xlane.f32.xlu1 %v1199_v7  ;;  %v1193_v8 = vpop.f32.mrb[42].mxu1  ;;  %v78_v6 = vld [vmem:[%s8326_s1] sm:$0xff]  ;;  %v79_v7 = vld [vmem:[%s8326_s1 + $0x8] sm:$0xff] }
 0x9e7   :  { %v6342_v9 = vpop.f32.mrb[43].mxu1  ;;  %v7488_v8 = vpack.c.bf16 %v79_v7, %v78_v6 }
 0x9e8   :  { %v80_v9 = vld [vmem:[%s8326_s1 + $0x10] sm:$0xff] }
 0x9f7   :  { %1268 = vrot.lane.b32.xlu1 %v7316_v49, %s7129_s29 }
 0xa2c   :  { %v1210_v15 = vpop.xlane.xlu0 %1209 }
 0xa73   :  { %v1201_v10 = vpop.xlane.xlu1 %1200 }
 0xa74   :  { %v1203_v11 = vsub.f32 %v1190_v5, %v1201_v10  ;;  %v6853_v5 = vld [vmem:[#allocation2 + $0x50] sm:$0xff]   ;;  %v81_v10 = vld [vmem:[%s8326_s1 + $0x18] sm:$0xff] }
 0xa76   :  { %v1206_v12 = vmul.f32 1.442695, %v1203_v11  ;;  %v7496_v11 = vpack.c.bf16 %v81_v10, %v80_v9 }
 0xa77   :  { %v1269_v13 = vpop.permute.xlu1 %1268 }
 0xa78   :  { %6909 = vpow2.f32 %v1206_v12  ;;  %v1274_v61 = vsel %vm414_vm3, %v1269_v13, 0  ;;  %v6855_v12 = vld [vmem:[#allocation2 + $0x40] sm:$0xff]   ;;  %v6856_v13 = vld [vmem:[#allocation2 + $0x48] sm:$0xff]  }
 0xa79   :  { %6350 = vmatpush3.bf16.msra.mxu1 %v1274_v61  ;;  %6911 = vrcp.f32 %v1210_v15  ;;  %v6857_v61 = vld [vmem:[#allocation2 + $0x60] sm:$0xff]  }
 0xa7a   :  { %6361 = vmatprep.subr.bf16.mxu1 %v7125_v0 }
 0xa82   :  { %v6910_v63 = vpop.eup %6909 }
 0xa83   :  { %v1211_v14 = vsel %vm294_vm2, %v6910_v63, 0.0  ;;  %v6912_v49 = vpop.eup %6911 }
 0xa84   :  { %1212 = vadd.xlane.f32.xlu0 %v1211_v14  ;;  %v1216_v18 = vmul.f32 %v6912_v49, %v6908_v59 }
 0xa86   :  { %v1218_v23 = vpack.c.bf16 %v1216_v18, %v1216_v18 }
 0xa9a   :  { %1220 = vrot.lane.b32.xlu0 %v7314_v48, %s7129_s29 }
 0xb11   :  { %v1213_v17 = vpop.xlane.xlu0 %1212 }
 0xb12   :  { %6913 = vrcp.f32 %v1213_v17 }
 0xb15   :  { %v1221_v20 = vpop.permute.xlu0 %1220 }
 0xb16   :  { %v1226_v21 = vsel %vm414_vm3, %v1221_v20, 0  ;;  %v7509_v20 = vld [vmem:[%s8334_s9] sm:$0x7] }
 0xb17   :  { %6344 = vmatpush3.bf16.msra.mxu0 %v1226_v21  ;;  %v7514_v21 = vld [vmem:[%s8335_s10] sm:$0x7] }
 0xb18   :  { %6355 = vmatprep.subr.bf16.mxu0 %v7125_v0 }
 0xb1a   :  { %6346 = vmatmul.mubr.msk.bf16.vlgmr.msra.gmra.mrb[36].mxu0 %vm294_vm2, %v1218_v23  ;;  %v1404_v23 = vrot.slane %v7509_v20, %v7281_v24 }
 0xb1b   :  { %6357 = vmatprep.mubr.msk.bf16.mxu0 %vm7126_vm0, %v7125_v0  ;;  %6356 = vmatpush3.bf16.msra.mxu0 %v1321_v28 }
 0xb1c   :  { %v6914_v25 = vpop.eup %6913  ;;  %6369 = vmatprep.subr.bf16.mxu0 %v6853_v5 }
 0xb1d   :  { %v1217_v48 = vmul.f32 %v6914_v25, %v6910_v63 }
 0xb1f   :  { %v1219_v26 = vpack.c.bf16 %v1217_v48, %v1217_v48 }
 0xb21   :  { %6352 = vmatmul.mubr.msk.bf16.vlgmr.msra.gmra.mrb[44].mxu1 %vm294_vm2, %v1219_v26  ;;  %v1410_v26 = vrot.slane %v7514_v21, %v7281_v24 }
 0xb22   :  { %6365 = vmatprep.mubr.msk.bf16.mxu1 %vm7126_vm0, %v7125_v0  ;;  %6362 = vmatpush3.bf16.msra.mxu1 %v6855_v12 }
 0xb23   :  { %6363 = vmatprep.subr.bf16.mxu1 %v7125_v0 }
 0xb26   :  { %6364 = vmatpush3.bf16.msra.mxu1 %v6856_v13 }
 0xb27   :  { %6377 = vmatprep.subr.bf16.mxu1 %v6857_v61 }
 0xbed   :  { %v1262_v31 = vpop.f32.mrb[36].mxu0 }
 0xbee   :  { %v6347_v32 = vpop.f32.mrb[37].mxu0 }
 0xbef   :  { %v1265_v38 = vpop.f32.mrb[38].mxu0 }
 0xbf0   :  { %v6348_v29 = vpop.f32.mrb[39].mxu0 }
 0xbf4   :  { %v1310_v34 = vpop.f32.mrb[44].mxu1 }
 0xbf5   :  { %v1316_v35 = vpack.c.bf16 %v1310_v34, %v1262_v31  ;;  %v6353_v36 = vpop.f32.mrb[45].mxu1  ;;  %v7527_v34 = vld [vmem:[%s8327_s2] sm:$0xff] }
 0xbf6   :  { %v1313_v37 = vpop.f32.mrb[46].mxu1  ;;  %v7534_v36 = vld [vmem:[%s8327_s2 + $0x8] sm:$0xff] }
 0xbf7   :  { %v6354_v41 = vpop.f32.mrb[47].mxu1  ;;  %6358 = vmatmul.mubr.msk.bf16.vlgmr.msra.gmra.mrb[40].mxu0 %vm294_vm2, %v1316_v35 }
 0xbf8   :  { %6370 = vmatpush3.bf16.msra.mxu0 %v6853_v5  ;;  %6373 = vmatprep.mubr.msk.bf16.mxu0 %vm125_vm1, %v7488_v8 }
 0xcca   :  { %v1357_v44 = vpop.f32.mrb[40].mxu0 }
 0xccb   :  { %v1364_v45 = vadd.f32 %v1357_v44, %v1094_v62  ;;  %v6359_v46 = vpop.f32.mrb[41].mxu0  ;;  %v1499_v44 = vsub.s32 5, %v7268_v16 }
 0xccc   :  { %v1360_v47 = vpop.f32.mrb[42].mxu0 }
 0xccd   :  { %v1370_v50 = vadd.f32 %v1369_v43, %v1364_v45  ;;  %v1365_v51 = vadd.f32 %v1360_v47, %v1095_v39  ;;  %v6360_v52 = vpop.f32.mrb[43].mxu0  ;;  %v1500_v45 = vrot.slane %v7276_v22, %v1499_v44 }
 0xccf   :  { %v1371_v53 = vadd.f32 %v1369_v43, %v1365_v51  ;;  %v1372_v54 = vadd.f32 %v1370_v50, %v7236_v3  ;;  %v6858_v43 = vld [vmem:[#allocation2 + $0x68] sm:$0xff]  }
 0xcd1   :  { %v1374_v55 = vsel %vm125_vm1, %v1372_v54, 0.0  ;;  %v1373_v56 = vadd.f32 %v1371_v53, %v7241_v4  ;;  %v6854_v4 = vld [vmem:[#allocation2 + $0x58] sm:$0xff]  }
 0xcd2   :  { %1375 = vadd.xlane.f32.xlu1 %v1374_v55  ;;  %6371 = vmatprep.subr.bf16.mxu0 %v6854_v4 }
 0xcd3   :  { %v1377_v57 = vsel %vm125_vm1, %v1373_v56, 0.0  ;;  %6372 = vmatpush3.bf16.msra.mxu0 %v6854_v4 }
 0xcd4   :  { %1378 = vadd.xlane.f32.xlu0 %v1377_v57  ;;  %6385 = vmatprep.subr.bf16.mxu0 %v7125_v0 }
 0xcd6   :  { %6374 = vmatmul.mubr.msk.bf16.vlgmr.msra.gmra.mrb[44].mxu0 %vm125_vm1, %v7496_v11 }
 0xcd7   :  { %6387 = vmatprep.mubr.msk.bf16.mxu0 %vm7126_vm0, %v7125_v0 }
 0xd5f   :  { %v1376_v58 = vpop.xlane.xlu1 %1375 }
 0xd60   :  { %v1381_v59 = vmul.f32 0.03125, %v1376_v58 }
 0xd61   :  { %v1379_v60 = vpop.xlane.xlu0 %1378 }
 0xd62   :  { %v1383_v30 = vsub.f32 %v1372_v54, %v1381_v59  ;;  %v1382_v62 = vmul.f32 0.03125, %v1379_v60  ;;  %v1439_v60 = vsub.s32 4, %v7268_v16 }
 0xd64   :  { %v1384_v33 = vsub.f32 %v1373_v56, %v1382_v62  ;;  %v1385_v1 = vmul.f32 %v1383_v30, %v1383_v30 }
 0xd66   :  { %v1387_v39 = vsel %vm125_vm1, %v1385_v1, 0.0  ;;  %v1386_v2 = vmul.f32 %v1384_v33, %v1384_v33 }
 0xd67   :  { %1388 = vadd.xlane.f32.xlu0 %v1387_v39  ;;  %v1570_v39 = vsub.s32 6, %v7268_v16 }
 0xd68   :  { %v1390_v3 = vsel %vm125_vm1, %v1386_v2, 0.0 }
 0xd69   :  { %1391 = vadd.xlane.f32.xlu1 %v1390_v3  ;;  %v1571_v7 = vrot.slane %v7276_v22, %v1570_v39 }
 0xda9   :  { %v6375_v46 = vpop.f32.mrb[44].mxu0 }
 0xdaa   :  { %v1562_v47 = vadd.f32 %v6375_v46, %v1500_v45  ;;  %v1553_v50 = vpop.f32.mrb[45].mxu0 }
 0xdab   :  { %v1554_v51 = vadd.f32 %v1553_v50, %v1500_v45  ;;  %v6376_v52 = vpop.f32.mrb[46].mxu0 }
 0xdac   :  { %v1565_v53 = vadd.f32 %v6376_v52, %v1500_v45  ;;  %v1556_v54 = vpop.f32.mrb[47].mxu0 }
 0xdad   :  { %v1557_v55 = vadd.f32 %v1556_v54, %v1500_v45 }
 0xdae   :  { %v7550_v56 = vpack.c.bf16 %v1565_v53, %v1562_v47 }
 0xdaf   :  { %v7552_v57 = vpack.c.bf16 %v1557_v55, %v1554_v51 }
 0xdb0   :  { %v1689_v58 = vsel %vm294_vm2, %v7550_v56, 0 }
 0xdb1   :  { %v1643_v59 = vsel %vm294_vm2, %v7552_v57, 0 }
 0xdb2   :  { %6386 = vmatpush3.bf16.xpose.msra.mxu0 %v1643_v59 }
 0xdb3   :  { %6397 = vmatprep.subr.bf16.mxu0 %v7125_v0 }
 0xdf4   :  { %v1389_v63 = vpop.xlane.xlu0 %1388 }
 0xdf5   :  { %v1393_v14 = vmul.f32 0.03125, %v1389_v63 }
 0xdf6   :  { %v1392_v15 = vpop.xlane.xlu1 %1391 }
 0xdf7   :  { %v1395_v49 = vadd.f32 1e-05, %v1393_v14  ;;  %v1394_v17 = vmul.f32 0.03125, %v1392_v15 }
 0xdf9   :  { %6915 = vrsqrt.f32 %v1395_v49  ;;  %v1396_v18 = vadd.f32 1e-05, %v1394_v17 }
 0xdfb   :  { %6917 = vrsqrt.f32 %v1396_v18 }
 0xe03   :  { %v6916_v25 = vpop.eup %6915 }
 0xe04   :  { %v1399_v48 = vmul.f32 %v6916_v25, %v1383_v30  ;;  %v1440_v30 = vrot.slane %v7276_v22, %v1439_v60 }
 0xe05   :  { %v6918_v27 = vpop.eup %6917 }
 0xe06   :  { %v1405_v28 = vmul.f32 %v1404_v23, %v1399_v48  ;;  %v1400_v31 = vmul.f32 %v6918_v27, %v1384_v33 }
 0xe08   :  { %v1406_v32 = vmul.f32 %v1404_v23, %v1400_v31  ;;  %v7520_v38 = vadd.f32 %v1410_v26, %v1405_v28 }
 0xe0a   :  { %v7522_v29 = vadd.f32 %v1410_v26, %v1406_v32  ;;  %v1413_v35 = vadd.f32 %v7527_v34, %v7520_v38 }
 0xe0c   :  { %v1414_v37 = vadd.f32 %v7534_v36, %v7522_v29 }
 0xe0e   :  { %v1436_v41 = vpack.c.bf16 %v1414_v37, %v1413_v35 }
 0xe10   :  { %6366 = vmatmul.mubr.msk.bf16.vlgmr.msra.gmra.mrb[48].mxu1 %vm125_vm1, %v1436_v41 }
 0xe11   :  { %6378 = vmatpush3.bf16.msra.mxu1 %v6857_v61  ;;  %6381 = vmatprep.mubr.msk.bf16.mxu1 %vm125_vm1, %v7488_v8 }
 0xe12   :  { %6379 = vmatprep.subr.bf16.mxu1 %v6858_v43 }
 0xe15   :  { %6380 = vmatpush3.bf16.msra.mxu1 %v6858_v43 }
 0xe16   :  { %6391 = vmatprep.subr.bf16.mxu1 %v7125_v0 }
 0xe18   :  { %6382 = vmatmul.mubr.msk.bf16.vlgmr.msra.gmra.mrb[52].mxu1 %vm125_vm1, %v7496_v11 }
 0xe19   :  { %6393 = vmatprep.mubr.msk.bf16.mxu1 %vm7126_vm0, %v7125_v0 }
 0xe1e   :  { %6392 = vmatpush3.bf16.xpose.msra.mxu1 %v1689_v58 }
 0xe1f   :  { %6403 = vmatprep.subr.bf16.mxu1 %v7125_v0 }
 0xee3   :  { %v1490_v62 = vpop.f32.mrb[48].mxu1 }
 0xee4   :  { %v1491_v33 = vadd.f32 %v1490_v62, %v1440_v30  ;;  %v6367_v1 = vpop.f32.mrb[49].mxu1 }
 0xee5   :  { %v1493_v2 = vpop.f32.mrb[50].mxu1 }
 0xee6   :  { %v7565_v3 = vpack.c.bf16 %v1491_v33, %v1491_v33  ;;  %v1494_v5 = vadd.f32 %v1493_v2, %v1440_v30  ;;  %v6368_v4 = vpop.f32.mrb[51].mxu1 }
 0xee8   :  { %v7567_v6 = vpack.c.bf16 %v1494_v5, %v1494_v5  ;;  %6388 = vmatmul.mubr.msk.bf16.vlgmr.msra.gmra.mrb[48].mxu0 %vm294_vm2, %v7565_v3 }
 0xee9   :  { %6399 = vmatprep.mubr.msk.bf16.mxu0 %vm7126_vm0, %v7125_v0 }
 0xeea   :  { %6394 = vmatmul.mubr.msk.bf16.vlgmr.msra.gmra.mrb[56].mxu1 %vm294_vm2, %v7567_v6 }
 0xeeb   :  { %v6383_v9 = vpop.f32.mrb[52].mxu1  ;;  %6405 = vmatprep.mubr.msk.bf16.mxu1 %vm7126_vm0, %v7125_v0 }
 0xeec   :  { %v1627_v10 = vadd.f32 %v6383_v9, %v1571_v7  ;;  %v1618_v12 = vpop.f32.mrb[53].mxu1 }
 0xeed   :  { %v1619_v13 = vadd.f32 %v1618_v12, %v1571_v7  ;;  %v6384_v61 = vpop.f32.mrb[54].mxu1 }
 0xeee   :  { %v1630_v63 = vadd.f32 %v6384_v61, %v1571_v7  ;;  %v1621_v14 = vpop.f32.mrb[55].mxu1 }
 0xeef   :  { %v1622_v15 = vadd.f32 %v1621_v14, %v1571_v7 }
 0xef0   :  { %v7580_v49 = vpack.c.bf16 %v1630_v63, %v1627_v10 }
 0xef1   :  { %v7582_v22 = vpack.c.bf16 %v1622_v15, %v1619_v13 }
 0xef2   :  { %6404 = vmatpush3.bf16.msra.mxu1 %v7580_v49 }
 0xef3   :  { %6398 = vmatpush3.bf16.msra.mxu0 %v7582_v22  ;;  %6415 = vmatprep.subr.bf16.mxu1 %v7125_v0 }
 0xef4   :  { %6409 = vmatprep.subr.bf16.mxu0 %v7125_v0 }
 0xfbb   :  { %v1679_v17 = vpop.f32.mrb[48].mxu0 }
 0xfbc   :  { %v6389_v18 = vpop.f32.mrb[49].mxu0  ;;  %v1732_v23 = vsel %vm1731_vm4, %v1679_v17, -inf }
 0xfbd   :  { %1733 = vmax.xlane.f32.xlu0 %v1732_v23  ;;  %v1682_v25 = vpop.f32.mrb[50].mxu0  ;;  %v1725_v48 = vpop.f32.mrb[56].mxu1 }
 0xfbe   :  { %v6390_v26 = vpop.f32.mrb[51].mxu0  ;;  %v6395_v27 = vpop.f32.mrb[57].mxu1  ;;  %v1735_v28 = vsel %vm1731_vm4, %v1725_v48, -inf }
 0xfbf   :  { %1736 = vmax.xlane.f32.xlu1 %v1735_v28  ;;  %v1728_v31 = vpop.f32.mrb[58].mxu1 }
 0xfc0   :  { %v6396_v32 = vpop.f32.mrb[59].mxu1 }
 0xfd0   :  { %1899 = vrot.lane.b32.xlu1 %v7550_v56, %s7127_s27 }
0x104a   :  { %v1734_v35 = vpop.xlane.xlu0 %1733 }
0x104b   :  { %v1738_v37 = vsub.f32 %v1679_v17, %v1734_v35 }
0x104c   :  { %v1737_v41 = vpop.xlane.xlu1 %1736 }
0x104d   :  { %v1740_v43 = vmul.f32 1.442695, %v1738_v37  ;;  %v1739_v45 = vsub.f32 %v1725_v48, %v1737_v41 }
0x104f   :  { %6919 = vpow2.f32 %v1740_v43  ;;  %v1742_v46 = vmul.f32 1.442695, %v1739_v45 }
0x1050   :  { %v1900_v53 = vpop.permute.xlu1 %1899 }
0x1051   :  { %6921 = vpow2.f32 %v1742_v46  ;;  %v1905_v4 = vsel %vm294_vm2, %v1900_v53, 0 }
0x1059   :  { %v6920_v47 = vpop.eup %6919 }
0x105a   :  { %v1744_v50 = vsel %vm1731_vm4, %v6920_v47, 0.0 }
0x105b   :  { %v6922_v51 = vpop.eup %6921  ;;  %1745 = vadd.xlane.f32.xlu0 %v1744_v50 }
0x105c   :  { %v1747_v52 = vsel %vm1731_vm4, %v6922_v51, 0.0 }
0x105d   :  { %1748 = vadd.xlane.f32.xlu1 %v1747_v52 }
0x106e   :  { %1844 = vrot.lane.b32.xlu1 %v7565_v3, %s7127_s27 }
0x1071   :  { %1847 = vrot.lane.b32.xlu0 %v7552_v57, %s7127_s27 }
0x1072   :  { %1896 = vrot.lane.b32.xlu1 %v7567_v6, %s7127_s27 }
0x10e8   :  { %v1746_v54 = vpop.xlane.xlu0 %1745 }
0x10e9   :  { %6923 = vrcp.f32 %v1746_v54 }
0x10ea   :  { %v1749_v55 = vpop.xlane.xlu1 %1748 }
0x10eb   :  { %6925 = vrcp.f32 %v1749_v55 }
0x10ec   :  { %v1848_v62 = vpop.permute.xlu0 %1847 }
0x10ed   :  { %v1853_v2 = vsel %vm294_vm2, %v1848_v62, 0 }
0x10ee   :  { %v1845_v7 = vpop.permute.xlu1 %1844 }
0x10f2   :  { %v1897_v9 = vpop.permute.xlu1 %1896 }
0x10f3   :  { %v6924_v58 = vpop.eup %6923 }
0x10f4   :  { %v1752_v59 = vmul.f32 %v6924_v58, %v6920_v47 }
0x10f5   :  { %v6926_v30 = vpop.eup %6925 }
0x10f6   :  { %v1754_v33 = vpack.c.bf16 %v1752_v59, %v1752_v59  ;;  %v1753_v1 = vmul.f32 %v6926_v30, %v6922_v51 }
0x10f8   :  { %6400 = vmatmul.mubr.msk.bf16.vlgmr.msra.gmra.mrb[52].mxu0 %vm1731_vm4, %v1754_v33  ;;  %v1755_v5 = vpack.c.bf16 %v1753_v1, %v1753_v1  ;;  %v1432_v33 = vld [vmem:[#allocation2 + $0x74] sm:$0xf] }
0x10f9   :  { %6410 = vmatpush3.bf16.xpose.msra.mxu0 %v1853_v2  ;;  %6411 = vmatprep.mubr.msk.bf16.mxu0 %vm7126_vm0, %v7125_v0 }
0x10fa   :  { %6406 = vmatmul.mubr.msk.bf16.vlgmr.msra.gmra.mrb[60].mxu1 %vm1731_vm4, %v1755_v5  ;;  %6421 = vmatprep.subr.bf16.mxu0 %v7125_v0  ;;  %v2070_v5 = vsel %vm414_vm3, %v1432_v33, 0 }
0x10fb   :  { %6416 = vmatpush3.bf16.xpose.msra.mxu1 %v1905_v4  ;;  %6417 = vmatprep.mubr.msk.bf16.mxu1 %vm7126_vm0, %v7125_v0 }
0x10fc   :  { %6427 = vmatprep.subr.bf16.mxu1 %v7125_v0 }
0x1100   :  { %6412 = vmatmul.mubr.msk.bf16.vlgmr.msra.gmra.mrb[56].mxu0 %vm294_vm2, %v1845_v7  ;;  %v1431_v7 = vld [vmem:[#allocation2 + $0x70] sm:$0xf] }
0x1101   :  { %6423 = vmatprep.mubr.msk.bf16.mxu0 %vm7126_vm0, %v7125_v0 }
0x1102   :  { %6418 = vmatmul.mubr.msk.bf16.vlgmr.msra.gmra.mrb[64].mxu1 %vm294_vm2, %v1897_v9 }
0x1103   :  { %6429 = vmatprep.mubr.msk.bf16.mxu1 %vm7126_vm0, %v7125_v0 }
0x11cb   :  { %v7616_v10 = vpop.f32.mrb[52].mxu0 }
0x11cc   :  { %v6401_v12 = vpop.f32.mrb[53].mxu0 }
0x11cd   :  { %v1796_v13 = vpop.f32.mrb[54].mxu0  ;;  %v7618_v61 = vpop.f32.mrb[60].mxu1 }
0x11ce   :  { %v1842_v63 = vpack.c.bf16 %v7618_v61, %v7616_v10  ;;  %v6402_v14 = vpop.f32.mrb[55].mxu0  ;;  %v6407_v15 = vpop.f32.mrb[61].mxu1  ;;  %v2117_v13 = vsel %vm414_vm3, %v1431_v7, 0 }
0x11cf   :  { %v1839_v17 = vpop.f32.mrb[62].mxu1 }
0x11d0   :  { %v6408_v18 = vpop.f32.mrb[63].mxu1 }
0x11d3   :  { %v1889_v23 = vpop.f32.mrb[56].mxu0 }
0x11d4   :  { %v6413_v25 = vpop.f32.mrb[57].mxu0  ;;  %v1947_v48 = vsel %vm1731_vm4, %v1889_v23, -inf }
0x11d5   :  { %v1941_v26 = vpop.f32.mrb[64].mxu1  ;;  %1948 = vmax.xlane.f32.xlu0 %v1947_v48  ;;  %v1892_v27 = vpop.f32.mrb[58].mxu0 }
0x11d6   :  { %v6414_v28 = vpop.f32.mrb[59].mxu0  ;;  %v6419_v31 = vpop.f32.mrb[65].mxu1  ;;  %v1950_v32 = vsel %vm1731_vm4, %v1941_v26, -inf }
0x11d7   :  { %1951 = vmax.xlane.f32.xlu1 %v1950_v32  ;;  %v1944_v35 = vpop.f32.mrb[66].mxu1 }
0x11d8   :  { %v6420_v37 = vpop.f32.mrb[67].mxu1 }
0x11e8   :  { %2019 = vrot.lane.b32.xlu1 %v7580_v49, %s7127_s27 }
0x11ec   :  { %2162 = vrot.lane.b32.xlu1 %v7552_v57, %s7128_s28 }
0x11f0   :  { %2212 = vrot.lane.b32.xlu1 %v7550_v56, %s7128_s28 }
0x11f4   :  { %2210 = vrot.lane.b32.xlu1 %v7567_v6, %s7128_s28 }
0x1262   :  { %v1949_v41 = vpop.xlane.xlu0 %1948 }
0x1263   :  { %v1953_v43 = vsub.f32 %v1889_v23, %v1949_v41 }
0x1264   :  { %v1952_v45 = vpop.xlane.xlu1 %1951 }
0x1265   :  { %v1955_v46 = vmul.f32 1.442695, %v1953_v43  ;;  %v1954_v47 = vsub.f32 %v1941_v26, %v1952_v45 }
0x1267   :  { %6927 = vpow2.f32 %v1955_v46  ;;  %v1957_v50 = vmul.f32 1.442695, %v1954_v47 }
0x1268   :  { %v2020_v51 = vpop.permute.xlu1 %2019 }
0x1269   :  { %6929 = vpow2.f32 %v1957_v50  ;;  %6428 = vmatpush3.bf16.msra.mxu1 %v2020_v51 }
0x126a   :  { %6439 = vmatprep.subr.bf16.mxu1 %v7125_v0 }
0x126c   :  { %v2163_v14 = vpop.permute.xlu1 %2162 }
0x126d   :  { %v2168_v28 = vsel %vm294_vm2, %v2163_v14, 0 }
0x1270   :  { %v2213_v15 = vpop.permute.xlu1 %2212 }
0x1271   :  { %v6928_v52 = vpop.eup %6927  ;;  %v2218_v17 = vsel %vm294_vm2, %v2213_v15, 0 }
0x1272   :  { %v1959_v53 = vsel %vm1731_vm4, %v6928_v52, 0.0 }
0x1273   :  { %v6930_v54 = vpop.eup %6929  ;;  %1960 = vadd.xlane.f32.xlu0 %v1959_v53 }
0x1274   :  { %v1962_v55 = vsel %vm1731_vm4, %v6930_v54, 0.0  ;;  %v2211_v18 = vpop.permute.xlu1 %2210 }
0x1277   :  { %1963 = vadd.xlane.f32.xlu0 %v1962_v55 }
0x128d   :  { %1972 = vrot.lane.b32.xlu0 %v7582_v22, %s7127_s27 }
0x1291   :  { %2160 = vrot.lane.b32.xlu0 %v7565_v3, %s7128_s28 }
0x1300   :  { %v1961_v58 = vpop.xlane.xlu0 %1960 }
0x1301   :  { %6931 = vrcp.f32 %v1961_v58 }
0x1304   :  { %v1964_v59 = vpop.xlane.xlu0 %1963 }
0x1305   :  { %6933 = vrcp.f32 %v1964_v59 }
0x1308   :  { %v1973_v30 = vpop.permute.xlu0 %1972 }
0x1309   :  { %6422 = vmatpush3.bf16.msra.mxu0 %v1973_v30 }
0x130a   :  { %6433 = vmatprep.subr.bf16.mxu0 %v7125_v0 }
0x130b   :  { %v6932_v62 = vpop.eup %6931 }
0x130c   :  { %v1967_v1 = vmul.f32 %v6932_v62, %v6928_v52  ;;  %v2161_v37 = vpop.permute.xlu0 %2160 }
0x130e   :  { %v1969_v2 = vpack.c.bf16 %v1967_v1, %v1967_v1 }
0x130f   :  { %v6934_v4 = vpop.eup %6933 }
0x1310   :  { %6424 = vmatmul.mubr.msk.bf16.vlgmr.msra.gmra.mrb[60].mxu0 %vm1731_vm4, %v1969_v2  ;;  %v1968_v9 = vmul.f32 %v6934_v4, %v6930_v54 }
0x1311   :  { %6434 = vmatpush3.bf16.msra.mxu0 %v2070_v5  ;;  %6435 = vmatprep.mubr.msk.bf16.mxu0 %vm7126_vm0, %v7125_v0 }
0x1312   :  { %v1970_v12 = vpack.c.bf16 %v1968_v9, %v1968_v9  ;;  %6445 = vmatprep.subr.bf16.mxu0 %v7125_v0 }
0x1314   :  { %6430 = vmatmul.mubr.msk.bf16.vlgmr.msra.gmra.mrb[68].mxu1 %vm1731_vm4, %v1970_v12 }
0x1315   :  { %6440 = vmatpush3.bf16.msra.mxu1 %v2117_v13  ;;  %6441 = vmatprep.mubr.msk.bf16.mxu1 %vm7126_vm0, %v7125_v0 }
0x1316   :  { %6451 = vmatprep.subr.bf16.mxu1 %v7125_v0 }
0x131c   :  { %6442 = vmatmul.mubr.msk.bf16.vlgmr.msra.gmra.mrb[72].mxu1 %vm294_vm2, %v1842_v63 }
0x131d   :  { %6453 = vmatprep.mubr.msk.bf16.mxu1 %vm7126_vm0, %v7125_v0 }
0x131e   :  { %6452 = vmatpush3.bf16.xpose.msra.mxu1 %v2218_v17 }
0x131f   :  { %6463 = vmatprep.subr.bf16.mxu1 %v7125_v0 }
0x1325   :  { %6454 = vmatmul.mubr.msk.bf16.vlgmr.msra.gmra.mrb[76].mxu1 %vm294_vm2, %v2211_v18 }
0x1326   :  { %6465 = vmatprep.mubr.msk.bf16.mxu1 %vm7126_vm0, %v7125_v0 }
0x13e3   :  { %v2012_v23 = vpop.f32.mrb[60].mxu0 }
0x13e4   :  { %v6425_v25 = vpop.f32.mrb[61].mxu0 }
0x13e5   :  { %v2015_v48 = vpop.f32.mrb[62].mxu0 }
0x13e6   :  { %v6426_v10 = vpop.f32.mrb[63].mxu0 }
0x13e7   :  { %v2059_v61 = vpop.f32.mrb[68].mxu1 }
0x13e8   :  { %v2065_v63 = vpack.c.bf16 %v2059_v61, %v2012_v23  ;;  %v6431_v26 = vpop.f32.mrb[69].mxu1 }
0x13e9   :  { %v2062_v27 = vpop.f32.mrb[70].mxu1 }
0x13ea   :  { %v6432_v31 = vpop.f32.mrb[71].mxu1  ;;  %6436 = vmatmul.mubr.msk.bf16.vlgmr.msra.gmra.mrb[64].mxu0 %vm294_vm2, %v2065_v63 }
0x13eb   :  { %6446 = vmatpush3.bf16.xpose.msra.mxu0 %v2168_v28  ;;  %6447 = vmatprep.mubr.msk.bf16.mxu0 %vm7126_vm0, %v7125_v0 }
0x13ec   :  { %6457 = vmatprep.subr.bf16.mxu0 %v7125_v0 }
0x13ef   :  { %v2153_v32 = vpop.f32.mrb[72].mxu1 }
0x13f0   :  { %v6443_v35 = vpop.f32.mrb[73].mxu1 }
0x13f1   :  { %v2156_v41 = vpop.f32.mrb[74].mxu1 }
0x13f2   :  { %v6444_v43 = vpop.f32.mrb[75].mxu1  ;;  %6448 = vmatmul.mubr.msk.bf16.vlgmr.msra.gmra.mrb[68].mxu0 %vm294_vm2, %v2161_v37 }
0x13f3   :  { %6459 = vmatprep.mubr.msk.bf16.mxu0 %vm7126_vm0, %v7125_v0 }
0x13f8   :  { %v2254_v45 = vpop.f32.mrb[76].mxu1 }
0x13f9   :  { %v6455_v46 = vpop.f32.mrb[77].mxu1  ;;  %v2263_v47 = vsel %vm1731_vm4, %v2254_v45, -inf }
0x13fa   :  { %2264 = vmax.xlane.f32.xlu1 %v2263_v47  ;;  %v2257_v50 = vpop.f32.mrb[78].mxu1 }
0x13fb   :  { %v6456_v51 = vpop.f32.mrb[79].mxu1 }
0x140b   :  { %2330 = vrot.lane.b32.xlu1 %v7580_v49, %s7128_s28 }
0x140f   :  { %2428 = vrot.lane.b32.xlu1 %v7552_v57, %s7129_s29 }
0x1413   :  { %2478 = vrot.lane.b32.xlu1 %v7550_v56, %s7129_s29 }
0x1417   :  { %2476 = vrot.lane.b32.xlu1 %v7567_v6, %s7129_s29 }
0x1487   :  { %v2265_v52 = vpop.xlane.xlu1 %2264 }
0x1488   :  { %v2267_v54 = vsub.f32 %v2254_v45, %v2265_v52 }
0x148a   :  { %v2270_v55 = vmul.f32 1.442695, %v2267_v54 }
0x148b   :  { %v2331_v53 = vpop.permute.xlu1 %2330 }
0x148c   :  { %6464 = vmatpush3.bf16.msra.mxu1 %v2331_v53  ;;  %6935 = vpow2.f32 %v2270_v55 }
0x148d   :  { %6475 = vmatprep.subr.bf16.mxu1 %v7125_v0 }
0x148f   :  { %v2429_v25 = vpop.permute.xlu1 %2428 }
0x1490   :  { %v2434_v10 = vsel %vm294_vm2, %v2429_v25, 0 }
0x1493   :  { %v2479_v52 = vpop.permute.xlu1 %2478 }
0x1496   :  { %v6936_v2 = vpop.eup %6935 }
0x1497   :  { %v2275_v7 = vsel %vm1731_vm4, %v6936_v2, 0.0 }
0x14bd   :  { %v2106_v58 = vpop.f32.mrb[64].mxu0 }
0x14be   :  { %v7679_v59 = vadd.f32 %v2153_v32, %v2106_v58  ;;  %v6437_v30 = vpop.f32.mrb[65].mxu0 }
0x14bf   :  { %v2109_v62 = vpop.f32.mrb[66].mxu0  ;;  %v2484_v30 = vsel %vm294_vm2, %v2479_v52, 0 }
0x14c0   :  { %v7681_v57 = vadd.f32 %v2156_v41, %v2109_v62  ;;  %v6438_v33 = vpop.f32.mrb[67].mxu0  ;;  %v1433_v41 = vld [vmem:[#allocation2 + $0x78] sm:$0xf] }
0x14c1   :  { %v2381_v43 = vsel %vm414_vm3, %v1433_v41, 0  ;;  %v2477_v33 = vpop.permute.xlu1 %2476 }
0x14c5   :  { %v2204_v56 = vpop.f32.mrb[68].mxu0 }
0x14c6   :  { %v6449_v1 = vpop.f32.mrb[69].mxu0  ;;  %v2260_v6 = vsel %vm1731_vm4, %v2204_v56, -inf }
0x14c7   :  { %2261 = vmax.xlane.f32.xlu0 %v2260_v6  ;;  %v2207_v5 = vpop.f32.mrb[70].mxu0 }
0x14c8   :  { %v6450_v4 = vpop.f32.mrb[71].mxu0 }
0x14cb   :  { %2276 = vadd.xlane.f32.xlu0 %v2275_v7 }
0x1554   :  { %v2262_v9 = vpop.xlane.xlu0 %2261 }
0x1555   :  { %v2266_v12 = vsub.f32 %v2204_v56, %v2262_v9 }
0x1557   :  { %v2268_v13 = vmul.f32 1.442695, %v2266_v12 }
0x1558   :  { %v2277_v14 = vpop.xlane.xlu0 %2276 }
0x1559   :  { %6937 = vpow2.f32 %v2268_v13 }
0x155a   :  { %6939 = vrcp.f32 %v2277_v14 }
0x1563   :  { %v6938_v15 = vpop.eup %6937 }
0x1564   :  { %v6940_v17 = vpop.eup %6939  ;;  %v2272_v18 = vsel %vm1731_vm4, %v6938_v15, 0.0 }
0x1565   :  { %2273 = vadd.xlane.f32.xlu0 %v2272_v18  ;;  %v2281_v23 = vmul.f32 %v6940_v17, %v6936_v2 }
0x1567   :  { %v2283_v48 = vpack.c.bf16 %v2281_v23, %v2281_v23 }
0x1569   :  { %6466 = vmatmul.mubr.msk.bf16.vlgmr.msra.gmra.mrb[80].mxu1 %vm1731_vm4, %v2283_v48 }
0x156a   :  { %6476 = vmatpush3.bf16.xpose.msra.mxu1 %v2434_v10  ;;  %6477 = vmatprep.mubr.msk.bf16.mxu1 %vm7126_vm0, %v7125_v0 }
0x156b   :  { %6487 = vmatprep.subr.bf16.mxu1 %v7125_v0 }
0x157b   :  { %2284 = vrot.lane.b32.xlu0 %v7582_v22, %s7128_s28 }
0x157f   :  { %2426 = vrot.lane.b32.xlu0 %v7565_v3, %s7129_s29 }
0x15f2   :  { %v2274_v61 = vpop.xlane.xlu0 %2273 }
0x15f3   :  { %6941 = vrcp.f32 %v2274_v61 }
0x15f6   :  { %v2285_v63 = vpop.permute.xlu0 %2284 }
0x15f7   :  { %6458 = vmatpush3.bf16.msra.mxu0 %v2285_v63 }
0x15f8   :  { %6469 = vmatprep.subr.bf16.mxu0 %v7125_v0 }
0x15fa   :  { %v2427_v26 = vpop.permute.xlu0 %2426 }
0x15fb   :  { %6478 = vmatmul.mubr.msk.bf16.vlgmr.msra.gmra.mrb[84].mxu1 %vm294_vm2, %v2427_v26 }
0x15fc   :  { %6489 = vmatprep.mubr.msk.bf16.mxu1 %vm7126_vm0, %v7125_v0 }
0x15fd   :  { %v6942_v27 = vpop.eup %6941 }
0x15fe   :  { %v2280_v28 = vmul.f32 %v6942_v27, %v6938_v15 }
0x1600   :  { %v2282_v31 = vpack.c.bf16 %v2280_v28, %v2280_v28 }
0x1602   :  { %6460 = vmatmul.mubr.msk.bf16.vlgmr.msra.gmra.mrb[72].mxu0 %vm1731_vm4, %v2282_v31 }
0x1603   :  { %6471 = vmatprep.mubr.msk.bf16.mxu0 %vm7126_vm0, %v7125_v0  ;;  %6470 = vmatpush3.bf16.msra.mxu0 %v2381_v43 }
0x1604   :  { %6481 = vmatprep.subr.bf16.mxu0 %v7125_v0 }
0x163c   :  { %v2370_v3 = vpop.f32.mrb[80].mxu1 }
0x163d   :  { %v6467_v32 = vpop.f32.mrb[81].mxu1 }
0x163e   :  { %v2373_v35 = vpop.f32.mrb[82].mxu1 }
0x163f   :  { %v6468_v37 = vpop.f32.mrb[83].mxu1 }
0x16ce   :  { %v2470_v45 = vpop.f32.mrb[84].mxu1 }
0x16cf   :  { %v6479_v46 = vpop.f32.mrb[85].mxu1  ;;  %v2526_v47 = vsel %vm1731_vm4, %v2470_v45, -inf }
0x16d0   :  { %2527 = vmax.xlane.f32.xlu0 %v2526_v47  ;;  %v2473_v50 = vpop.f32.mrb[86].mxu1 }
0x16d1   :  { %v6480_v51 = vpop.f32.mrb[87].mxu1 }
0x16d5   :  { %v2324_v53 = vpop.f32.mrb[72].mxu0 }
0x16d6   :  { %v2376_v54 = vpack.c.bf16 %v2370_v3, %v2324_v53  ;;  %v6461_v55 = vpop.f32.mrb[73].mxu0 }
0x16d7   :  { %v2327_v58 = vpop.f32.mrb[74].mxu0  ;;  %v2694_v55 = vsub.s32 7, %v7268_v16 }
0x16d8   :  { %v6462_v62 = vpop.f32.mrb[75].mxu0  ;;  %6472 = vmatmul.mubr.msk.bf16.vlgmr.msra.gmra.mrb[76].mxu0 %vm294_vm2, %v2376_v54  ;;  %v7041_v58 = vld [vmem:[%s8329_s4] sm:$0xff] }
0x16d9   :  { %6482 = vmatpush3.bf16.xpose.msra.mxu0 %v2484_v30  ;;  %6483 = vmatprep.mubr.msk.bf16.mxu0 %vm7126_vm0, %v7125_v0  ;;  %v2695_v30 = vrot.slane %v7041_v58, %v2694_v55 }
0x16da   :  { %6493 = vmatprep.subr.bf16.mxu0 %v7125_v0 }
0x16e0   :  { %6484 = vmatmul.mubr.msk.bf16.vlgmr.msra.gmra.mrb[80].mxu0 %vm294_vm2, %v2477_v33 }
0x16e1   :  { %6495 = vmatprep.mubr.msk.bf16.mxu0 %vm7126_vm0, %v7125_v0 }
0x175d   :  { %v2528_v56 = vpop.xlane.xlu0 %2527 }
0x175e   :  { %v2532_v1 = vsub.f32 %v2470_v45, %v2528_v56 }
0x1760   :  { %v2534_v6 = vmul.f32 1.442695, %v2532_v1 }
0x1762   :  { %6943 = vpow2.f32 %v2534_v6 }
0x176c   :  { %v6944_v2 = vpop.eup %6943 }
0x176d   :  { %v2538_v5 = vsel %vm1731_vm4, %v6944_v2, 0.0 }
0x176e   :  { %2539 = vadd.xlane.f32.xlu0 %v2538_v5 }
0x17ab   :  { %v2417_v4 = vpop.f32.mrb[76].mxu0 }
0x17ac   :  { %v2424_v7 = vadd.f32 %v2417_v4, %v7679_v59  ;;  %v6473_v9 = vpop.f32.mrb[77].mxu0 }
0x17ad   :  { %v2420_v12 = vpop.f32.mrb[78].mxu0 }
0x17ae   :  { %v2425_v13 = vadd.f32 %v2420_v12, %v7681_v57  ;;  %v6474_v14 = vpop.f32.mrb[79].mxu0 }
0x17b3   :  { %v2520_v15 = vpop.f32.mrb[80].mxu0 }
0x17b4   :  { %v6485_v17 = vpop.f32.mrb[81].mxu0  ;;  %v2529_v18 = vsel %vm1731_vm4, %v2520_v15, -inf }
0x17b5   :  { %2530 = vmax.xlane.f32.xlu1 %v2529_v18  ;;  %v2523_v23 = vpop.f32.mrb[82].mxu0 }
0x17b6   :  { %v6486_v25 = vpop.f32.mrb[83].mxu0 }
0x17c6   :  { %2596 = vrot.lane.b32.xlu1 %v7580_v49, %s7129_s29 }
0x17fb   :  { %v2540_v26 = vpop.xlane.xlu0 %2539 }
0x1842   :  { %v2531_v48 = vpop.xlane.xlu1 %2530 }
0x1843   :  { %v2533_v10 = vsub.f32 %v2520_v15, %v2531_v48 }
0x1845   :  { %v2536_v61 = vmul.f32 1.442695, %v2533_v10 }
0x1846   :  { %v2597_v63 = vpop.permute.xlu1 %2596 }
0x1847   :  { %6945 = vpow2.f32 %v2536_v61  ;;  %6494 = vmatpush3.bf16.msra.mxu0 %v2597_v63  ;;  %v6860_v63 = vld [vmem:[%s8330_s5 + $0x8] sm:$0xff]  }
0x1848   :  { %6505 = vmatprep.subr.bf16.mxu0 %v7125_v0  ;;  %6947 = vrcp.f32 %v2540_v26 }
0x1851   :  { %v6946_v59 = vpop.eup %6945 }
0x1852   :  { %v2541_v57 = vsel %vm1731_vm4, %v6946_v59, 0.0  ;;  %v6948_v27 = vpop.eup %6947 }
0x1853   :  { %2542 = vadd.xlane.f32.xlu0 %v2541_v57  ;;  %v2546_v49 = vmul.f32 %v6948_v27, %v6944_v2  ;;  %v6862_v57 = vld [vmem:[%s8332_s7 + $0x8] sm:$0xff]  }
0x1855   :  { %v2548_v3 = vpack.c.bf16 %v2546_v49, %v2546_v49 }
0x1869   :  { %2550 = vrot.lane.b32.xlu0 %v7582_v22, %s7129_s29  ;;  %v1434_v22 = vld [vmem:[#allocation2 + $0x7c] sm:$0xf] }
0x186a   :  { %v2647_v41 = vsel %vm414_vm3, %v1434_v22, 0 }
0x18e0   :  { %v2543_v28 = vpop.xlane.xlu0 %2542 }
0x18e1   :  { %6949 = vrcp.f32 %v2543_v28 }
0x18e4   :  { %v2551_v31 = vpop.permute.xlu0 %2550 }
0x18e5   :  { %6488 = vmatpush3.bf16.msra.mxu1 %v2551_v31 }
0x18e6   :  { %6499 = vmatprep.subr.bf16.mxu1 %v7125_v0 }
0x18e8   :  { %6490 = vmatmul.mubr.msk.bf16.vlgmr.msra.gmra.mrb[88].mxu1 %vm1731_vm4, %v2548_v3 }
0x18e9   :  { %6501 = vmatprep.mubr.msk.bf16.mxu1 %vm7126_vm0, %v7125_v0  ;;  %6500 = vmatpush3.bf16.msra.mxu1 %v2647_v41 }
0x18ea   :  { %6513 = vmatprep.subr.bf16.mxu1 %v7125_v0 }
0x18eb   :  { %v6950_v32 = vpop.eup %6949 }
0x18ec   :  { %v2547_v35 = vmul.f32 %v6950_v32, %v6946_v59  ;;  %v6861_v59 = vld [vmem:[%s8332_s7] sm:$0xff]   ;;  %v2729_v32 = vrot.slane %v7509_v20, %v7271_v19  ;;  %v6863_v20 = vld [vmem:[%s8332_s7 + $0x10] sm:$0xff]  }
0x18ee   :  { %v2549_v37 = vpack.c.bf16 %v2547_v35, %v2547_v35 }
0x18f0   :  { %6496 = vmatmul.mubr.msk.bf16.vlgmr.msra.gmra.mrb[84].mxu0 %vm1731_vm4, %v2549_v37 }
0x18f1   :  { %6509 = vmatprep.mubr.msk.bf16.mxu0 %vm7126_vm0, %v7125_v0 }
0x19bb   :  { %v2590_v43 = vpop.f32.mrb[88].mxu1 }
0x19bc   :  { %v6491_v45 = vpop.f32.mrb[89].mxu1 }
0x19bd   :  { %v2593_v46 = vpop.f32.mrb[90].mxu1  ;;  %v2735_v45 = vrot.slane %v7514_v21, %v7271_v19  ;;  %v6864_v21 = vld [vmem:[%s8332_s7 + $0x18] sm:$0xff]  }
0x19be   :  { %v6492_v47 = vpop.f32.mrb[91].mxu1 }
0x19c3   :  { %v2636_v50 = vpop.f32.mrb[84].mxu0 }
0x19c4   :  { %v2642_v51 = vpack.c.bf16 %v2636_v50, %v2590_v43  ;;  %v6497_v52 = vpop.f32.mrb[85].mxu0 }
0x19c5   :  { %v2639_v53 = vpop.f32.mrb[86].mxu0  ;;  %v5902_v52 = vld [vmem:[%s8331_s6] ss:$0 sm:$0xff] }
0x19c6   :  { %v6498_v54 = vpop.f32.mrb[87].mxu0  ;;  %6502 = vmatmul.mubr.msk.bf16.vlgmr.msra.gmra.mrb[92].mxu1 %vm294_vm2, %v2642_v51 }
0x19c7   :  { %6521 = vmatprep.mubr.msk.bf16.mxu1 %vm7126_vm0, %v7125_v0  ;;  %6514 = vmatpush3.bf16.msra.mxu1 %v6861_v59 }
0x19c8   :  { %6515 = vmatprep.subr.bf16.mxu1 %v7125_v0 }
0x19cb   :  { %6516 = vmatpush3.bf16.msra.mxu1 %v6862_v57 }
0x19cc   :  { %6517 = vmatprep.subr.bf16.mxu1 %v7125_v0 }
0x19cf   :  { %6518 = vmatpush3.bf16.msra.mxu1 %v6863_v20 }
0x19d0   :  { %6519 = vmatprep.subr.bf16.mxu1 %v7125_v0 }
0x19d3   :  { %6520 = vmatpush3.bf16.msra.mxu1 %v6864_v21 }
0x19d4   :  { %6541 = vmatprep.subr.bf16.mxu1 %v7125_v0 }
0x1a99   :  { %v2683_v62 = vpop.f32.mrb[92].mxu1 }
0x1a9a   :  { %v2690_v33 = vadd.f32 %v2683_v62, %v2424_v7  ;;  %v6503_v56 = vpop.f32.mrb[93].mxu1 }
0x1a9b   :  { %v2686_v1 = vpop.f32.mrb[94].mxu1 }
0x1a9c   :  { %v2696_v6 = vadd.f32 %v2695_v30, %v2690_v33  ;;  %v2691_v2 = vadd.f32 %v2686_v1, %v2425_v13  ;;  %v6504_v5 = vpop.f32.mrb[95].mxu1 }
0x1a9e   :  { %v2697_v4 = vadd.f32 %v2695_v30, %v2691_v2  ;;  %v2698_v9 = vadd.f32 %v2696_v6, %v7520_v38  ;;  %v5906_v2 = vld [vmem:[#allocation5] ss:$0 sm:$0xff] }
0x1aa0   :  { %v2700_v12 = vsel %vm125_vm1, %v2698_v9, 0.0  ;;  %v2699_v14 = vadd.f32 %v2697_v4, %v7522_v29  ;;  %v6859_v29 = vld [vmem:[%s8330_s5] sm:$0xff]  }
0x1aa1   :  { %2701 = vadd.xlane.f32.xlu1 %v2700_v12  ;;  %6506 = vmatpush3.bf16.msra.mxu0 %v6859_v29 }
0x1aa2   :  { %v2703_v15 = vsel %vm125_vm1, %v2699_v14, 0.0  ;;  %6507 = vmatprep.subr.bf16.mxu0 %v7125_v0 }
0x1aa3   :  { %2704 = vadd.xlane.f32.xlu0 %v2703_v15 }
0x1aa5   :  { %6508 = vmatpush3.bf16.msra.mxu0 %v6860_v63 }
0x1aa6   :  { %6525 = vmatprep.subr.bf16.mxu0 %v7125_v0 }
0x1b2e   :  { %v2702_v17 = vpop.xlane.xlu1 %2701 }
0x1b2f   :  { %v2706_v18 = vmul.f32 0.03125, %v2702_v17 }
0x1b30   :  { %v2705_v23 = vpop.xlane.xlu0 %2704 }
0x1b31   :  { %v2708_v7 = vsub.f32 %v2698_v9, %v2706_v18  ;;  %v2707_v25 = vmul.f32 0.03125, %v2705_v23 }
0x1b33   :  { %v2709_v48 = vsub.f32 %v2699_v14, %v2707_v25  ;;  %v2710_v10 = vmul.f32 %v2708_v7, %v2708_v7 }
0x1b35   :  { %v2712_v13 = vsel %vm125_vm1, %v2710_v10, 0.0  ;;  %v2711_v61 = vmul.f32 %v2709_v48, %v2709_v48 }
0x1b36   :  { %2713 = vadd.xlane.f32.xlu0 %v2712_v13 }
0x1b37   :  { %v2715_v38 = vsel %vm125_vm1, %v2711_v61, 0.0 }
0x1b38   :  { %2716 = vadd.xlane.f32.xlu1 %v2715_v38 }
0x1bc3   :  { %v2714_v26 = vpop.xlane.xlu0 %2713 }
0x1bc4   :  { %v2718_v27 = vmul.f32 0.03125, %v2714_v26  ;;  %v6865_v26 = vld [vmem:[#allocation2 + $0xa0] sm:$0xff]  }
0x1bc5   :  { %v2717_v28 = vpop.xlane.xlu1 %2716 }
0x1bc6   :  { %v2720_v49 = vadd.f32 1e-05, %v2718_v27  ;;  %v2719_v31 = vmul.f32 0.03125, %v2717_v28  ;;  %v6866_v27 = vld [vmem:[#allocation2 + $0x80] sm:$0xff]   ;;  %v6867_v28 = vld [vmem:[#allocation2 + $0xa8] sm:$0xff]  }
0x1bc8   :  { %6951 = vrsqrt.f32 %v2720_v49  ;;  %v2721_v3 = vadd.f32 1e-05, %v2719_v31  ;;  %v6868_v49 = vld [vmem:[#allocation2 + $0x88] sm:$0xff]  }
0x1bca   :  { %6953 = vrsqrt.f32 %v2721_v3 }
0x1bd2   :  { %v6952_v35 = vpop.eup %6951 }
0x1bd3   :  { %v2724_v37 = vmul.f32 %v6952_v35, %v2708_v7 }
0x1bd4   :  { %v6954_v22 = vpop.eup %6953 }
0x1bd5   :  { %v2730_v41 = vmul.f32 %v2729_v32, %v2724_v37  ;;  %v2725_v43 = vmul.f32 %v6954_v22, %v2709_v48 }
0x1bd7   :  { %v2731_v46 = vmul.f32 %v2729_v32, %v2725_v43  ;;  %v2736_v47 = vadd.f32 %v2735_v45, %v2730_v41  ;;  %v7042_v41 = vld [vmem:[%s8334_s9] sm:$0x7] }
0x1bd8   :  { %v2924_v43 = vrot.slane %v7042_v41, %v7310_v40 }
0x1bd9   :  { %v2737_v50 = vadd.f32 %v2735_v45, %v2731_v46 }
0x1bdb   :  { %v2742_v51 = vpack.c.bf16 %v2737_v50, %v2736_v47 }
0x1bdd   :  { %6510 = vmatmul.mubr.msk.bf16.vlgmr.msra.gmra.mrb[88].mxu0 %vm125_vm1, %v2742_v51 }
0x1bde   :  { %6529 = vmatprep.mubr.msk.bf16.mxu0 %vm7126_vm0, %v7125_v0  ;;  %6526 = vmatpush3.bf16.msra.mxu0 %v6866_v27 }
0x1bdf   :  { %6527 = vmatprep.subr.bf16.mxu0 %v7125_v0 }
0x1be2   :  { %6528 = vmatpush3.bf16.msra.mxu0 %v6868_v49 }
0x1be3   :  { %6533 = vmatprep.subr.bf16.mxu0 %v7125_v0 }
0x1cb0   :  { %v2799_v53 = vpop.f32.mrb[88].mxu0 }
0x1cb1   :  { %v2800_v54 = vadd.f32 %v5902_v52, %v2799_v53  ;;  %v6511_v58 = vpop.f32.mrb[89].mxu0 }
0x1cb2   :  { %v2802_v30 = vpop.f32.mrb[90].mxu0 }
0x1cb3   :  { %v2803_v62 = vadd.f32 %v5902_v52, %v2802_v30  ;;  %v6512_v33 = vpop.f32.mrb[91].mxu0  ;;  %v2806_v56 = vmax.f32 %v2800_v54, 0.0 }
0x1cb4   :  { %v6869_v33 = vld [vmem:[#allocation2 + $0x90] sm:$0xff]  }
0x1cb5   :  { %v2807_v1 = vmax.f32 %v2803_v62, 0.0 }
0x1cb7   :  { %v2816_v6 = vpack.c.bf16 %v2807_v1, %v2806_v56  ;;  %v6870_v1 = vld [vmem:[#allocation2 + $0x98] sm:$0xff]  }
0x1cb9   :  { %6522 = vmatmul.mubr.msk.bf16.vlgmr.msra.gmra.mrb[96].mxu1 %vm2848_vm5, %v2816_v6 }
0x1cba   :  { %6545 = vmatprep.mubr.msk.bf16.mxu1 %vm7126_vm0, %v7125_v0  ;;  %6542 = vmatpush3.bf16.msra.mxu1 %v6865_v26 }
0x1cbb   :  { %6543 = vmatprep.subr.bf16.mxu1 %v7125_v0 }
0x1cbe   :  { %6544 = vmatpush3.bf16.msra.mxu1 %v6867_v28 }
0x1cbf   :  { %6555 = vmatprep.subr.bf16.mxu1 %v7125_v0 }
0x1d8c   :  { %v2886_v5 = vpop.f32.mrb[96].mxu1 }
0x1d8d   :  { %v2887_v4 = vadd.f32 %v5906_v2, %v2886_v5  ;;  %v6523_v9 = vpop.f32.mrb[97].mxu1 }
0x1d8e   :  { %v2889_v12 = vpop.f32.mrb[98].mxu1 }
0x1d8f   :  { %v2890_v14 = vadd.f32 %v5906_v2, %v2889_v12  ;;  %v6524_v15 = vpop.f32.mrb[99].mxu1  ;;  %v2893_v17 = vadd.f32 %v2887_v4, %v2736_v47  ;;  %v7043_v47 = vld [vmem:[%s8335_s10] sm:$0x7] }
0x1d91   :  { %v2895_v18 = vsel %vm125_vm1, %v2893_v17, 0.0  ;;  %v2894_v23 = vadd.f32 %v2890_v14, %v2737_v50  ;;  %v2930_v50 = vrot.slane %v7043_v47, %v7310_v40  ;;  %v7824_v14 = vld [vmem:[%s8329_s4 + $0x8] sm:$0xff] }
0x1d92   :  { %2896 = vadd.xlane.f32.xlu0 %v2895_v18  ;;  %v3025_v15 = vrot.slane %v7824_v14, %v7271_v19  ;;  %v3083_v18 = vrot.slane %v7824_v14, %v7310_v40 }
0x1d93   :  { %v2898_v7 = vsel %vm125_vm1, %v2894_v23, 0.0 }
0x1d94   :  { %2899 = vadd.xlane.f32.xlu1 %v2898_v7 }
0x1e1f   :  { %v2897_v25 = vpop.xlane.xlu0 %2896 }
0x1e20   :  { %v2901_v48 = vmul.f32 0.03125, %v2897_v25 }
0x1e21   :  { %v2900_v10 = vpop.xlane.xlu1 %2899 }
0x1e22   :  { %v2903_v13 = vsub.f32 %v2893_v17, %v2901_v48  ;;  %v2902_v61 = vmul.f32 0.03125, %v2900_v10  ;;  %v2965_v48 = vrot.slane %v7824_v14, %v7281_v24 }
0x1e24   :  { %v2904_v38 = vsub.f32 %v2894_v23, %v2902_v61  ;;  %v2905_v29 = vmul.f32 %v2903_v13, %v2903_v13 }
0x1e26   :  { %v2907_v63 = vsel %vm125_vm1, %v2905_v29, 0.0  ;;  %v2906_v59 = vmul.f32 %v2904_v38, %v2904_v38 }
0x1e27   :  { %2908 = vadd.xlane.f32.xlu0 %v2907_v63 }
0x1e28   :  { %v2910_v57 = vsel %vm125_vm1, %v2906_v59, 0.0 }
0x1e29   :  { %2911 = vadd.xlane.f32.xlu1 %v2910_v57 }
0x1eb4   :  { %v2909_v31 = vpop.xlane.xlu0 %2908 }
0x1eb5   :  { %v2913_v3 = vmul.f32 0.03125, %v2909_v31 }
0x1eb6   :  { %v2912_v32 = vpop.xlane.xlu1 %2911 }
0x1eb7   :  { %v2915_v35 = vadd.f32 1e-05, %v2913_v3  ;;  %v2914_v37 = vmul.f32 0.03125, %v2912_v32 }
0x1eb9   :  { %6955 = vrsqrt.f32 %v2915_v35  ;;  %v2916_v22 = vadd.f32 1e-05, %v2914_v37 }
0x1ebb   :  { %6957 = vrsqrt.f32 %v2916_v22 }
0x1ec3   :  { %v6956_v45 = vpop.eup %6955 }
0x1ec4   :  { %v2919_v46 = vmul.f32 %v6956_v45, %v2903_v13 }
0x1ec5   :  { %v6958_v51 = vpop.eup %6957 }
0x1ec6   :  { %v2925_v20 = vmul.f32 %v2924_v43, %v2919_v46  ;;  %v2920_v21 = vmul.f32 %v6958_v51, %v2904_v38 }
0x1ec8   :  { %v2926_v52 = vmul.f32 %v2924_v43, %v2920_v21  ;;  %v7800_v53 = vadd.f32 %v2930_v50, %v2925_v20 }
0x1eca   :  { %v7802_v54 = vadd.f32 %v2930_v50, %v2926_v52  ;;  %v2937_v30 = vadd.f32 %v7527_v34, %v7800_v53 }
0x1ecc   :  { %v3079_v58 = vpack.c.bf16 %v7802_v54, %v7800_v53  ;;  %v2938_v62 = vadd.f32 %v7534_v36, %v7802_v54 }
0x1ece   :  { %6546 = vmatmul.mubr.msk.bf16.vlgmr.msra.gmra.mrb[100].mxu1 %vm125_vm1, %v3079_v58  ;;  %v2961_v56 = vpack.c.bf16 %v2938_v62, %v2937_v30 }
0x1ecf   :  { %6557 = vmatprep.mubr.msk.bf16.mxu1 %vm7126_vm0, %v7125_v0 }
0x1ed0   :  { %6530 = vmatmul.mubr.msk.bf16.vlgmr.msra.gmra.mrb[92].mxu0 %vm125_vm1, %v2961_v56 }
0x1ed1   :  { %6534 = vmatpush3.bf16.msra.mxu0 %v6869_v33  ;;  %6537 = vmatprep.mubr.msk.bf16.mxu0 %vm7126_vm0, %v7125_v0 }
0x1ed2   :  { %6535 = vmatprep.subr.bf16.mxu0 %v7125_v0 }
0x1ed5   :  { %6536 = vmatpush3.bf16.msra.mxu0 %v6870_v1 }
0x1ed6   :  { %6549 = vmatprep.subr.bf16.mxu0 %v7125_v0 }
0x1ed8   :  { %6538 = vmatmul.mubr.msk.bf16.vlgmr.msra.gmra.mrb[96].mxu0 %vm125_vm1, %v2961_v56 }
0x1ed9   :  { %6551 = vmatprep.mubr.msk.bf16.mxu0 %vm7126_vm0, %v7125_v0 }
0x1fa1   :  { %v3133_v34 = vpop.f32.mrb[100].mxu1 }
0x1fa2   :  { %v6547_v36 = vpop.f32.mrb[101].mxu1  ;;  %v3134_v38 = vadd.f32 %v3133_v34, %v3083_v18 }
0x1fa3   :  { %v3015_v6 = vpop.f32.mrb[92].mxu0  ;;  %v3136_v2 = vpop.f32.mrb[102].mxu1 }
0x1fa4   :  { %v6531_v5 = vpop.f32.mrb[93].mxu0  ;;  %v6548_v4 = vpop.f32.mrb[103].mxu1  ;;  %v3016_v59 = vadd.f32 %v3015_v6, %v2965_v48  ;;  %v3137_v57 = vadd.f32 %v3136_v2, %v3083_v18  ;;  %v7841_v27 = vpack.c.bf16 %v3134_v38, %v3134_v38 }
0x1fa5   :  { %v3018_v9 = vpop.f32.mrb[94].mxu0 }
0x1fa6   :  { %v6532_v12 = vpop.f32.mrb[95].mxu0  ;;  %v3019_v28 = vadd.f32 %v3018_v9, %v2965_v48  ;;  %v7844_v49 = vpack.c.bf16 %v3016_v59, %v3016_v59  ;;  %v7846_v31 = vpack.c.bf16 %v3137_v57, %v3137_v57  ;;  %v3266_v32 = vsel %vm414_vm3, %v7841_v27, 0 }
0x1fa8   :  { %v7848_v3 = vpack.c.bf16 %v3019_v28, %v3019_v28  ;;  %v3312_v35 = vsel %vm414_vm3, %v7846_v31, 0 }
0x1fab   :  { %v3072_v17 = vpop.f32.mrb[96].mxu0 }
0x1fac   :  { %v3073_v23 = vadd.f32 %v3072_v17, %v3025_v15  ;;  %v6539_v7 = vpop.f32.mrb[97].mxu0 }
0x1fad   :  { %v3075_v25 = vpop.f32.mrb[98].mxu0 }
0x1fae   :  { %v7832_v10 = vpack.c.bf16 %v3073_v23, %v3073_v23  ;;  %v3076_v13 = vadd.f32 %v3075_v25, %v3025_v15  ;;  %v6540_v61 = vpop.f32.mrb[99].mxu0 }
0x1fb0   :  { %v7834_v29 = vpack.c.bf16 %v3076_v13, %v3076_v13  ;;  %v3150_v63 = vsel %vm294_vm2, %v7832_v10, 0 }
0x1fb1   :  { %6550 = vmatpush3.bf16.xpose.msra.mxu0 %v3150_v63 }
0x1fb2   :  { %v3196_v26 = vsel %vm294_vm2, %v7834_v29, 0  ;;  %6561 = vmatprep.subr.bf16.mxu0 %v7125_v0 }
0x1fb3   :  { %6556 = vmatpush3.bf16.xpose.msra.mxu1 %v3196_v26 }
0x1fb4   :  { %6567 = vmatprep.subr.bf16.mxu1 %v7125_v0 }
0x1fb8   :  { %6552 = vmatmul.mubr.msk.bf16.vlgmr.msra.gmra.mrb[100].mxu0 %vm294_vm2, %v7844_v49 }
0x1fb9   :  { %6562 = vmatpush3.bf16.msra.mxu0 %v3266_v32  ;;  %6563 = vmatprep.mubr.msk.bf16.mxu0 %vm7126_vm0, %v7125_v0 }
0x1fba   :  { %6558 = vmatmul.mubr.msk.bf16.vlgmr.msra.gmra.mrb[104].mxu1 %vm294_vm2, %v7848_v3  ;;  %6573 = vmatprep.subr.bf16.mxu0 %v7125_v0 }
0x1fbb   :  { %6568 = vmatpush3.bf16.msra.mxu1 %v3312_v35  ;;  %6569 = vmatprep.mubr.msk.bf16.mxu1 %vm7126_vm0, %v7125_v0 }
0x1fbc   :  { %6579 = vmatprep.subr.bf16.mxu1 %v7125_v0 }
0x208b   :  { %v3186_v37 = vpop.f32.mrb[100].mxu0 }
0x208c   :  { %v6553_v22 = vpop.f32.mrb[101].mxu0  ;;  %v3238_v41 = vsel %vm294_vm2, %v3186_v37, -inf }
0x208d   :  { %v3232_v43 = vpop.f32.mrb[104].mxu1  ;;  %3239 = vmax.xlane.f32.xlu0 %v3238_v41  ;;  %v3189_v45 = vpop.f32.mrb[102].mxu0 }
0x208e   :  { %v6554_v46 = vpop.f32.mrb[103].mxu0  ;;  %v6559_v47 = vpop.f32.mrb[105].mxu1  ;;  %v3241_v50 = vsel %vm294_vm2, %v3232_v43, -inf }
0x208f   :  { %3242 = vmax.xlane.f32.xlu1 %v3241_v50  ;;  %v3235_v51 = vpop.f32.mrb[106].mxu1 }
0x2090   :  { %v6560_v20 = vpop.f32.mrb[107].mxu1 }
0x20a0   :  { %3411 = vrot.lane.b32.xlu1 %v7834_v29, %s7127_s27 }
0x211a   :  { %v3240_v21 = vpop.xlane.xlu0 %3239 }
0x211b   :  { %v3244_v52 = vsub.f32 %v3186_v37, %v3240_v21 }
0x211c   :  { %v3243_v58 = vpop.xlane.xlu1 %3242 }
0x211d   :  { %v3246_v30 = vmul.f32 1.442695, %v3244_v52  ;;  %v3245_v62 = vsub.f32 %v3232_v43, %v3243_v58 }
0x211f   :  { %6959 = vpow2.f32 %v3246_v30  ;;  %v3248_v33 = vmul.f32 1.442695, %v3245_v62 }
0x2120   :  { %v3412_v6 = vpop.permute.xlu1 %3411 }
0x2121   :  { %6961 = vpow2.f32 %v3248_v33  ;;  %v3417_v25 = vsel %vm294_vm2, %v3412_v6, 0 }
0x2129   :  { %v6960_v56 = vpop.eup %6959 }
0x212a   :  { %v3250_v1 = vsel %vm294_vm2, %v6960_v56, 0.0 }
0x212b   :  { %v6962_v34 = vpop.eup %6961  ;;  %3251 = vadd.xlane.f32.xlu0 %v3250_v1 }
0x212c   :  { %v3253_v36 = vsel %vm294_vm2, %v6962_v34, 0.0 }
0x212d   :  { %3254 = vadd.xlane.f32.xlu1 %v3253_v36 }
0x213e   :  { %3356 = vrot.lane.b32.xlu1 %v7844_v49, %s7127_s27 }
0x2141   :  { %3359 = vrot.lane.b32.xlu0 %v7832_v10, %s7127_s27 }
0x2142   :  { %3408 = vrot.lane.b32.xlu1 %v7848_v3, %s7127_s27 }
0x21b8   :  { %v3252_v2 = vpop.xlane.xlu0 %3251 }
0x21b9   :  { %6963 = vrcp.f32 %v3252_v2 }
0x21ba   :  { %v3255_v5 = vpop.xlane.xlu1 %3254 }
0x21bb   :  { %6965 = vrcp.f32 %v3255_v5 }
0x21bc   :  { %v3360_v15 = vpop.permute.xlu0 %3359 }
0x21bd   :  { %v3365_v23 = vsel %vm294_vm2, %v3360_v15, 0 }
0x21be   :  { %v3357_v48 = vpop.permute.xlu1 %3356 }
0x21c2   :  { %v3409_v13 = vpop.permute.xlu1 %3408 }
0x21c3   :  { %v6964_v4 = vpop.eup %6963 }
0x21c4   :  { %v3258_v9 = vmul.f32 %v6964_v4, %v6960_v56 }
0x21c5   :  { %v6966_v12 = vpop.eup %6965 }
0x21c6   :  { %v3259_v17 = vmul.f32 %v6966_v12, %v6962_v34  ;;  %v3260_v18 = vpack.c.bf16 %v3258_v9, %v3258_v9 }
0x21c8   :  { %6564 = vmatmul.mubr.msk.bf16.vlgmr.msra.gmra.mrb[104].mxu0 %vm294_vm2, %v3260_v18  ;;  %v3261_v7 = vpack.c.bf16 %v3259_v17, %v3259_v17  ;;  %v2956_v17 = vld [vmem:[#allocation2 + $0xb4] sm:$0xf] }
0x21c9   :  { %6574 = vmatpush3.bf16.xpose.msra.mxu0 %v3365_v23  ;;  %6575 = vmatprep.mubr.msk.bf16.mxu0 %vm7126_vm0, %v7125_v0 }
0x21ca   :  { %6570 = vmatmul.mubr.msk.bf16.vlgmr.msra.gmra.mrb[108].mxu1 %vm294_vm2, %v3261_v7  ;;  %6585 = vmatprep.subr.bf16.mxu0 %v7125_v0  ;;  %v3586_v7 = vsel %vm414_vm3, %v2956_v17, 0 }
0x21cb   :  { %6580 = vmatpush3.bf16.xpose.msra.mxu1 %v3417_v25  ;;  %6581 = vmatprep.mubr.msk.bf16.mxu1 %vm7126_vm0, %v7125_v0 }
0x21cc   :  { %6591 = vmatprep.subr.bf16.mxu1 %v7125_v0 }
0x21d0   :  { %6576 = vmatmul.mubr.msk.bf16.vlgmr.msra.gmra.mrb[108].mxu0 %vm294_vm2, %v3357_v48  ;;  %v2955_v48 = vld [vmem:[#allocation2 + $0xb0] sm:$0xf] }
0x21d1   :  { %6587 = vmatprep.mubr.msk.bf16.mxu0 %vm7126_vm0, %v7125_v0 }
0x21d2   :  { %6582 = vmatmul.mubr.msk.bf16.vlgmr.msra.gmra.mrb[112].mxu1 %vm294_vm2, %v3409_v13 }
0x21d3   :  { %6593 = vmatprep.mubr.msk.bf16.mxu1 %vm7126_vm0, %v7125_v0 }
0x229b   :  { %v7892_v61 = vpop.f32.mrb[104].mxu0 }
0x229c   :  { %v6565_v38 = vpop.f32.mrb[105].mxu0 }
0x229d   :  { %v3305_v63 = vpop.f32.mrb[106].mxu0  ;;  %v7894_v59 = vpop.f32.mrb[108].mxu1 }
0x229e   :  { %v3354_v57 = vpack.c.bf16 %v7894_v59, %v7892_v61  ;;  %v6566_v26 = vpop.f32.mrb[107].mxu0  ;;  %v6571_v28 = vpop.f32.mrb[109].mxu1  ;;  %v3633_v63 = vsel %vm414_vm3, %v2955_v48, 0 }
0x229f   :  { %v3351_v32 = vpop.f32.mrb[110].mxu1 }
0x22a0   :  { %v6572_v35 = vpop.f32.mrb[111].mxu1 }
0x22a3   :  { %v3401_v37 = vpop.f32.mrb[108].mxu0 }
0x22a4   :  { %v6577_v22 = vpop.f32.mrb[109].mxu0  ;;  %v3459_v41 = vsel %vm294_vm2, %v3401_v37, -inf }
0x22a5   :  { %v3453_v43 = vpop.f32.mrb[112].mxu1  ;;  %3460 = vmax.xlane.f32.xlu0 %v3459_v41  ;;  %v3404_v45 = vpop.f32.mrb[110].mxu0 }
0x22a6   :  { %v6578_v46 = vpop.f32.mrb[111].mxu0  ;;  %v6583_v47 = vpop.f32.mrb[113].mxu1  ;;  %v3462_v50 = vsel %vm294_vm2, %v3453_v43, -inf }
0x22a7   :  { %3463 = vmax.xlane.f32.xlu1 %v3462_v50  ;;  %v3456_v51 = vpop.f32.mrb[114].mxu1 }
0x22a8   :  { %v6584_v20 = vpop.f32.mrb[115].mxu1 }
0x22b8   :  { %3533 = vrot.lane.b32.xlu1 %v7846_v31, %s7127_s27 }
0x22bc   :  { %3678 = vrot.lane.b32.xlu1 %v7832_v10, %s7128_s28 }
0x22c0   :  { %3728 = vrot.lane.b32.xlu1 %v7834_v29, %s7128_s28 }
0x22c4   :  { %3726 = vrot.lane.b32.xlu1 %v7848_v3, %s7128_s28 }
0x2332   :  { %v3461_v21 = vpop.xlane.xlu0 %3460 }
0x2333   :  { %v3465_v52 = vsub.f32 %v3401_v37, %v3461_v21 }
0x2334   :  { %v3464_v58 = vpop.xlane.xlu1 %3463 }
0x2335   :  { %v3467_v30 = vmul.f32 1.442695, %v3465_v52  ;;  %v3466_v62 = vsub.f32 %v3453_v43, %v3464_v58 }
0x2337   :  { %6967 = vpow2.f32 %v3467_v30  ;;  %v3469_v33 = vmul.f32 1.442695, %v3466_v62 }
0x2338   :  { %v3534_v56 = vpop.permute.xlu1 %3533 }
0x2339   :  { %6969 = vpow2.f32 %v3469_v33  ;;  %v3539_v1 = vsel %vm414_vm3, %v3534_v56, 0 }
0x233a   :  { %6592 = vmatpush3.bf16.msra.mxu1 %v3539_v1 }
0x233b   :  { %6603 = vmatprep.subr.bf16.mxu1 %v7125_v0 }
0x233c   :  { %v3679_v26 = vpop.permute.xlu1 %3678 }
0x233d   :  { %v3684_v46 = vsel %vm294_vm2, %v3679_v26, 0 }
0x2340   :  { %v3729_v28 = vpop.permute.xlu1 %3728 }
0x2341   :  { %v6968_v34 = vpop.eup %6967  ;;  %v3734_v32 = vsel %vm294_vm2, %v3729_v28, 0 }
0x2342   :  { %v3471_v36 = vsel %vm294_vm2, %v6968_v34, 0.0 }
0x2343   :  { %v6970_v6 = vpop.eup %6969  ;;  %3472 = vadd.xlane.f32.xlu0 %v3471_v36 }
0x2344   :  { %v3474_v2 = vsel %vm294_vm2, %v6970_v6, 0.0  ;;  %v3727_v35 = vpop.permute.xlu1 %3726 }
0x2347   :  { %3475 = vadd.xlane.f32.xlu0 %v3474_v2 }
0x235d   :  { %3484 = vrot.lane.b32.xlu0 %v7841_v27, %s7127_s27 }
0x2361   :  { %3676 = vrot.lane.b32.xlu0 %v7844_v49, %s7128_s28 }
0x23d0   :  { %v3473_v5 = vpop.xlane.xlu0 %3472 }
0x23d1   :  { %6971 = vrcp.f32 %v3473_v5 }
0x23d4   :  { %v3476_v4 = vpop.xlane.xlu0 %3475 }
0x23d5   :  { %6973 = vrcp.f32 %v3476_v4 }
0x23d8   :  { %v3485_v9 = vpop.permute.xlu0 %3484 }
0x23d9   :  { %v3490_v12 = vsel %vm414_vm3, %v3485_v9, 0 }
0x23da   :  { %6586 = vmatpush3.bf16.msra.mxu0 %v3490_v12 }
0x23db   :  { %v6972_v15 = vpop.eup %6971  ;;  %6597 = vmatprep.subr.bf16.mxu0 %v7125_v0 }
0x23dc   :  { %v3479_v18 = vmul.f32 %v6972_v15, %v6968_v34  ;;  %v3677_v20 = vpop.permute.xlu0 %3676 }
0x23de   :  { %v3481_v23 = vpack.c.bf16 %v3479_v18, %v3479_v18 }
0x23df   :  { %v6974_v25 = vpop.eup %6973 }
0x23e0   :  { %v3480_v13 = vmul.f32 %v6974_v25, %v6970_v6  ;;  %6588 = vmatmul.mubr.msk.bf16.vlgmr.msra.gmra.mrb[112].mxu0 %vm294_vm2, %v3481_v23 }
0x23e1   :  { %6598 = vmatpush3.bf16.msra.mxu0 %v3586_v7  ;;  %6599 = vmatprep.mubr.msk.bf16.mxu0 %vm7126_vm0, %v7125_v0 }
0x23e2   :  { %v3482_v38 = vpack.c.bf16 %v3480_v13, %v3480_v13  ;;  %6609 = vmatprep.subr.bf16.mxu0 %v7125_v0 }
0x23e4   :  { %6594 = vmatmul.mubr.msk.bf16.vlgmr.msra.gmra.mrb[116].mxu1 %vm294_vm2, %v3482_v38 }
0x23e5   :  { %6604 = vmatpush3.bf16.msra.mxu1 %v3633_v63  ;;  %6605 = vmatprep.mubr.msk.bf16.mxu1 %vm7126_vm0, %v7125_v0 }
0x23e6   :  { %6615 = vmatprep.subr.bf16.mxu1 %v7125_v0 }
0x23ec   :  { %6606 = vmatmul.mubr.msk.bf16.vlgmr.msra.gmra.mrb[120].mxu1 %vm294_vm2, %v3354_v57 }
0x23ed   :  { %6617 = vmatprep.mubr.msk.bf16.mxu1 %vm7126_vm0, %v7125_v0 }
0x23ee   :  { %6616 = vmatpush3.bf16.xpose.msra.mxu1 %v3734_v32 }
0x23ef   :  { %6627 = vmatprep.subr.bf16.mxu1 %v7125_v0 }
0x23f5   :  { %6618 = vmatmul.mubr.msk.bf16.vlgmr.msra.gmra.mrb[124].mxu1 %vm294_vm2, %v3727_v35 }
0x23f6   :  { %6629 = vmatprep.mubr.msk.bf16.mxu1 %vm7126_vm0, %v7125_v0 }
0x24b3   :  { %v3526_v37 = vpop.f32.mrb[112].mxu0 }
0x24b4   :  { %v6589_v22 = vpop.f32.mrb[113].mxu0 }
0x24b5   :  { %v3529_v41 = vpop.f32.mrb[114].mxu0 }
0x24b6   :  { %v6590_v61 = vpop.f32.mrb[115].mxu0 }
0x24b7   :  { %v3575_v59 = vpop.f32.mrb[116].mxu1 }
0x24b8   :  { %v3581_v57 = vpack.c.bf16 %v3575_v59, %v3526_v37  ;;  %v6595_v43 = vpop.f32.mrb[117].mxu1 }
0x24b9   :  { %v3578_v45 = vpop.f32.mrb[118].mxu1 }
0x24ba   :  { %v6596_v47 = vpop.f32.mrb[119].mxu1  ;;  %6600 = vmatmul.mubr.msk.bf16.vlgmr.msra.gmra.mrb[116].mxu0 %vm294_vm2, %v3581_v57 }
0x24bb   :  { %6610 = vmatpush3.bf16.xpose.msra.mxu0 %v3684_v46  ;;  %6611 = vmatprep.mubr.msk.bf16.mxu0 %vm7126_vm0, %v7125_v0 }
0x24bc   :  { %6621 = vmatprep.subr.bf16.mxu0 %v7125_v0 }
0x24bf   :  { %v3669_v50 = vpop.f32.mrb[120].mxu1 }
0x24c0   :  { %v6607_v51 = vpop.f32.mrb[121].mxu1 }
0x24c1   :  { %v3672_v21 = vpop.f32.mrb[122].mxu1 }
0x24c2   :  { %v6608_v52 = vpop.f32.mrb[123].mxu1  ;;  %6612 = vmatmul.mubr.msk.bf16.vlgmr.msra.gmra.mrb[120].mxu0 %vm294_vm2, %v3677_v20 }
0x24c3   :  { %6623 = vmatprep.mubr.msk.bf16.mxu0 %vm7126_vm0, %v7125_v0 }
0x24c8   :  { %v3770_v58 = vpop.f32.mrb[124].mxu1 }
0x24c9   :  { %v6619_v30 = vpop.f32.mrb[125].mxu1  ;;  %v3779_v62 = vsel %vm294_vm2, %v3770_v58, -inf }
0x24ca   :  { %3780 = vmax.xlane.f32.xlu1 %v3779_v62  ;;  %v3773_v33 = vpop.f32.mrb[126].mxu1 }
0x24cb   :  { %v6620_v56 = vpop.f32.mrb[127].mxu1 }
0x24db   :  { %3848 = vrot.lane.b32.xlu1 %v7846_v31, %s7128_s28 }
0x24df   :  { %3948 = vrot.lane.b32.xlu1 %v7832_v10, %s7129_s29 }
0x24e3   :  { %3998 = vrot.lane.b32.xlu1 %v7834_v29, %s7129_s29 }
0x24e7   :  { %3996 = vrot.lane.b32.xlu1 %v7848_v3, %s7129_s29 }
0x2557   :  { %v3781_v1 = vpop.xlane.xlu1 %3780 }
0x2558   :  { %v3783_v6 = vsub.f32 %v3770_v58, %v3781_v1 }
0x255a   :  { %v3786_v2 = vmul.f32 1.442695, %v3783_v6 }
0x255b   :  { %v3849_v34 = vpop.permute.xlu1 %3848 }
0x255c   :  { %v3854_v36 = vsel %vm414_vm3, %v3849_v34, 0  ;;  %6975 = vpow2.f32 %v3786_v2 }
0x255d   :  { %6628 = vmatpush3.bf16.msra.mxu1 %v3854_v36 }
0x255e   :  { %6639 = vmatprep.subr.bf16.mxu1 %v7125_v0 }
0x255f   :  { %v3949_v37 = vpop.permute.xlu1 %3948 }
0x2560   :  { %v3954_v41 = vsel %vm294_vm2, %v3949_v37, 0 }
0x2563   :  { %v3999_v1 = vpop.permute.xlu1 %3998 }
0x2566   :  { %v6976_v18 = vpop.eup %6975 }
0x2567   :  { %v3791_v25 = vsel %vm294_vm2, %v6976_v18, 0.0 }
0x258d   :  { %v3622_v5 = vpop.f32.mrb[116].mxu0 }
0x258e   :  { %v7958_v4 = vadd.f32 %v3669_v50, %v3622_v5  ;;  %v6601_v10 = vpop.f32.mrb[117].mxu0  ;;  %v4004_v5 = vsel %vm294_vm2, %v3999_v1, 0 }
0x258f   :  { %v3625_v9 = vpop.f32.mrb[118].mxu0 }
0x2590   :  { %v7960_v12 = vadd.f32 %v3672_v21, %v3625_v9  ;;  %v6602_v29 = vpop.f32.mrb[119].mxu0  ;;  %v2957_v21 = vld [vmem:[#allocation2 + $0xb8] sm:$0xf]  ;;  %v3997_v9 = vpop.permute.xlu1 %3996 }
0x2591   :  { %v3901_v52 = vsel %vm414_vm3, %v2957_v21, 0 }
0x2595   :  { %v3720_v15 = vpop.f32.mrb[120].mxu0 }
0x2596   :  { %v6613_v3 = vpop.f32.mrb[121].mxu0  ;;  %v3776_v17 = vsel %vm294_vm2, %v3720_v15, -inf }
0x2597   :  { %3777 = vmax.xlane.f32.xlu0 %v3776_v17  ;;  %v3723_v23 = vpop.f32.mrb[122].mxu0 }
0x2598   :  { %v6614_v7 = vpop.f32.mrb[123].mxu0 }
0x259b   :  { %3792 = vadd.xlane.f32.xlu0 %v3791_v25 }
0x2624   :  { %v3778_v48 = vpop.xlane.xlu0 %3777 }
0x2625   :  { %v3782_v13 = vsub.f32 %v3720_v15, %v3778_v48 }
0x2627   :  { %v3784_v38 = vmul.f32 1.442695, %v3782_v13 }
0x2628   :  { %v3793_v63 = vpop.xlane.xlu0 %3792 }
0x2629   :  { %6977 = vpow2.f32 %v3784_v38 }
0x262a   :  { %6979 = vrcp.f32 %v3793_v63 }
0x2633   :  { %v6978_v26 = vpop.eup %6977 }
0x2634   :  { %v6980_v28 = vpop.eup %6979  ;;  %v3788_v32 = vsel %vm294_vm2, %v6978_v26, 0.0 }
0x2635   :  { %v3797_v35 = vmul.f32 %v6980_v28, %v6976_v18  ;;  %3789 = vadd.xlane.f32.xlu0 %v3788_v32 }
0x2637   :  { %v3799_v22 = vpack.c.bf16 %v3797_v35, %v3797_v35 }
0x2639   :  { %6630 = vmatmul.mubr.msk.bf16.vlgmr.msra.gmra.mrb[128].mxu1 %vm294_vm2, %v3799_v22 }
0x263a   :  { %6640 = vmatpush3.bf16.xpose.msra.mxu1 %v3954_v41  ;;  %6641 = vmatprep.mubr.msk.bf16.mxu1 %vm7126_vm0, %v7125_v0 }
0x263b   :  { %6651 = vmatprep.subr.bf16.mxu1 %v7125_v0 }
0x264b   :  { %3800 = vrot.lane.b32.xlu0 %v7841_v27, %s7128_s28 }
0x264f   :  { %3946 = vrot.lane.b32.xlu0 %v7844_v49, %s7129_s29 }
0x26c2   :  { %v3790_v61 = vpop.xlane.xlu0 %3789 }
0x26c3   :  { %6981 = vrcp.f32 %v3790_v61 }
0x26c6   :  { %v3801_v59 = vpop.permute.xlu0 %3800 }
0x26c7   :  { %v3806_v57 = vsel %vm414_vm3, %v3801_v59, 0 }
0x26c8   :  { %6622 = vmatpush3.bf16.msra.mxu0 %v3806_v57 }
0x26c9   :  { %6633 = vmatprep.subr.bf16.mxu0 %v7125_v0 }
0x26ca   :  { %v3947_v43 = vpop.permute.xlu0 %3946 }
0x26cb   :  { %6642 = vmatmul.mubr.msk.bf16.vlgmr.msra.gmra.mrb[132].mxu1 %vm294_vm2, %v3947_v43 }
0x26cc   :  { %6653 = vmatprep.mubr.msk.bf16.mxu1 %vm7126_vm0, %v7125_v0 }
0x26cd   :  { %v6982_v45 = vpop.eup %6981 }
0x26ce   :  { %v3796_v46 = vmul.f32 %v6982_v45, %v6978_v26 }
0x26d0   :  { %v3798_v47 = vpack.c.bf16 %v3796_v46, %v3796_v46 }
0x26d2   :  { %6624 = vmatmul.mubr.msk.bf16.vlgmr.msra.gmra.mrb[124].mxu0 %vm294_vm2, %v3798_v47 }
0x26d3   :  { %6635 = vmatprep.mubr.msk.bf16.mxu0 %vm7126_vm0, %v7125_v0  ;;  %6634 = vmatpush3.bf16.msra.mxu0 %v3901_v52 }
0x26d4   :  { %6645 = vmatprep.subr.bf16.mxu0 %v7125_v0 }
0x270c   :  { %v3890_v49 = vpop.f32.mrb[128].mxu1 }
0x270d   :  { %v6631_v50 = vpop.f32.mrb[129].mxu1 }
0x270e   :  { %v3893_v51 = vpop.f32.mrb[130].mxu1 }
0x270f   :  { %v6632_v20 = vpop.f32.mrb[131].mxu1 }
0x2710   :  { %v2958_v20 = vld [vmem:[#allocation2 + $0xbc] sm:$0xf] }
0x2711   :  { %v4171_v21 = vsel %vm414_vm3, %v2958_v20, 0 }
0x279e   :  { %v3990_v58 = vpop.f32.mrb[132].mxu1 }
0x279f   :  { %v6643_v30 = vpop.f32.mrb[133].mxu1  ;;  %v4046_v62 = vsel %vm294_vm2, %v3990_v58, -inf }
0x27a0   :  { %4047 = vmax.xlane.f32.xlu0 %v4046_v62  ;;  %v3993_v33 = vpop.f32.mrb[134].mxu1 }
0x27a1   :  { %v6644_v56 = vpop.f32.mrb[135].mxu1 }
0x27a5   :  { %v3842_v34 = vpop.f32.mrb[124].mxu0 }
0x27a6   :  { %v3896_v36 = vpack.c.bf16 %v3890_v49, %v3842_v34  ;;  %v6625_v6 = vpop.f32.mrb[125].mxu0 }
0x27a7   :  { %v3845_v2 = vpop.f32.mrb[126].mxu0  ;;  %v4219_v6 = vrot.slane %v7824_v14, %v1368_v42 }
0x27a8   :  { %v6626_v10 = vpop.f32.mrb[127].mxu0  ;;  %6636 = vmatmul.mubr.msk.bf16.vlgmr.msra.gmra.mrb[128].mxu0 %vm294_vm2, %v3896_v36 }
0x27a9   :  { %6646 = vmatpush3.bf16.xpose.msra.mxu0 %v4004_v5  ;;  %6647 = vmatprep.mubr.msk.bf16.mxu0 %vm7126_vm0, %v7125_v0 }
0x27aa   :  { %6657 = vmatprep.subr.bf16.mxu0 %v7125_v0 }
0x27b0   :  { %6648 = vmatmul.mubr.msk.bf16.vlgmr.msra.gmra.mrb[132].mxu0 %vm294_vm2, %v3997_v9 }
0x27b1   :  { %6659 = vmatprep.mubr.msk.bf16.mxu0 %vm7126_vm0, %v7125_v0 }
0x282d   :  { %v4048_v29 = vpop.xlane.xlu0 %4047 }
0x282e   :  { %v4052_v15 = vsub.f32 %v3990_v58, %v4048_v29 }
0x2830   :  { %v4054_v3 = vmul.f32 1.442695, %v4052_v15 }
0x2832   :  { %6983 = vpow2.f32 %v4054_v3 }
0x283c   :  { %v6984_v17 = vpop.eup %6983 }
0x283d   :  { %v4058_v18 = vsel %vm294_vm2, %v6984_v17, 0.0 }
0x283e   :  { %4059 = vadd.xlane.f32.xlu0 %v4058_v18 }
0x287b   :  { %v3937_v23 = vpop.f32.mrb[128].mxu0 }
0x287c   :  { %v3944_v7 = vadd.f32 %v3937_v23, %v7958_v4  ;;  %v6637_v25 = vpop.f32.mrb[129].mxu0 }
0x287d   :  { %v3940_v48 = vpop.f32.mrb[130].mxu0 }
0x287e   :  { %v3945_v13 = vadd.f32 %v3940_v48, %v7960_v12  ;;  %v6638_v38 = vpop.f32.mrb[131].mxu0 }
0x2883   :  { %v4040_v63 = vpop.f32.mrb[132].mxu0 }
0x2884   :  { %v6649_v26 = vpop.f32.mrb[133].mxu0  ;;  %v4049_v28 = vsel %vm294_vm2, %v4040_v63, -inf }
0x2885   :  { %4050 = vmax.xlane.f32.xlu1 %v4049_v28  ;;  %v4043_v32 = vpop.f32.mrb[134].mxu0 }
0x2886   :  { %v6650_v35 = vpop.f32.mrb[135].mxu0 }
0x2896   :  { %4118 = vrot.lane.b32.xlu1 %v7846_v31, %s7129_s29 }
0x28cb   :  { %v4060_v57 = vpop.xlane.xlu0 %4059 }
0x2912   :  { %v4051_v37 = vpop.xlane.xlu1 %4050 }
0x2913   :  { %v4053_v22 = vsub.f32 %v4040_v63, %v4051_v37  ;;  %v6871_v37 = vld [vmem:[#allocation2 + $0xd0] sm:$0xff]  }
0x2915   :  { %v4056_v41 = vmul.f32 1.442695, %v4053_v22  ;;  %v6873_v22 = vld [vmem:[#allocation2 + $0xc0] sm:$0xff]  }
0x2916   :  { %v4119_v61 = vpop.permute.xlu1 %4118 }
0x2917   :  { %6985 = vpow2.f32 %v4056_v41  ;;  %v4124_v4 = vsel %vm414_vm3, %v4119_v61, 0  ;;  %v6874_v41 = vld [vmem:[#allocation2 + $0xc8] sm:$0xff]   ;;  %v6875_v61 = vld [vmem:[#allocation2 + $0xe0] sm:$0xff]  }
0x2918   :  { %6658 = vmatpush3.bf16.msra.mxu0 %v4124_v4  ;;  %6987 = vrcp.f32 %v4060_v57 }
0x2919   :  { %6669 = vmatprep.subr.bf16.mxu0 %v7125_v0 }
0x2921   :  { %v6986_v12 = vpop.eup %6985 }
0x2922   :  { %v4061_v59 = vsel %vm294_vm2, %v6986_v12, 0.0  ;;  %v6988_v31 = vpop.eup %6987 }
0x2923   :  { %4062 = vadd.xlane.f32.xlu0 %v4061_v59  ;;  %v4066_v45 = vmul.f32 %v6988_v31, %v6984_v17 }
0x2925   :  { %v4068_v49 = vpack.c.bf16 %v4066_v45, %v4066_v45  ;;  %v8034_v45 = vld [vmem:[%s8334_s9 + $0x4] sm:$0x7] }
0x2939   :  { %4070 = vrot.lane.b32.xlu0 %v7841_v27, %s7129_s29 }
0x29b0   :  { %v4063_v43 = vpop.xlane.xlu0 %4062 }
0x29b1   :  { %6989 = vrcp.f32 %v4063_v43 }
0x29b4   :  { %v4071_v46 = vpop.permute.xlu0 %4070 }
0x29b5   :  { %v4076_v47 = vsel %vm414_vm3, %v4071_v46, 0  ;;  %v8039_v46 = vld [vmem:[%s8335_s10 + $0x4] sm:$0x7] }
0x29b6   :  { %6652 = vmatpush3.bf16.msra.mxu1 %v4076_v47  ;;  %v4253_v47 = vrot.slane %v8034_v45, %v7281_v24 }
0x29b7   :  { %6663 = vmatprep.subr.bf16.mxu1 %v7125_v0 }
0x29b9   :  { %6654 = vmatmul.mubr.msk.bf16.vlgmr.msra.gmra.mrb[136].mxu1 %vm294_vm2, %v4068_v49 }
0x29ba   :  { %6665 = vmatprep.mubr.msk.bf16.mxu1 %vm7126_vm0, %v7125_v0  ;;  %6664 = vmatpush3.bf16.msra.mxu1 %v4171_v21 }
0x29bb   :  { %v6990_v50 = vpop.eup %6989  ;;  %6677 = vmatprep.subr.bf16.mxu1 %v6871_v37 }
0x29bc   :  { %v4067_v27 = vmul.f32 %v6990_v50, %v6986_v12 }
0x29be   :  { %v4069_v51 = vpack.c.bf16 %v4067_v27, %v4067_v27  ;;  %v4259_v27 = vrot.slane %v8039_v46, %v7281_v24 }
0x29c0   :  { %6660 = vmatmul.mubr.msk.bf16.vlgmr.msra.gmra.mrb[136].mxu0 %vm294_vm2, %v4069_v51 }
0x29c1   :  { %6673 = vmatprep.mubr.msk.bf16.mxu0 %vm7126_vm0, %v7125_v0  ;;  %6670 = vmatpush3.bf16.msra.mxu0 %v6873_v22 }
0x29c2   :  { %6671 = vmatprep.subr.bf16.mxu0 %v7125_v0 }
0x29c5   :  { %6672 = vmatpush3.bf16.msra.mxu0 %v6874_v41 }
0x29c6   :  { %6685 = vmatprep.subr.bf16.mxu0 %v6875_v61 }
0x2a8c   :  { %v4112_v52 = vpop.f32.mrb[136].mxu1 }
0x2a8d   :  { %v6655_v58 = vpop.f32.mrb[137].mxu1 }
0x2a8e   :  { %v4115_v30 = vpop.f32.mrb[138].mxu1 }
0x2a8f   :  { %v6656_v62 = vpop.f32.mrb[139].mxu1 }
0x2a90   :  { %v7044_v62 = vld [vmem:[%s8327_s2] sm:$0xff] }
0x2a93   :  { %v4160_v33 = vpop.f32.mrb[136].mxu0 }
0x2a94   :  { %v4166_v56 = vpack.c.bf16 %v4160_v33, %v4112_v52  ;;  %v6661_v1 = vpop.f32.mrb[137].mxu0 }
0x2a95   :  { %v4163_v34 = vpop.f32.mrb[138].mxu0 }
0x2a96   :  { %v6662_v36 = vpop.f32.mrb[139].mxu0  ;;  %6666 = vmatmul.mubr.msk.bf16.vlgmr.msra.gmra.mrb[140].mxu1 %vm294_vm2, %v4166_v56  ;;  %v7045_v56 = vld [vmem:[%s8327_s2 + $0x8] sm:$0xff] }
0x2a97   :  { %6681 = vmatprep.mubr.msk.bf16.mxu1 %vm125_vm1, %v7488_v8  ;;  %6678 = vmatpush3.bf16.msra.mxu1 %v6871_v37  ;;  %v6876_v34 = vld [vmem:[#allocation2 + $0xe8] sm:$0xff]   ;;  %v4349_v36 = vrot.slane %v7824_v14, %v1499_v44  ;;  %v4289_v44 = vrot.slane %v7824_v14, %v1439_v60 }
0x2b69   :  { %v4207_v2 = vpop.f32.mrb[140].mxu1 }
0x2b6a   :  { %v4214_v5 = vadd.f32 %v4207_v2, %v3944_v7  ;;  %v6667_v10 = vpop.f32.mrb[141].mxu1 }
0x2b6b   :  { %v4210_v9 = vpop.f32.mrb[142].mxu1 }
0x2b6c   :  { %v4220_v29 = vadd.f32 %v4219_v6, %v4214_v5  ;;  %v4215_v15 = vadd.f32 %v4210_v9, %v3945_v13  ;;  %v6668_v3 = vpop.f32.mrb[143].mxu1 }
0x2b6e   :  { %v4221_v17 = vadd.f32 %v4219_v6, %v4215_v15  ;;  %v4222_v18 = vadd.f32 %v4220_v29, %v7800_v53 }
0x2b70   :  { %v4224_v23 = vsel %vm125_vm1, %v4222_v18, 0.0  ;;  %v4223_v25 = vadd.f32 %v4221_v17, %v7802_v54  ;;  %v6872_v54 = vld [vmem:[#allocation2 + $0xd8] sm:$0xff]  }
0x2b71   :  { %4225 = vadd.xlane.f32.xlu1 %v4224_v23  ;;  %6679 = vmatprep.subr.bf16.mxu1 %v6872_v54 }
0x2b72   :  { %v4227_v48 = vsel %vm125_vm1, %v4223_v25, 0.0  ;;  %6680 = vmatpush3.bf16.msra.mxu1 %v6872_v54 }
0x2b73   :  { %4228 = vadd.xlane.f32.xlu0 %v4227_v48  ;;  %6693 = vmatprep.subr.bf16.mxu1 %v7125_v0 }
0x2b75   :  { %6682 = vmatmul.mubr.msk.bf16.vlgmr.msra.gmra.mrb[144].mxu1 %vm125_vm1, %v7496_v11 }
0x2b76   :  { %6695 = vmatprep.mubr.msk.bf16.mxu1 %vm7126_vm0, %v7125_v0 }
0x2bfe   :  { %v4226_v38 = vpop.xlane.xlu1 %4225 }
0x2bff   :  { %v4230_v42 = vmul.f32 0.03125, %v4226_v38 }
0x2c00   :  { %v4229_v63 = vpop.xlane.xlu0 %4228 }
0x2c01   :  { %v4232_v7 = vsub.f32 %v4222_v18, %v4230_v42  ;;  %v4231_v26 = vmul.f32 0.03125, %v4229_v63 }
0x2c03   :  { %v4233_v28 = vsub.f32 %v4223_v25, %v4231_v26  ;;  %v4234_v32 = vmul.f32 %v4232_v7, %v4232_v7 }
0x2c05   :  { %v4236_v13 = vsel %vm125_vm1, %v4234_v32, 0.0  ;;  %v4235_v35 = vmul.f32 %v4233_v28, %v4233_v28 }
0x2c06   :  { %4237 = vadd.xlane.f32.xlu0 %v4236_v13 }
0x2c07   :  { %v4239_v53 = vsel %vm125_vm1, %v4235_v35, 0.0 }
0x2c08   :  { %4240 = vadd.xlane.f32.xlu1 %v4239_v53 }
0x2c48   :  { %v6683_v6 = vpop.f32.mrb[144].mxu1 }
0x2c49   :  { %v4405_v2 = vadd.f32 %v6683_v6, %v4349_v36  ;;  %v4396_v5 = vpop.f32.mrb[145].mxu1 }
0x2c4a   :  { %v4397_v10 = vadd.f32 %v4396_v5, %v4349_v36  ;;  %v6684_v9 = vpop.f32.mrb[146].mxu1 }
0x2c4b   :  { %v4399_v29 = vpop.f32.mrb[147].mxu1 }
0x2c4c   :  { %v4400_v15 = vadd.f32 %v4399_v29, %v4349_v36 }
0x2c4e   :  { %v8070_v17 = vpack.c.bf16 %v4400_v15, %v4397_v10 }
0x2c50   :  { %v4486_v18 = vsel %vm294_vm2, %v8070_v17, 0 }
0x2c51   :  { %6694 = vmatpush3.bf16.xpose.msra.mxu1 %v4486_v18 }
0x2c52   :  { %6705 = vmatprep.subr.bf16.mxu1 %v7125_v0 }
0x2c93   :  { %v4238_v4 = vpop.xlane.xlu0 %4237 }
0x2c94   :  { %v4242_v12 = vmul.f32 0.03125, %v4238_v4 }
0x2c95   :  { %v4241_v59 = vpop.xlane.xlu1 %4240 }
0x2c96   :  { %v4244_v57 = vadd.f32 1e-05, %v4242_v12  ;;  %v4243_v31 = vmul.f32 0.03125, %v4241_v59 }
0x2c98   :  { %6991 = vrsqrt.f32 %v4244_v57  ;;  %v4245_v43 = vadd.f32 1e-05, %v4243_v31 }
0x2c9a   :  { %6993 = vrsqrt.f32 %v4245_v43 }
0x2ca2   :  { %v6992_v49 = vpop.eup %6991 }
0x2ca3   :  { %v4248_v50 = vmul.f32 %v6992_v49, %v4232_v7 }
0x2ca4   :  { %v6994_v51 = vpop.eup %6993 }
0x2ca5   :  { %v4254_v20 = vmul.f32 %v4253_v47, %v4248_v50  ;;  %v4249_v21 = vmul.f32 %v6994_v51, %v4233_v28  ;;  %v4414_v28 = vrot.slane %v7824_v14, %v1570_v39 }
0x2ca7   :  { %v4255_v52 = vmul.f32 %v4253_v47, %v4249_v21  ;;  %v8045_v58 = vadd.f32 %v4259_v27, %v4254_v20 }
0x2ca9   :  { %v8047_v30 = vadd.f32 %v4259_v27, %v4255_v52  ;;  %v4262_v33 = vadd.f32 %v7044_v62, %v8045_v58 }
0x2cab   :  { %v4263_v24 = vadd.f32 %v7045_v56, %v8047_v30 }
0x2cad   :  { %v4285_v1 = vpack.c.bf16 %v4263_v24, %v4262_v33 }
0x2caf   :  { %6674 = vmatmul.mubr.msk.bf16.vlgmr.msra.gmra.mrb[140].mxu0 %vm125_vm1, %v4285_v1 }
0x2cb0   :  { %6686 = vmatpush3.bf16.msra.mxu0 %v6875_v61  ;;  %6689 = vmatprep.mubr.msk.bf16.mxu0 %vm125_vm1, %v7488_v8  ;;  %v4408_v8 = vadd.f32 %v6684_v9, %v4349_v36 }
0x2cb1   :  { %6687 = vmatprep.subr.bf16.mxu0 %v6876_v34 }
0x2cb2   :  { %v8068_v3 = vpack.c.bf16 %v4408_v8, %v4405_v2 }
0x2cb4   :  { %6688 = vmatpush3.bf16.msra.mxu0 %v6876_v34 }
0x2cb5   :  { %6699 = vmatprep.subr.bf16.mxu0 %v7125_v0 }
0x2cb7   :  { %6690 = vmatmul.mubr.msk.bf16.vlgmr.msra.gmra.mrb[144].mxu0 %vm125_vm1, %v7496_v11  ;;  %v4532_v11 = vsel %vm294_vm2, %v8068_v3, 0 }
0x2cb8   :  { %6701 = vmatprep.mubr.msk.bf16.mxu0 %vm7126_vm0, %v7125_v0 }
0x2cbd   :  { %6700 = vmatpush3.bf16.xpose.msra.mxu0 %v4532_v11 }
0x2cbe   :  { %6711 = vmatprep.subr.bf16.mxu0 %v7125_v0 }
0x2d82   :  { %v4339_v23 = vpop.f32.mrb[140].mxu0 }
0x2d83   :  { %v4340_v25 = vadd.f32 %v4339_v23, %v4289_v44  ;;  %v6675_v48 = vpop.f32.mrb[141].mxu0 }
0x2d84   :  { %v4342_v38 = vpop.f32.mrb[142].mxu0 }
0x2d85   :  { %v8081_v42 = vpack.c.bf16 %v4340_v25, %v4340_v25  ;;  %v4343_v63 = vadd.f32 %v4342_v38, %v4289_v44  ;;  %v6676_v7 = vpop.f32.mrb[143].mxu0 }
0x2d87   :  { %v8083_v26 = vpack.c.bf16 %v4343_v63, %v4343_v63  ;;  %6696 = vmatmul.mubr.msk.bf16.vlgmr.msra.gmra.mrb[148].mxu1 %vm294_vm2, %v8081_v42 }
0x2d88   :  { %6707 = vmatprep.mubr.msk.bf16.mxu1 %vm7126_vm0, %v7125_v0 }
0x2d89   :  { %6702 = vmatmul.mubr.msk.bf16.vlgmr.msra.gmra.mrb[148].mxu0 %vm294_vm2, %v8083_v26 }
0x2d8a   :  { %v6691_v60 = vpop.f32.mrb[144].mxu0  ;;  %6713 = vmatprep.mubr.msk.bf16.mxu0 %vm7126_vm0, %v7125_v0 }
0x2d8b   :  { %v4470_v32 = vadd.f32 %v6691_v60, %v4414_v28  ;;  %v4461_v13 = vpop.f32.mrb[145].mxu0 }
0x2d8c   :  { %v4462_v35 = vadd.f32 %v4461_v13, %v4414_v28  ;;  %v6692_v53 = vpop.f32.mrb[146].mxu0 }
0x2d8d   :  { %v4473_v37 = vadd.f32 %v6692_v53, %v4414_v28  ;;  %v4464_v54 = vpop.f32.mrb[147].mxu0 }
0x2d8e   :  { %v4465_v22 = vadd.f32 %v4464_v54, %v4414_v28 }
0x2d8f   :  { %v8096_v41 = vpack.c.bf16 %v4473_v37, %v4470_v32 }
0x2d90   :  { %v8098_v39 = vpack.c.bf16 %v4465_v22, %v4462_v35 }
0x2d91   :  { %6712 = vmatpush3.bf16.msra.mxu0 %v8096_v41 }
0x2d92   :  { %6706 = vmatpush3.bf16.msra.mxu1 %v8098_v39  ;;  %6723 = vmatprep.subr.bf16.mxu0 %v7125_v0 }
0x2d93   :  { %6717 = vmatprep.subr.bf16.mxu1 %v7125_v0 }
0x2e5a   :  { %v4522_v14 = vpop.f32.mrb[148].mxu1 }
0x2e5b   :  { %v6697_v61 = vpop.f32.mrb[149].mxu1  ;;  %v4574_v4 = vsel %vm1731_vm4, %v4522_v14, -inf }
0x2e5c   :  { %4575 = vmax.xlane.f32.xlu0 %v4574_v4  ;;  %v4525_v12 = vpop.f32.mrb[150].mxu1  ;;  %v4568_v59 = vpop.f32.mrb[148].mxu0 }
0x2e5d   :  { %v6698_v57 = vpop.f32.mrb[151].mxu1  ;;  %v6703_v31 = vpop.f32.mrb[149].mxu0  ;;  %v4577_v43 = vsel %vm1731_vm4, %v4568_v59, -inf }
0x2e5e   :  { %4578 = vmax.xlane.f32.xlu1 %v4577_v43  ;;  %v4571_v47 = vpop.f32.mrb[150].mxu0 }
0x2e5f   :  { %v6704_v49 = vpop.f32.mrb[151].mxu0 }
0x2e6f   :  { %4741 = vrot.lane.b32.xlu1 %v8068_v3, %s7127_s27 }
0x2ee9   :  { %v4576_v50 = vpop.xlane.xlu0 %4575 }
0x2eea   :  { %v4580_v27 = vsub.f32 %v4522_v14, %v4576_v50 }
0x2eeb   :  { %v4579_v51 = vpop.xlane.xlu1 %4578 }
0x2eec   :  { %v4582_v20 = vmul.f32 1.442695, %v4580_v27  ;;  %v4581_v21 = vsub.f32 %v4568_v59, %v4579_v51 }
0x2eee   :  { %6995 = vpow2.f32 %v4582_v20  ;;  %v4584_v52 = vmul.f32 1.442695, %v4581_v21 }
0x2eef   :  { %v4742_v1 = vpop.permute.xlu1 %4741 }
0x2ef0   :  { %6997 = vpow2.f32 %v4584_v52  ;;  %v4747_v11 = vsel %vm294_vm2, %v4742_v1, 0 }
0x2ef8   :  { %v6996_v62 = vpop.eup %6995 }
0x2ef9   :  { %v4586_v33 = vsel %vm1731_vm4, %v6996_v62, 0.0 }
0x2efa   :  { %v6998_v56 = vpop.eup %6997  ;;  %4587 = vadd.xlane.f32.xlu0 %v4586_v33 }
0x2efb   :  { %v4589_v24 = vsel %vm1731_vm4, %v6998_v56, 0.0 }
0x2efc   :  { %4590 = vadd.xlane.f32.xlu1 %v4589_v24  ;;  %v4281_v24 = vld [vmem:[#allocation2 + $0xf4] sm:$0xf] }
0x2f0d   :  { %4686 = vrot.lane.b32.xlu1 %v8081_v42, %s7127_s27 }
0x2f10   :  { %4689 = vrot.lane.b32.xlu0 %v8070_v17, %s7127_s27 }
0x2f11   :  { %4738 = vrot.lane.b32.xlu1 %v8083_v26, %s7127_s27 }
0x2f87   :  { %v4588_v34 = vpop.xlane.xlu0 %4587 }
0x2f88   :  { %6999 = vrcp.f32 %v4588_v34 }
0x2f89   :  { %v4591_v36 = vpop.xlane.xlu1 %4590 }
0x2f8a   :  { %7001 = vrcp.f32 %v4591_v36  ;;  %v4912_v36 = vsel %vm414_vm3, %v4281_v24, 0 }
0x2f8b   :  { %v4690_v10 = vpop.permute.xlu0 %4689 }
0x2f8c   :  { %v4695_v29 = vsel %vm294_vm2, %v4690_v10, 0 }
0x2f8d   :  { %v4687_v18 = vpop.permute.xlu1 %4686 }
0x2f91   :  { %v4739_v44 = vpop.permute.xlu1 %4738 }
0x2f92   :  { %v7000_v6 = vpop.eup %6999 }
0x2f93   :  { %v4594_v2 = vmul.f32 %v7000_v6, %v6996_v62 }
0x2f94   :  { %v7002_v5 = vpop.eup %7001 }
0x2f95   :  { %v4595_v9 = vmul.f32 %v7002_v5, %v6998_v56  ;;  %v4596_v8 = vpack.c.bf16 %v4594_v2, %v4594_v2  ;;  %v4280_v2 = vld [vmem:[#allocation2 + $0xf0] sm:$0xf] }
0x2f97   :  { %6708 = vmatmul.mubr.msk.bf16.vlgmr.msra.gmra.mrb[152].mxu1 %vm1731_vm4, %v4596_v8  ;;  %v4597_v15 = vpack.c.bf16 %v4595_v9, %v4595_v9  ;;  %v4959_v9 = vsel %vm414_vm3, %v4280_v2, 0 }
0x2f98   :  { %6718 = vmatpush3.bf16.xpose.msra.mxu1 %v4695_v29  ;;  %6719 = vmatprep.mubr.msk.bf16.mxu1 %vm7126_vm0, %v7125_v0 }
0x2f99   :  { %6714 = vmatmul.mubr.msk.bf16.vlgmr.msra.gmra.mrb[152].mxu0 %vm1731_vm4, %v4597_v15  ;;  %6729 = vmatprep.subr.bf16.mxu1 %v7125_v0 }
0x2f9a   :  { %6724 = vmatpush3.bf16.xpose.msra.mxu0 %v4747_v11  ;;  %6725 = vmatprep.mubr.msk.bf16.mxu0 %vm7126_vm0, %v7125_v0 }
0x2f9b   :  { %6735 = vmatprep.subr.bf16.mxu0 %v7125_v0 }
0x2f9f   :  { %6720 = vmatmul.mubr.msk.bf16.vlgmr.msra.gmra.mrb[156].mxu1 %vm294_vm2, %v4687_v18 }
0x2fa0   :  { %6731 = vmatprep.mubr.msk.bf16.mxu1 %vm7126_vm0, %v7125_v0 }
0x2fa1   :  { %6726 = vmatmul.mubr.msk.bf16.vlgmr.msra.gmra.mrb[156].mxu0 %vm294_vm2, %v4739_v44 }
0x2fa2   :  { %6737 = vmatprep.mubr.msk.bf16.mxu0 %vm7126_vm0, %v7125_v0 }
0x306a   :  { %v8132_v23 = vpop.f32.mrb[152].mxu1 }
0x306b   :  { %v6709_v25 = vpop.f32.mrb[153].mxu1 }
0x306c   :  { %v4638_v48 = vpop.f32.mrb[154].mxu1  ;;  %v8134_v38 = vpop.f32.mrb[152].mxu0 }
0x306d   :  { %v4684_v63 = vpack.c.bf16 %v8134_v38, %v8132_v23  ;;  %v6710_v7 = vpop.f32.mrb[155].mxu1  ;;  %v6715_v28 = vpop.f32.mrb[153].mxu0 }
0x306e   :  { %v4681_v60 = vpop.f32.mrb[154].mxu0 }
0x306f   :  { %v6716_v32 = vpop.f32.mrb[155].mxu0 }
0x3072   :  { %v4731_v13 = vpop.f32.mrb[156].mxu1 }
0x3073   :  { %v6721_v35 = vpop.f32.mrb[157].mxu1  ;;  %v4789_v53 = vsel %vm1731_vm4, %v4731_v13, -inf }
0x3074   :  { %v4783_v37 = vpop.f32.mrb[156].mxu0  ;;  %4790 = vmax.xlane.f32.xlu0 %v4789_v53  ;;  %v4734_v54 = vpop.f32.mrb[158].mxu1 }
0x3075   :  { %v6722_v22 = vpop.f32.mrb[159].mxu1  ;;  %v6727_v14 = vpop.f32.mrb[157].mxu0  ;;  %v4792_v61 = vsel %vm1731_vm4, %v4783_v37, -inf }
0x3076   :  { %4793 = vmax.xlane.f32.xlu1 %v4792_v61  ;;  %v4786_v4 = vpop.f32.mrb[158].mxu0 }
0x3077   :  { %v6728_v12 = vpop.f32.mrb[159].mxu0 }
0x3087   :  { %4861 = vrot.lane.b32.xlu1 %v8096_v41, %s7127_s27 }
0x308b   :  { %5004 = vrot.lane.b32.xlu1 %v8070_v17, %s7128_s28 }
0x308f   :  { %5054 = vrot.lane.b32.xlu1 %v8068_v3, %s7128_s28 }
0x3093   :  { %5052 = vrot.lane.b32.xlu1 %v8083_v26, %s7128_s28 }
0x3101   :  { %v4791_v59 = vpop.xlane.xlu0 %4790 }
0x3102   :  { %v4795_v57 = vsub.f32 %v4731_v13, %v4791_v59 }
0x3103   :  { %v4794_v31 = vpop.xlane.xlu1 %4793 }
0x3104   :  { %v4797_v43 = vmul.f32 1.442695, %v4795_v57  ;;  %v4796_v47 = vsub.f32 %v4783_v37, %v4794_v31 }
0x3106   :  { %7003 = vpow2.f32 %v4797_v43  ;;  %v4799_v49 = vmul.f32 1.442695, %v4796_v47 }
0x3107   :  { %v4862_v50 = vpop.permute.xlu1 %4861 }
0x3108   :  { %7005 = vpow2.f32 %v4799_v49  ;;  %6736 = vmatpush3.bf16.msra.mxu0 %v4862_v50 }
0x3109   :  { %6747 = vmatprep.subr.bf16.mxu0 %v7125_v0 }
0x310b   :  { %v5005_v8 = vpop.permute.xlu1 %5004 }
0x310c   :  { %v5010_v28 = vsel %vm294_vm2, %v5005_v8, 0 }
0x310f   :  { %v5055_v29 = vpop.permute.xlu1 %5054 }
0x3110   :  { %v7004_v27 = vpop.eup %7003  ;;  %v5060_v15 = vsel %vm294_vm2, %v5055_v29, 0 }
0x3111   :  { %v4801_v51 = vsel %vm1731_vm4, %v7004_v27, 0.0 }
0x3112   :  { %v7006_v20 = vpop.eup %7005  ;;  %4802 = vadd.xlane.f32.xlu0 %v4801_v51 }
0x3113   :  { %v4804_v21 = vsel %vm1731_vm4, %v7006_v20, 0.0  ;;  %v5053_v11 = vpop.permute.xlu1 %5052 }
0x3116   :  { %4805 = vadd.xlane.f32.xlu0 %v4804_v21 }
0x312c   :  { %4814 = vrot.lane.b32.xlu0 %v8098_v39, %s7127_s27 }
0x3130   :  { %5002 = vrot.lane.b32.xlu0 %v8081_v42, %s7128_s28 }
0x319f   :  { %v4803_v52 = vpop.xlane.xlu0 %4802 }
0x31a0   :  { %7007 = vrcp.f32 %v4803_v52 }
0x31a3   :  { %v4806_v62 = vpop.xlane.xlu0 %4805 }
0x31a4   :  { %7009 = vrcp.f32 %v4806_v62 }
0x31a7   :  { %v4815_v33 = vpop.permute.xlu0 %4814 }
0x31a8   :  { %6730 = vmatpush3.bf16.msra.mxu1 %v4815_v33 }
0x31a9   :  { %6741 = vmatprep.subr.bf16.mxu1 %v7125_v0 }
0x31aa   :  { %v7008_v56 = vpop.eup %7007 }
0x31ab   :  { %v4809_v1 = vmul.f32 %v7008_v56, %v7004_v27  ;;  %v5003_v35 = vpop.permute.xlu0 %5002 }
0x31ad   :  { %v4811_v34 = vpack.c.bf16 %v4809_v1, %v4809_v1 }
0x31ae   :  { %v7010_v6 = vpop.eup %7009 }
0x31af   :  { %v4810_v5 = vmul.f32 %v7010_v6, %v7006_v20  ;;  %6732 = vmatmul.mubr.msk.bf16.vlgmr.msra.gmra.mrb[160].mxu1 %vm1731_vm4, %v4811_v34 }
0x31b0   :  { %6742 = vmatpush3.bf16.msra.mxu1 %v4912_v36  ;;  %6743 = vmatprep.mubr.msk.bf16.mxu1 %vm7126_vm0, %v7125_v0 }
0x31b1   :  { %v4812_v10 = vpack.c.bf16 %v4810_v5, %v4810_v5  ;;  %6753 = vmatprep.subr.bf16.mxu1 %v7125_v0 }
0x31b3   :  { %6738 = vmatmul.mubr.msk.bf16.vlgmr.msra.gmra.mrb[160].mxu0 %vm1731_vm4, %v4812_v10 }
0x31b4   :  { %6748 = vmatpush3.bf16.msra.mxu0 %v4959_v9  ;;  %6749 = vmatprep.mubr.msk.bf16.mxu0 %vm7126_vm0, %v7125_v0 }
0x31b5   :  { %6759 = vmatprep.subr.bf16.mxu0 %v7125_v0 }
0x31bb   :  { %6750 = vmatmul.mubr.msk.bf16.vlgmr.msra.gmra.mrb[164].mxu0 %vm294_vm2, %v4684_v63 }
0x31bc   :  { %6761 = vmatprep.mubr.msk.bf16.mxu0 %vm7126_vm0, %v7125_v0 }
0x31bd   :  { %6760 = vmatpush3.bf16.xpose.msra.mxu0 %v5060_v15 }
0x31be   :  { %6771 = vmatprep.subr.bf16.mxu0 %v7125_v0 }
0x31c4   :  { %6762 = vmatmul.mubr.msk.bf16.vlgmr.msra.gmra.mrb[168].mxu0 %vm294_vm2, %v5053_v11 }
0x31c5   :  { %6773 = vmatprep.mubr.msk.bf16.mxu0 %vm7126_vm0, %v7125_v0 }
0x3282   :  { %v4854_v18 = vpop.f32.mrb[160].mxu1 }
0x3283   :  { %v6733_v44 = vpop.f32.mrb[161].mxu1 }
0x3284   :  { %v4857_v25 = vpop.f32.mrb[162].mxu1 }
0x3285   :  { %v6734_v23 = vpop.f32.mrb[163].mxu1 }
0x3286   :  { %v4901_v48 = vpop.f32.mrb[160].mxu0 }
0x3287   :  { %v4907_v38 = vpack.c.bf16 %v4901_v48, %v4854_v18  ;;  %v6739_v63 = vpop.f32.mrb[161].mxu0 }
0x3288   :  { %v4904_v7 = vpop.f32.mrb[162].mxu0 }
0x3289   :  { %v6740_v60 = vpop.f32.mrb[163].mxu0  ;;  %6744 = vmatmul.mubr.msk.bf16.vlgmr.msra.gmra.mrb[164].mxu1 %vm294_vm2, %v4907_v38  ;;  %v4282_v38 = vld [vmem:[#allocation2 + $0xf8] sm:$0xf] }
0x328a   :  { %6754 = vmatpush3.bf16.xpose.msra.mxu1 %v5010_v28  ;;  %6755 = vmatprep.mubr.msk.bf16.mxu1 %vm7126_vm0, %v7125_v0  ;;  %v5223_v63 = vsel %vm414_vm3, %v4282_v38, 0 }
0x328b   :  { %6765 = vmatprep.subr.bf16.mxu1 %v7125_v0 }
0x328e   :  { %v4995_v32 = vpop.f32.mrb[164].mxu0 }
0x328f   :  { %v6751_v13 = vpop.f32.mrb[165].mxu0 }
0x3290   :  { %v4998_v53 = vpop.f32.mrb[166].mxu0 }
0x3291   :  { %v6752_v37 = vpop.f32.mrb[167].mxu0  ;;  %6756 = vmatmul.mubr.msk.bf16.vlgmr.msra.gmra.mrb[168].mxu1 %vm294_vm2, %v5003_v35 }
0x3292   :  { %6767 = vmatprep.mubr.msk.bf16.mxu1 %vm7126_vm0, %v7125_v0 }
0x3297   :  { %v5096_v54 = vpop.f32.mrb[168].mxu0 }
0x3298   :  { %v6763_v22 = vpop.f32.mrb[169].mxu0  ;;  %v5105_v14 = vsel %vm1731_vm4, %v5096_v54, -inf }
0x3299   :  { %5106 = vmax.xlane.f32.xlu1 %v5105_v14  ;;  %v5099_v61 = vpop.f32.mrb[170].mxu0 }
0x329a   :  { %v6764_v4 = vpop.f32.mrb[171].mxu0 }
0x32aa   :  { %5172 = vrot.lane.b32.xlu1 %v8096_v41, %s7128_s28 }
0x32ae   :  { %5270 = vrot.lane.b32.xlu1 %v8070_v17, %s7129_s29 }
0x32b2   :  { %5320 = vrot.lane.b32.xlu1 %v8068_v3, %s7129_s29 }
0x32b6   :  { %5318 = vrot.lane.b32.xlu1 %v8083_v26, %s7129_s29 }
0x3326   :  { %v5107_v12 = vpop.xlane.xlu1 %5106 }
0x3327   :  { %v5109_v57 = vsub.f32 %v5096_v54, %v5107_v12 }
0x3329   :  { %v5112_v31 = vmul.f32 1.442695, %v5109_v57 }
0x332a   :  { %v5173_v59 = vpop.permute.xlu1 %5172 }
0x332b   :  { %6772 = vmatpush3.bf16.msra.mxu0 %v5173_v59  ;;  %7011 = vpow2.f32 %v5112_v31 }
0x332c   :  { %6783 = vmatprep.subr.bf16.mxu0 %v7125_v0 }
0x332e   :  { %v5271_v5 = vpop.permute.xlu1 %5270 }
0x332f   :  { %v5276_v9 = vsel %vm294_vm2, %v5271_v5, 0 }
0x3332   :  { %v5321_v35 = vpop.permute.xlu1 %5320 }
0x3333   :  { %v5326_v14 = vsel %vm294_vm2, %v5321_v35, 0 }
0x3335   :  { %v7012_v20 = vpop.eup %7011 }
0x3336   :  { %v5117_v62 = vsel %vm1731_vm4, %v7012_v20, 0.0  ;;  %v5319_v4 = vpop.permute.xlu1 %5318 }
0x335c   :  { %v4948_v43 = vpop.f32.mrb[164].mxu1 }
0x335d   :  { %v8195_v47 = vadd.f32 %v4995_v32, %v4948_v43  ;;  %v6745_v49 = vpop.f32.mrb[165].mxu1 }
0x335e   :  { %v4951_v50 = vpop.f32.mrb[166].mxu1 }
0x335f   :  { %v8197_v17 = vadd.f32 %v4998_v53, %v4951_v50  ;;  %v6746_v27 = vpop.f32.mrb[167].mxu1 }
0x3364   :  { %v5046_v3 = vpop.f32.mrb[168].mxu1 }
0x3365   :  { %v6757_v51 = vpop.f32.mrb[169].mxu1  ;;  %v5102_v26 = vsel %vm1731_vm4, %v5046_v3, -inf }
0x3366   :  { %5103 = vmax.xlane.f32.xlu0 %v5102_v26  ;;  %v5049_v21 = vpop.f32.mrb[170].mxu1 }
0x3367   :  { %v6758_v52 = vpop.f32.mrb[171].mxu1 }
0x336a   :  { %5118 = vadd.xlane.f32.xlu0 %v5117_v62 }
0x33f3   :  { %v5104_v33 = vpop.xlane.xlu0 %5103 }
0x33f4   :  { %v5108_v56 = vsub.f32 %v5046_v3, %v5104_v33 }
0x33f6   :  { %v5110_v24 = vmul.f32 1.442695, %v5108_v56 }
0x33f7   :  { %v5119_v1 = vpop.xlane.xlu0 %5118 }
0x33f8   :  { %7013 = vpow2.f32 %v5110_v24 }
0x33f9   :  { %7015 = vrcp.f32 %v5119_v1 }
0x3402   :  { %v7014_v34 = vpop.eup %7013 }
0x3403   :  { %v7016_v36 = vpop.eup %7015  ;;  %v5114_v6 = vsel %vm1731_vm4, %v7014_v34, 0.0 }
0x3404   :  { %v5123_v2 = vmul.f32 %v7016_v36, %v7012_v20  ;;  %5115 = vadd.xlane.f32.xlu0 %v5114_v6 }
0x3406   :  { %v5125_v10 = vpack.c.bf16 %v5123_v2, %v5123_v2 }
0x3408   :  { %6774 = vmatmul.mubr.msk.bf16.vlgmr.msra.gmra.mrb[172].mxu0 %vm1731_vm4, %v5125_v10 }
0x3409   :  { %6784 = vmatpush3.bf16.xpose.msra.mxu0 %v5276_v9  ;;  %6785 = vmatprep.mubr.msk.bf16.mxu0 %vm7126_vm0, %v7125_v0 }
0x340a   :  { %6795 = vmatprep.subr.bf16.mxu0 %v7125_v0 }
0x341a   :  { %5126 = vrot.lane.b32.xlu0 %v8098_v39, %s7128_s28 }
0x341e   :  { %5268 = vrot.lane.b32.xlu0 %v8081_v42, %s7129_s29 }
0x3491   :  { %v5116_v8 = vpop.xlane.xlu0 %5115 }
0x3492   :  { %7017 = vrcp.f32 %v5116_v8 }
0x3495   :  { %v5127_v29 = vpop.permute.xlu0 %5126 }
0x3496   :  { %6766 = vmatpush3.bf16.msra.mxu1 %v5127_v29 }
0x3497   :  { %6777 = vmatprep.subr.bf16.mxu1 %v7125_v0 }
0x3499   :  { %v5269_v15 = vpop.permute.xlu0 %5268 }
0x349a   :  { %6786 = vmatmul.mubr.msk.bf16.vlgmr.msra.gmra.mrb[176].mxu0 %vm294_vm2, %v5269_v15 }
0x349b   :  { %6797 = vmatprep.mubr.msk.bf16.mxu0 %vm7126_vm0, %v7125_v0 }
0x349c   :  { %v7018_v11 = vpop.eup %7017 }
0x349d   :  { %v5122_v18 = vmul.f32 %v7018_v11, %v7014_v34 }
0x349f   :  { %v5124_v44 = vpack.c.bf16 %v5122_v18, %v5122_v18 }
0x34a1   :  { %6768 = vmatmul.mubr.msk.bf16.vlgmr.msra.gmra.mrb[172].mxu1 %vm1731_vm4, %v5124_v44 }
0x34a2   :  { %6779 = vmatprep.mubr.msk.bf16.mxu1 %vm7126_vm0, %v7125_v0  ;;  %6778 = vmatpush3.bf16.msra.mxu1 %v5223_v63 }
0x34a3   :  { %6789 = vmatprep.subr.bf16.mxu1 %v7125_v0 }
0x34db   :  { %v5212_v42 = vpop.f32.mrb[172].mxu0 }
0x34dc   :  { %v6775_v25 = vpop.f32.mrb[173].mxu0 }
0x34dd   :  { %v5215_v23 = vpop.f32.mrb[174].mxu0 }
0x34de   :  { %v6776_v48 = vpop.f32.mrb[175].mxu0 }
0x356d   :  { %v5312_v7 = vpop.f32.mrb[176].mxu0 }
0x356e   :  { %v6787_v28 = vpop.f32.mrb[177].mxu0  ;;  %v5368_v60 = vsel %vm1731_vm4, %v5312_v7, -inf }
0x356f   :  { %5369 = vmax.xlane.f32.xlu0 %v5368_v60  ;;  %v5315_v32 = vpop.f32.mrb[178].mxu0 }
0x3570   :  { %v6788_v13 = vpop.f32.mrb[179].mxu0 }
0x3574   :  { %v5166_v53 = vpop.f32.mrb[172].mxu1 }
0x3575   :  { %v5218_v37 = vpack.c.bf16 %v5212_v42, %v5166_v53  ;;  %v6769_v54 = vpop.f32.mrb[173].mxu1 }
0x3576   :  { %v5169_v22 = vpop.f32.mrb[174].mxu1 }
0x3577   :  { %v6770_v61 = vpop.f32.mrb[175].mxu1  ;;  %6780 = vmatmul.mubr.msk.bf16.vlgmr.msra.gmra.mrb[176].mxu1 %vm294_vm2, %v5218_v37 }
0x3578   :  { %6790 = vmatpush3.bf16.xpose.msra.mxu1 %v5326_v14  ;;  %6791 = vmatprep.mubr.msk.bf16.mxu1 %vm7126_vm0, %v7125_v0 }
0x3579   :  { %6801 = vmatprep.subr.bf16.mxu1 %v7125_v0 }
0x357f   :  { %6792 = vmatmul.mubr.msk.bf16.vlgmr.msra.gmra.mrb[180].mxu1 %vm294_vm2, %v5319_v4 }
0x3580   :  { %6803 = vmatprep.mubr.msk.bf16.mxu1 %vm7126_vm0, %v7125_v0 }
0x35fc   :  { %v5370_v12 = vpop.xlane.xlu0 %5369 }
0x35fd   :  { %v5374_v59 = vsub.f32 %v5312_v7, %v5370_v12  ;;  %v7046_v7 = vld [vmem:[%s8329_s4 + $0x8] sm:$0xff] }
0x35fe   :  { %v5537_v28 = vrot.slane %v7046_v7, %v2694_v55 }
0x35ff   :  { %v5376_v57 = vmul.f32 1.442695, %v5374_v59 }
0x3601   :  { %7019 = vpow2.f32 %v5376_v57 }
0x360b   :  { %v7020_v31 = vpop.eup %7019 }
0x360c   :  { %v5380_v43 = vsel %vm1731_vm4, %v7020_v31, 0.0 }
0x360d   :  { %5381 = vadd.xlane.f32.xlu0 %v5380_v43 }
0x364a   :  { %v5259_v49 = vpop.f32.mrb[176].mxu1 }
0x364b   :  { %v5266_v50 = vadd.f32 %v5259_v49, %v8195_v47  ;;  %v6781_v27 = vpop.f32.mrb[177].mxu1 }
0x364c   :  { %v5262_v3 = vpop.f32.mrb[178].mxu1 }
0x364d   :  { %v5267_v51 = vadd.f32 %v5262_v3, %v8197_v17  ;;  %v6782_v26 = vpop.f32.mrb[179].mxu1  ;;  %v6878_v3 = vld [vmem:[%s8330_s5 + $0x18] sm:$0xff]  }
0x364e   :  { %v6880_v26 = vld [vmem:[%s8332_s7 + $0x28] sm:$0xff]  }
0x3652   :  { %v5362_v20 = vpop.f32.mrb[180].mxu1 }
0x3653   :  { %v6793_v21 = vpop.f32.mrb[181].mxu1  ;;  %v5371_v52 = vsel %vm1731_vm4, %v5362_v20, -inf }
0x3654   :  { %5372 = vmax.xlane.f32.xlu1 %v5371_v52  ;;  %v5365_v62 = vpop.f32.mrb[182].mxu1 }
0x3655   :  { %v6794_v33 = vpop.f32.mrb[183].mxu1 }
0x3665   :  { %5438 = vrot.lane.b32.xlu1 %v8096_v41, %s7129_s29 }
0x369a   :  { %v5382_v36 = vpop.xlane.xlu0 %5381 }
0x36e1   :  { %v5373_v56 = vpop.xlane.xlu1 %5372 }
0x36e2   :  { %v5375_v24 = vsub.f32 %v5362_v20, %v5373_v56 }
0x36e4   :  { %v5378_v1 = vmul.f32 1.442695, %v5375_v24  ;;  %v5571_v24 = vrot.slane %v8034_v45, %v7271_v19 }
0x36e5   :  { %v5439_v34 = vpop.permute.xlu1 %5438 }
0x36e6   :  { %7021 = vpow2.f32 %v5378_v1  ;;  %6802 = vmatpush3.bf16.msra.mxu1 %v5439_v34 }
0x36e7   :  { %6813 = vmatprep.subr.bf16.mxu1 %v7125_v0  ;;  %7023 = vrcp.f32 %v5382_v36 }
0x36f0   :  { %v7022_v47 = vpop.eup %7021 }
0x36f1   :  { %v5383_v17 = vsel %vm1731_vm4, %v7022_v47, 0.0  ;;  %v7024_v6 = vpop.eup %7023 }
0x36f2   :  { %5384 = vadd.xlane.f32.xlu0 %v5383_v17  ;;  %v5388_v41 = vmul.f32 %v7024_v6, %v7020_v31  ;;  %v5577_v6 = vrot.slane %v8039_v46, %v7271_v19  ;;  %v5981_v19 = vld [vmem:[%s8331_s6 + $0x1] ss:$0 sm:$0xff] }
0x36f4   :  { %v5390_v10 = vpack.c.bf16 %v5388_v41, %v5388_v41 }
0x3708   :  { %5392 = vrot.lane.b32.xlu0 %v8098_v39, %s7129_s29  ;;  %v4283_v39 = vld [vmem:[#allocation2 + $0xfc] sm:$0xf] }
0x3709   :  { %v5489_v15 = vsel %vm414_vm3, %v4283_v39, 0 }
0x377f   :  { %v5385_v2 = vpop.xlane.xlu0 %5384 }
0x3780   :  { %7025 = vrcp.f32 %v5385_v2 }
0x3783   :  { %v5393_v5 = vpop.permute.xlu0 %5392 }
0x3784   :  { %6796 = vmatpush3.bf16.msra.mxu0 %v5393_v5 }
0x3785   :  { %6807 = vmatprep.subr.bf16.mxu0 %v7125_v0 }
0x3787   :  { %6798 = vmatmul.mubr.msk.bf16.vlgmr.msra.gmra.mrb[180].mxu0 %vm1731_vm4, %v5390_v10 }
0x3788   :  { %6809 = vmatprep.mubr.msk.bf16.mxu0 %vm7126_vm0, %v7125_v0  ;;  %6808 = vmatpush3.bf16.msra.mxu0 %v5489_v15 }
0x3789   :  { %6821 = vmatprep.subr.bf16.mxu0 %v7125_v0 }
0x378a   :  { %v7026_v9 = vpop.eup %7025 }
0x378b   :  { %v5389_v8 = vmul.f32 %v7026_v9, %v7022_v47  ;;  %v6881_v9 = vld [vmem:[%s8332_s7 + $0x30] sm:$0xff]  }
0x378d   :  { %v5391_v29 = vpack.c.bf16 %v5389_v8, %v5389_v8  ;;  %v6882_v8 = vld [vmem:[%s8332_s7 + $0x38] sm:$0xff]  }
0x378f   :  { %6804 = vmatmul.mubr.msk.bf16.vlgmr.msra.gmra.mrb[184].mxu1 %vm1731_vm4, %v5391_v29 }
0x3790   :  { %6817 = vmatprep.mubr.msk.bf16.mxu1 %vm7126_vm0, %v7125_v0 }
0x385a   :  { %v5432_v11 = vpop.f32.mrb[180].mxu0 }
0x385b   :  { %v6799_v18 = vpop.f32.mrb[181].mxu0 }
0x385c   :  { %v5435_v44 = vpop.f32.mrb[182].mxu0 }
0x385d   :  { %v6800_v42 = vpop.f32.mrb[183].mxu0 }
0x3862   :  { %v5478_v25 = vpop.f32.mrb[184].mxu1 }
0x3863   :  { %v5484_v23 = vpack.c.bf16 %v5478_v25, %v5432_v11  ;;  %v6805_v48 = vpop.f32.mrb[185].mxu1 }
0x3864   :  { %v5481_v38 = vpop.f32.mrb[186].mxu1 }
0x3865   :  { %v6806_v63 = vpop.f32.mrb[187].mxu1  ;;  %6810 = vmatmul.mubr.msk.bf16.vlgmr.msra.gmra.mrb[184].mxu0 %vm294_vm2, %v5484_v23 }
0x3866   :  { %6829 = vmatprep.mubr.msk.bf16.mxu0 %vm7126_vm0, %v7125_v0 }
0x3938   :  { %v5525_v60 = vpop.f32.mrb[184].mxu0 }
0x3939   :  { %v5532_v32 = vadd.f32 %v5525_v60, %v5266_v50  ;;  %v6811_v13 = vpop.f32.mrb[185].mxu0 }
0x393a   :  { %v5528_v35 = vpop.f32.mrb[186].mxu0 }
0x393b   :  { %v5538_v53 = vadd.f32 %v5537_v28, %v5532_v32  ;;  %v5533_v37 = vadd.f32 %v5528_v35, %v5267_v51  ;;  %v6812_v54 = vpop.f32.mrb[187].mxu0  ;;  %v6879_v51 = vld [vmem:[%s8332_s7 + $0x20] sm:$0xff]  }
0x393c   :  { %6822 = vmatpush3.bf16.msra.mxu0 %v6879_v51  ;;  %v5775_v51 = vrot.slane %v8039_v46, %v7310_v40 }
0x393d   :  { %v5539_v22 = vadd.f32 %v5537_v28, %v5533_v37  ;;  %v5540_v14 = vadd.f32 %v5538_v53, %v8045_v58  ;;  %6823 = vmatprep.subr.bf16.mxu0 %v7125_v0 }
0x393f   :  { %v5542_v61 = vsel %vm125_vm1, %v5540_v14, 0.0  ;;  %v5541_v4 = vadd.f32 %v5539_v22, %v8047_v30  ;;  %v6877_v30 = vld [vmem:[%s8330_s5 + $0x10] sm:$0xff]  }
0x3940   :  { %5543 = vadd.xlane.f32.xlu1 %v5542_v61  ;;  %6814 = vmatpush3.bf16.msra.mxu1 %v6877_v30 }
0x3941   :  { %v5545_v12 = vsel %vm125_vm1, %v5541_v4, 0.0  ;;  %6815 = vmatprep.subr.bf16.mxu1 %v7125_v0  ;;  %6824 = vmatpush3.bf16.msra.mxu0 %v6880_v26 }
0x3942   :  { %5546 = vadd.xlane.f32.xlu0 %v5545_v12  ;;  %6825 = vmatprep.subr.bf16.mxu0 %v7125_v0 }
0x3944   :  { %6816 = vmatpush3.bf16.msra.mxu1 %v6878_v3 }
0x3945   :  { %6826 = vmatpush3.bf16.msra.mxu0 %v6881_v9 }
0x3946   :  { %6827 = vmatprep.subr.bf16.mxu0 %v7125_v0  ;;  %v5993_v0 = vld [vmem:[#allocation5 + $0x1] ss:$0 sm:$0xff] }
0x3949   :  { %6828 = vmatpush3.bf16.msra.mxu0 %v6882_v8 }
0x39cd   :  { %v5544_v16 = vpop.xlane.xlu1 %5543 }
0x39ce   :  { %v5548_v55 = vmul.f32 0.03125, %v5544_v16 }
0x39cf   :  { %v5547_v59 = vpop.xlane.xlu0 %5546 }
0x39d0   :  { %v5550_v57 = vsub.f32 %v5540_v14, %v5548_v55  ;;  %v5549_v31 = vmul.f32 0.03125, %v5547_v59 }
0x39d2   :  { %v5551_v43 = vsub.f32 %v5541_v4, %v5549_v31  ;;  %v5552_v49 = vmul.f32 %v5550_v57, %v5550_v57 }
0x39d4   :  { %v5554_v50 = vsel %vm125_vm1, %v5552_v49, 0.0  ;;  %v5553_v27 = vmul.f32 %v5551_v43, %v5551_v43 }
0x39d5   :  { %5555 = vadd.xlane.f32.xlu0 %v5554_v50 }
0x39d6   :  { %v5557_v58 = vsel %vm125_vm1, %v5553_v27, 0.0 }
0x39d7   :  { %5558 = vadd.xlane.f32.xlu1 %v5557_v58  ;;  %v5769_v58 = vrot.slane %v8034_v45, %v7310_v40 }
0x3a62   :  { %v5556_v20 = vpop.xlane.xlu0 %5555 }
0x3a63   :  { %v5560_v21 = vmul.f32 0.03125, %v5556_v20 }
0x3a64   :  { %v5559_v52 = vpop.xlane.xlu1 %5558 }
0x3a65   :  { %v5562_v62 = vadd.f32 1e-05, %v5560_v21  ;;  %v5561_v33 = vmul.f32 0.03125, %v5559_v52 }
0x3a67   :  { %7027 = vrsqrt.f32 %v5562_v62  ;;  %v5563_v56 = vadd.f32 1e-05, %v5561_v33 }
0x3a69   :  { %7029 = vrsqrt.f32 %v5563_v56 }
0x3a71   :  { %v7028_v1 = vpop.eup %7027 }
0x3a72   :  { %v5566_v34 = vmul.f32 %v7028_v1, %v5550_v57 }
0x3a73   :  { %v7030_v47 = vpop.eup %7029 }
0x3a74   :  { %v5572_v17 = vmul.f32 %v5571_v24, %v5566_v34  ;;  %v5567_v36 = vmul.f32 %v7030_v47, %v5551_v43 }
0x3a76   :  { %v5573_v2 = vmul.f32 %v5571_v24, %v5567_v36  ;;  %v5578_v41 = vadd.f32 %v5577_v6, %v5572_v17 }
0x3a78   :  { %v5579_v5 = vadd.f32 %v5577_v6, %v5573_v2 }
0x3a7a   :  { %v5585_v10 = vpack.c.bf16 %v5579_v5, %v5578_v41 }
0x3a7c   :  { %6818 = vmatmul.mubr.msk.bf16.vlgmr.msra.gmra.mrb[188].mxu1 %vm125_vm1, %v5585_v10 }
0x3b4f   :  { %v5643_v29 = vpop.f32.mrb[188].mxu1 }
0x3b50   :  { %v5644_v39 = vadd.f32 %v5981_v19, %v5643_v29  ;;  %v6819_v15 = vpop.f32.mrb[189].mxu1 }
0x3b51   :  { %v5646_v11 = vpop.f32.mrb[190].mxu1 }
0x3b52   :  { %v5647_v18 = vadd.f32 %v5981_v19, %v5646_v11  ;;  %v6820_v44 = vpop.f32.mrb[191].mxu1  ;;  %v5650_v42 = vmax.f32 %v5644_v39, 0.0  ;;  %v5999_v39 = vld [vmem:[%s8336_s11] ss:$0 sm:$0xff] }
0x3b54   :  { %v5651_v25 = vmax.f32 %v5647_v18, 0.0  ;;  %v6000_v18 = vld [vmem:[%s8337_s12] ss:$0 sm:$0xff] }
0x3b56   :  { %v5661_v23 = vpack.c.bf16 %v5651_v25, %v5650_v42 }
0x3b58   :  { %6830 = vmatmul.mubr.msk.bf16.vlgmr.msra.gmra.mrb[188].mxu0 %vm2848_vm5, %v5661_v23 }
0x3c2b   :  { %v5731_v48 = vpop.f32.mrb[188].mxu0 }
0x3c2c   :  { %v5732_v38 = vadd.f32 %v5993_v0, %v5731_v48  ;;  %v6831_v63 = vpop.f32.mrb[189].mxu0 }
0x3c2d   :  { %v5734_v7 = vpop.f32.mrb[190].mxu0 }
0x3c2e   :  { %v5738_v28 = vadd.f32 %v5732_v38, %v5578_v41  ;;  %v5735_v60 = vadd.f32 %v5993_v0, %v5734_v7  ;;  %v6832_v32 = vpop.f32.mrb[191].mxu0 }
0x3c30   :  { %v5739_v13 = vadd.f32 %v5735_v60, %v5579_v5  ;;  %v5740_v35 = vsel %vm125_vm1, %v5738_v28, 0.0 }
0x3c31   :  { %5741 = vadd.xlane.f32.xlu0 %v5740_v35 }
0x3c32   :  { %v5743_v53 = vsel %vm125_vm1, %v5739_v13, 0.0 }
0x3c33   :  { %5744 = vadd.xlane.f32.xlu1 %v5743_v53 }
0x3cbe   :  { %v5742_v37 = vpop.xlane.xlu0 %5741 }
0x3cbf   :  { %v5746_v54 = vmul.f32 0.03125, %v5742_v37 }
0x3cc0   :  { %v5745_v22 = vpop.xlane.xlu1 %5744 }
0x3cc1   :  { %v5748_v14 = vsub.f32 %v5738_v28, %v5746_v54  ;;  %v5747_v61 = vmul.f32 0.03125, %v5745_v22 }
0x3cc3   :  { %v5749_v4 = vsub.f32 %v5739_v13, %v5747_v61  ;;  %v5750_v12 = vmul.f32 %v5748_v14, %v5748_v14 }
0x3cc5   :  { %v5752_v16 = vsel %vm125_vm1, %v5750_v12, 0.0  ;;  %v5751_v55 = vmul.f32 %v5749_v4, %v5749_v4 }
0x3cc6   :  { %5753 = vadd.xlane.f32.xlu0 %v5752_v16 }
0x3cc7   :  { %v5755_v59 = vsel %vm125_vm1, %v5751_v55, 0.0 }
0x3cc8   :  { %5756 = vadd.xlane.f32.xlu1 %v5755_v59 }
0x3d53   :  { %v5754_v57 = vpop.xlane.xlu0 %5753 }
0x3d54   :  { %v5758_v31 = vmul.f32 0.03125, %v5754_v57 }
0x3d55   :  { %v5757_v43 = vpop.xlane.xlu1 %5756 }
0x3d56   :  { %v5760_v49 = vadd.f32 1e-05, %v5758_v31  ;;  %v5759_v50 = vmul.f32 0.03125, %v5757_v43 }
0x3d58   :  { %7031 = vrsqrt.f32 %v5760_v49  ;;  %v5761_v27 = vadd.f32 1e-05, %v5759_v50 }
0x3d5a   :  { %7033 = vrsqrt.f32 %v5761_v27 }
0x3d62   :  { %v7032_v30 = vpop.eup %7031 }
0x3d63   :  { %v5764_v3 = vmul.f32 %v7032_v30, %v5748_v14 }
0x3d64   :  { %v7034_v26 = vpop.eup %7033 }
0x3d65   :  { %v5770_v20 = vmul.f32 %v5769_v58, %v5764_v3  ;;  %v5765_v21 = vmul.f32 %v7034_v26, %v5749_v4 }
0x3d67   :  { %v5776_v52 = vadd.f32 %v5775_v51, %v5770_v20  ;;  %v5771_v62 = vmul.f32 %v5769_v58, %v5765_v21 }
0x3d69   :  { %v5780_v33 = vsel %vm125_vm1, %v5776_v52, 0.0  ;;  %v5777_v56 = vadd.f32 %v5775_v51, %v5771_v62 }
0x3d6a   :  { %5781 = vadd.xlane.f32.xlu0 %v5780_v33 }
0x3d6b   :  { %v5783_v24 = vsel %vm125_vm1, %v5777_v56, 0.0 }
0x3d6c   :  { %5784 = vadd.xlane.f32.xlu1 %v5783_v24 }
0x3df7   :  { %v5782_v1 = vpop.xlane.xlu0 %5781 }
0x3df8   :  { %v5786_v34 = vmul.f32 0.03125, %v5782_v1 }
0x3df9   :  { %v5785_v45 = vpop.xlane.xlu1 %5784 }
0x3dfa   :  { %v5788_v47 = vsub.f32 %v5776_v52, %v5786_v34  ;;  %v5787_v17 = vmul.f32 0.03125, %v5785_v45 }
0x3dfc   :  { %v5789_v36 = vsub.f32 %v5777_v56, %v5787_v17  ;;  %v5790_v6 = vmul.f32 %v5788_v47, %v5788_v47 }
0x3dfe   :  { %v5792_v40 = vsel %vm125_vm1, %v5790_v6, 0.0  ;;  %v5791_v46 = vmul.f32 %v5789_v36, %v5789_v36 }
0x3dff   :  { %5793 = vadd.xlane.f32.xlu0 %v5792_v40 }
0x3e00   :  { %v5795_v2 = vsel %vm125_vm1, %v5791_v46, 0.0 }
0x3e01   :  { %5796 = vadd.xlane.f32.xlu1 %v5795_v2 }
0x3e8c   :  { %v5794_v41 = vpop.xlane.xlu0 %5793 }
0x3e8d   :  { %v5798_v5 = vmul.f32 0.03125, %v5794_v41 }
0x3e8e   :  { %v5797_v10 = vpop.xlane.xlu1 %5796 }
0x3e8f   :  { %v5800_v9 = vadd.f32 1e-05, %v5798_v5  ;;  %v5799_v8 = vmul.f32 0.03125, %v5797_v10 }
0x3e91   :  { %7035 = vrsqrt.f32 %v5800_v9  ;;  %v5801_v19 = vadd.f32 1e-05, %v5799_v8 }
0x3e93   :  { %7037 = vrsqrt.f32 %v5801_v19 }
0x3e9b   :  { %v7036_v29 = vpop.eup %7035 }
0x3e9c   :  { %v5804_v15 = vmul.f32 %v7036_v29, %v5788_v47 }
0x3e9d   :  { %v7038_v11 = vpop.eup %7037 }
0x3e9e   :  { %v5812_v44 = vmul.f32 %v5999_v39, %v5804_v15  ;;  %v5805_v42 = vmul.f32 %v7038_v11, %v5789_v36 }
0x3ea0   :  { %v5813_v25 = vmul.f32 %v5999_v39, %v5805_v42  ;;  %v5820_v23 = vadd.f32 %v6000_v18, %v5812_v44 }
0x3ea2   :  { %v5821_v0 = vadd.f32 %v6000_v18, %v5813_v25  ;;  %5822 = vst.msk [vmem:[#allocation7] sm:$0xff] %vm125_vm1, %v5820_v23 }
0x3ea4   :  { %5823 = vst.msk [vmem:[#allocation7 + $0x8] sm:$0xff] %vm125_vm1, %v5821_v0 }
0x3ea5   :  { %7102 = shalt.err (!%p7099_p6)
}
0x3ea6   :  { %s7103_s16 = scalar_lea.hbm %s8338_s13, 256 }
0x3ea7   :  { %p7104_p7 = scmp.ne.s32.totalorder %s8338_s13, %s7103_s16  ;;  %p7107_p8 = scmp.lt.u32.totalorder %s7103_s16, %s8338_s13 }
0x3ea9   :  { %p7109_p9 = pnand %p7107_p8, %p7104_p7 }
0x3eab   :  { %7112 = shalt.err (!%p7109_p9)
}
0x3eac   :  { %s7131_s2 = smov 128   ;;  %s7132_s27 = smov 8  }
0x3ead   :  { %5835 = dma.vmem_to_hbm [thread:$0]  %s5830_s3, 256, %s8338_s13, [#allocation4], %s7131_s2, %s7131_s2, %s7132_s27  }
0x3eae   :  { %7117 = dma.done.wait [#allocation4], 256  }
0x3eaf   :  { %7118 = vsyncadd [#allocation4], 4294967040 }
0x3eb0   :  { %5839 = vsyncpa [#allocation3], 1 }
0x3eb1   :  { %5840 = vsyncpa [#allocation6], 1 }
0x3eb2   :  { %5841 = vsyncpa [#allocation4], 1 }

</bundles_post_ra>
